<compile_context>
chip_gen: v5e
topology: v5e:2x2
jax: 0.10.0
libtpu: 0.0.40
codegen_flags: <defaults>
</compile_context>

<pallas_src>
import jax
import jax.numpy as jnp
from jax.experimental import pallas as pl
from jax.experimental.pallas import tpu as pltpu

# ---- tiny-BERT config (small shapes consistent with the forward pass) -------
VOCAB = 100
MAX_POS = 128          # tokenizer max_length=128 in the reference module
HIDDEN = 32
N_HEADS = 4
HEAD_DIM = HIDDEN // N_HEADS
INTERMEDIATE = 64
N_LAYERS = 2
LN_EPS = 1e-12         # BERT layer-norm eps
NEG_INF = -1e9
GELU_C = 0.7978845608028654   # sqrt(2/pi)


# ------------------------------ fused Pallas kernel --------------------------
def _bert_encoder_kernel(emb_ref, mask_ref, eg_ref, eb_ref,
                         wq_ref, bq_ref, wk_ref, bk_ref, wv_ref, bv_ref,
                         wo_ref, bo_ref, ln1g_ref, ln1b_ref,
                         w1_ref, b1_ref, w2_ref, b2_ref,
                         ln2g_ref, ln2b_ref, out_ref):
    """One grid step == one batch tile's full encoder forward."""
    BT, S, H = emb_ref.shape
    inv_h = 1.0 / H                       # hoisted LN reciprocal
    scale = 1.0 / (HEAD_DIM ** 0.5)

    def layernorm(x, g, b):               # x: (rows, H)
        mu = jnp.sum(x, axis=-1, keepdims=True) * inv_h
        d = x - mu
        var = jnp.sum(d * d, axis=-1, keepdims=True) * inv_h
        return d * jax.lax.rsqrt(var + LN_EPS) * g + b

    # additive key-mask bias built in-kernel: (BT, 1, S)
    bias = ((1.0 - mask_ref[...]) * NEG_INF)[:, None, :]

    # flat (BT*S, H) activation slab -- all dense matmuls use the fat M dim
    h = layernorm(emb_ref[...].reshape(BT * S, H), eg_ref[...], eb_ref[...])

    for l in range(N_LAYERS):             # static unroll (L=2); weights stay in VMEM
        # ---- multi-head attention (no lane slices, no concat) ----
        attn = jnp.zeros((BT * S, H), jnp.float32)
        for n in range(N_HEADS):          # per-head weights: pure matmuls/einsums
            q = (jnp.dot(h, wq_ref[l, n], preferred_element_type=jnp.float32)
                 + bq_ref[l, n]).reshape(BT, S, HEAD_DIM)
            k = (jnp.dot(h, wk_ref[l, n], preferred_element_type=jnp.float32)
                 + bk_ref[l, n]).reshape(BT, S, HEAD_DIM)
            v = (jnp.dot(h, wv_ref[l, n], preferred_element_type=jnp.float32)
                 + bv_ref[l, n]).reshape(BT, S, HEAD_DIM)

            s = jnp.einsum('bqd,bkd->bqk', q, k,
                           preferred_element_type=jnp.float32) * scale + bias
            s = s - jnp.max(s, axis=-1, keepdims=True)
            p = jnp.exp(s)
            p = p * pl.reciprocal(jnp.sum(p, axis=-1, keepdims=True), approx=True)

            ctx = jnp.einsum('bqk,bkd->bqd', p, v,
                             preferred_element_type=jnp.float32)      # (BT, S, HD)
            # head merge folded into the output projection (== concat @ Wo)
            attn = attn + jnp.dot(ctx.reshape(BT * S, HEAD_DIM), wo_ref[l, n],
                                  preferred_element_type=jnp.float32)
        attn = attn + bo_ref[l]
        h = layernorm(attn + h, ln1g_ref[l], ln1b_ref[l])

        # ---- FFN: tanh-GELU (EUP) ----
        ff = jnp.dot(h, w1_ref[l], preferred_element_type=jnp.float32) + b1_ref[l]
        ff = 0.5 * ff * (1.0 + jnp.tanh(GELU_C * (ff + 0.044715 * ff * ff * ff)))
        ff = jnp.dot(ff, w2_ref[l], preferred_element_type=jnp.float32) + b2_ref[l]
        h = layernorm(ff + h, ln2g_ref[l], ln2b_ref[l])

    # lane-dense CLS output: one (BT, H) block per step
    out_ref[...] = h.reshape(BT, S, H)[:, 0, :]


# ------------------------------ parameters -----------------------------------
def init_params(key):
    def nrm(k, shape, scale=0.02):
        return scale * jax.random.normal(k, shape, dtype=jnp.float32)

    def split_in(w):    # (H, H) -> (NH, H, HD): columns grouped per head
        return w.reshape(HIDDEN, N_HEADS, HEAD_DIM).transpose(1, 0, 2)

    keys = jax.random.split(key, 4 + N_LAYERS)
    wq, bq, wk, bk, wv, bv = [], [], [], [], [], []
    wo, bo, ln1g, ln1b = [], [], [], []
    w1, b1, w2, b2, ln2g, ln2b = [], [], [], [], [], []
    zb_h = jnp.zeros((N_HEADS, 1, HEAD_DIM), jnp.float32)
    for li in range(N_LAYERS):
        lk = jax.random.split(keys[4 + li], 6)
        wq.append(split_in(nrm(lk[0], (HIDDEN, HIDDEN)))); bq.append(zb_h)
        wk.append(split_in(nrm(lk[1], (HIDDEN, HIDDEN)))); bk.append(zb_h)
        wv.append(split_in(nrm(lk[2], (HIDDEN, HIDDEN)))); bv.append(zb_h)
        # Wo rows grouped per head: (NH, HD, H)
        wo.append(nrm(lk[3], (HIDDEN, HIDDEN)).reshape(N_HEADS, HEAD_DIM, HIDDEN))
        bo.append(jnp.zeros((1, HIDDEN), jnp.float32))
        ln1g.append(jnp.ones((1, HIDDEN), jnp.float32))
        ln1b.append(jnp.zeros((1, HIDDEN), jnp.float32))
        w1.append(nrm(lk[4], (HIDDEN, INTERMEDIATE)))
        b1.append(jnp.zeros((1, INTERMEDIATE), jnp.float32))
        w2.append(nrm(lk[5], (INTERMEDIATE, HIDDEN)))
        b2.append(jnp.zeros((1, HIDDEN), jnp.float32))
        ln2g.append(jnp.ones((1, HIDDEN), jnp.float32))
        ln2b.append(jnp.zeros((1, HIDDEN), jnp.float32))

    return {
        "tok_emb": nrm(keys[0], (VOCAB, HIDDEN)),
        "pos_emb": nrm(keys[1], (MAX_POS, HIDDEN)),
        "type_emb": nrm(keys[2], (2, HIDDEN)),
        "emb_ln_g": jnp.ones((1, HIDDEN), jnp.float32),
        "emb_ln_b": jnp.zeros((1, HIDDEN), jnp.float32),
        "wq": jnp.stack(wq), "bq": jnp.stack(bq),
        "wk": jnp.stack(wk), "bk": jnp.stack(bk),
        "wv": jnp.stack(wv), "bv": jnp.stack(bv),
        "wo": jnp.stack(wo), "bo": jnp.stack(bo),
        "ln1_g": jnp.stack(ln1g), "ln1_b": jnp.stack(ln1b),
        "w1": jnp.stack(w1), "b1": jnp.stack(b1),
        "w2": jnp.stack(w2), "b2": jnp.stack(b2),
        "ln2_g": jnp.stack(ln2g), "ln2_b": jnp.stack(ln2b),
    }


# ------------------------------ forward (glue) --------------------------------
def get_docvec(input_ids, attention_mask, params):
    """Equivalent of BertFamily.get_docvec: encoder last_hidden_state[:, 0, :]."""
    B, S = input_ids.shape

    # embedding lookup kept in XLA glue (single tiny gather), summed once
    tok = params["tok_emb"][input_ids]                       # (B, S, H)
    pos = params["pos_emb"][:S][None, :, :]                  # (1, S, H)
    typ = params["type_emb"][0][None, None, :]               # token_type_ids == 0
    emb = (tok + pos + typ).astype(jnp.float32)              # (B, S, H)
    mask = attention_mask.astype(jnp.float32)                # (B, S)

    # batch tiling: fold up to 8 batch rows per grid step, keep an outer
    # "parallel" axis so larger batches still feed both TCs on v7x.
    BT = B if B <= 8 else 8
    assert B % BT == 0, "TODO(synk): pad batch to a multiple of the batch tile"
    nb = B // BT

    def rep(shape):  # weight blocks: full array, same block every grid step
        nd = len(shape)
        return pl.BlockSpec(shape, lambda i, nd=nd: (0,) * nd)

    hspec = lambda: rep((N_LAYERS, N_HEADS, HIDDEN, HEAD_DIM))
    hbspec = lambda: rep((N_LAYERS, N_HEADS, 1, HEAD_DIM))

    out = pl.pallas_call(
        _bert_encoder_kernel,
        out_shape=jax.ShapeDtypeStruct((B, HIDDEN), jnp.float32),
        grid=(nb,),
        in_specs=[
            pl.BlockSpec((BT, S, HIDDEN), lambda i: (i, 0, 0)),  # emb
            pl.BlockSpec((BT, S), lambda i: (i, 0)),             # attention mask
            rep((1, HIDDEN)), rep((1, HIDDEN)),                  # emb LN
            hspec(), hbspec(),                                   # Wq, bq
            hspec(), hbspec(),                                   # Wk, bk
            hspec(), hbspec(),                                   # Wv, bv
            rep((N_LAYERS, N_HEADS, HEAD_DIM, HIDDEN)),          # Wo (per-head)
            rep((N_LAYERS, 1, HIDDEN)),                          # bo
            rep((N_LAYERS, 1, HIDDEN)), rep((N_LAYERS, 1, HIDDEN)),        # LN1
            rep((N_LAYERS, HIDDEN, INTERMEDIATE)), rep((N_LAYERS, 1, INTERMEDIATE)),
            rep((N_LAYERS, INTERMEDIATE, HIDDEN)), rep((N_LAYERS, 1, HIDDEN)),
            rep((N_LAYERS, 1, HIDDEN)), rep((N_LAYERS, 1, HIDDEN)),        # LN2
        ],
        out_specs=pl.BlockSpec((BT, HIDDEN), lambda i: (i, 0)),
        compiler_params=pltpu.CompilerParams(
            dimension_semantics=("parallel",)),
    )(emb, mask,
      params["emb_ln_g"], params["emb_ln_b"],
      params["wq"], params["bq"], params["wk"], params["bk"],
      params["wv"], params["bv"], params["wo"], params["bo"],
      params["ln1_g"], params["ln1_b"], params["w1"], params["b1"],
      params["w2"], params["b2"], params["ln2_g"], params["ln2_b"])

    return out                                               # CLS embedding (B, H)


if __name__ == "__main__":
    key = jax.random.PRNGKey(0)
    params = init_params(key)

    B, S = 2, 8
    # synthetic "tokenized documents": deterministic ids + padding mask
    input_ids = jax.random.randint(jax.random.fold_in(key, 999), (B, S), 0, VOCAB)
    lengths = jnp.array([8, 6], dtype=jnp.int32)
    attention_mask = (jnp.arange(S)[None, :] < lengths[:, None]).astype(jnp.float32)

    docvec = get_docvec(input_ids, attention_mask, params)
    jax.block_until_ready(docvec)
    assert docvec.shape == (B, HIDDEN) and docvec.dtype == jnp.float32
    assert bool(jnp.all(jnp.isfinite(docvec)))
    print("KERNEL_OK")
</pallas_src>

<mosaic_0001>
module attributes {stable_mosaic.version = 11 : i64} {
  func.func @_bert_encoder_kernel(%arg0: i32, %arg1: memref<2x8x32xf32, #tpu.memory_space<vmem>>, %arg2: memref<2x8xf32, #tpu.memory_space<vmem>>, %arg3: memref<1x32xf32, #tpu.memory_space<vmem>>, %arg4: memref<1x32xf32, #tpu.memory_space<vmem>>, %arg5: memref<2x4x32x8xf32, #tpu.memory_space<vmem>>, %arg6: memref<2x4x1x8xf32, #tpu.memory_space<vmem>>, %arg7: memref<2x4x32x8xf32, #tpu.memory_space<vmem>>, %arg8: memref<2x4x1x8xf32, #tpu.memory_space<vmem>>, %arg9: memref<2x4x32x8xf32, #tpu.memory_space<vmem>>, %arg10: memref<2x4x1x8xf32, #tpu.memory_space<vmem>>, %arg11: memref<2x4x8x32xf32, #tpu.memory_space<vmem>>, %arg12: memref<2x1x32xf32, #tpu.memory_space<vmem>>, %arg13: memref<2x1x32xf32, #tpu.memory_space<vmem>>, %arg14: memref<2x1x32xf32, #tpu.memory_space<vmem>>, %arg15: memref<2x32x64xf32, #tpu.memory_space<vmem>>, %arg16: memref<2x1x64xf32, #tpu.memory_space<vmem>>, %arg17: memref<2x64x32xf32, #tpu.memory_space<vmem>>, %arg18: memref<2x1x32xf32, #tpu.memory_space<vmem>>, %arg19: memref<2x1x32xf32, #tpu.memory_space<vmem>>, %arg20: memref<2x1x32xf32, #tpu.memory_space<vmem>>, %arg21: memref<2x32xf32, #tpu.memory_space<vmem>>) attributes {dimension_semantics = [#tpu.dimension_semantics<parallel>], iteration_bounds = array<i64: 1>, scalar_prefetch = 0 : i64, scratch_operands = 0 : i64, tpu.core_type = #tpu.core_type<tc>, window_params = [{transform_indices = @transform_0, window_bounds = array<i64: 2, 8, 32>}, {transform_indices = @transform_1, window_bounds = array<i64: 2, 8>}, {pipeline_mode = #tpu.pipeline_mode<synchronous>, transform_indices = @transform_2, window_bounds = array<i64: 1, 32>}, {pipeline_mode = #tpu.pipeline_mode<synchronous>, transform_indices = @transform_3, window_bounds = array<i64: 1, 32>}, {pipeline_mode = #tpu.pipeline_mode<synchronous>, transform_indices = @transform_4, window_bounds = array<i64: 2, 4, 32, 8>}, {pipeline_mode = #tpu.pipeline_mode<synchronous>, transform_indices = @transform_5, window_bounds = array<i64: 2, 4, 1, 8>}, {pipeline_mode = #tpu.pipeline_mode<synchronous>, transform_indices = @transform_6, window_bounds = array<i64: 2, 4, 32, 8>}, {pipeline_mode = #tpu.pipeline_mode<synchronous>, transform_indices = @transform_7, window_bounds = array<i64: 2, 4, 1, 8>}, {pipeline_mode = #tpu.pipeline_mode<synchronous>, transform_indices = @transform_8, window_bounds = array<i64: 2, 4, 32, 8>}, {pipeline_mode = #tpu.pipeline_mode<synchronous>, transform_indices = @transform_9, window_bounds = array<i64: 2, 4, 1, 8>}, {pipeline_mode = #tpu.pipeline_mode<synchronous>, transform_indices = @transform_10, window_bounds = array<i64: 2, 4, 8, 32>}, {pipeline_mode = #tpu.pipeline_mode<synchronous>, transform_indices = @transform_11, window_bounds = array<i64: 2, 1, 32>}, {pipeline_mode = #tpu.pipeline_mode<synchronous>, transform_indices = @transform_12, window_bounds = array<i64: 2, 1, 32>}, {pipeline_mode = #tpu.pipeline_mode<synchronous>, transform_indices = @transform_13, window_bounds = array<i64: 2, 1, 32>}, {pipeline_mode = #tpu.pipeline_mode<synchronous>, transform_indices = @transform_14, window_bounds = array<i64: 2, 32, 64>}, {pipeline_mode = #tpu.pipeline_mode<synchronous>, transform_indices = @transform_15, window_bounds = array<i64: 2, 1, 64>}, {pipeline_mode = #tpu.pipeline_mode<synchronous>, transform_indices = @transform_16, window_bounds = array<i64: 2, 64, 32>}, {pipeline_mode = #tpu.pipeline_mode<synchronous>, transform_indices = @transform_17, window_bounds = array<i64: 2, 1, 32>}, {pipeline_mode = #tpu.pipeline_mode<synchronous>, transform_indices = @transform_18, window_bounds = array<i64: 2, 1, 32>}, {pipeline_mode = #tpu.pipeline_mode<synchronous>, transform_indices = @transform_19, window_bounds = array<i64: 2, 1, 32>}, {transform_indices = @transform_20, window_bounds = array<i64: 2, 32>}]} {
    %c0 = arith.constant 0 : index
    %c0_0 = arith.constant 0 : index
    %0 = vector.load %arg2[%c0, %c0_0] : memref<2x8xf32, #tpu.memory_space<vmem>>, vector<2x8xf32>
    %cst = arith.constant 1.000000e+00 : f32
    %1 = vector.broadcast %cst : f32 to vector<2x8xf32>
    %2 = arith.subf %1, %0 : vector<2x8xf32>
    %cst_1 = arith.constant -1.000000e+09 : f32
    %3 = vector.broadcast %cst_1 : f32 to vector<2x8xf32>
    %4 = arith.mulf %2, %3 : vector<2x8xf32>
    %5 = vector.shape_cast %4 : vector<2x8xf32> to vector<2x1x8xf32>
    %c0_2 = arith.constant 0 : index
    %c0_3 = arith.constant 0 : index
    %c0_4 = arith.constant 0 : index
    %6 = vector.load %arg1[%c0_2, %c0_3, %c0_4] : memref<2x8x32xf32, #tpu.memory_space<vmem>>, vector<2x8x32xf32>
    %7 = vector.shape_cast %6 : vector<2x8x32xf32> to vector<16x32xf32>
    %c0_5 = arith.constant 0 : index
    %c0_6 = arith.constant 0 : index
    %8 = vector.load %arg3[%c0_5, %c0_6] : memref<1x32xf32, #tpu.memory_space<vmem>>, vector<1x32xf32>
    %c0_7 = arith.constant 0 : index
    %c0_8 = arith.constant 0 : index
    %9 = vector.load %arg4[%c0_7, %c0_8] : memref<1x32xf32, #tpu.memory_space<vmem>>, vector<1x32xf32>
    %cst_9 = arith.constant dense<0.000000e+00> : vector<16xf32>
    %10 = vector.multi_reduction <add>, %7, %cst_9 [1] : vector<16x32xf32> to vector<16xf32>
    %11 = vector.shape_cast %10 : vector<16xf32> to vector<16x1xf32>
    %cst_10 = arith.constant 3.125000e-02 : f32
    %12 = vector.broadcast %cst_10 : f32 to vector<16x1xf32>
    %13 = arith.mulf %11, %12 : vector<16x1xf32>
    %14 = vector.broadcast %13 : vector<16x1xf32> to vector<16x32xf32>
    %15 = arith.subf %7, %14 : vector<16x32xf32>
    %16 = arith.mulf %15, %15 : vector<16x32xf32>
    %cst_11 = arith.constant dense<0.000000e+00> : vector<16xf32>
    %17 = vector.multi_reduction <add>, %16, %cst_11 [1] : vector<16x32xf32> to vector<16xf32>
    %18 = vector.shape_cast %17 : vector<16xf32> to vector<16x1xf32>
    %cst_12 = arith.constant 3.125000e-02 : f32
    %19 = vector.broadcast %cst_12 : f32 to vector<16x1xf32>
    %20 = arith.mulf %18, %19 : vector<16x1xf32>
    %cst_13 = arith.constant 9.99999996E-13 : f32
    %21 = vector.broadcast %cst_13 : f32 to vector<16x1xf32>
    %22 = arith.addf %20, %21 : vector<16x1xf32>
    %23 = math.rsqrt %22 : vector<16x1xf32>
    %24 = vector.broadcast %23 : vector<16x1xf32> to vector<16x32xf32>
    %25 = arith.mulf %15, %24 : vector<16x32xf32>
    %26 = vector.broadcast %8 : vector<1x32xf32> to vector<16x32xf32>
    %27 = arith.mulf %25, %26 : vector<16x32xf32>
    %28 = vector.broadcast %9 : vector<1x32xf32> to vector<16x32xf32>
    %29 = arith.addf %27, %28 : vector<16x32xf32>
    %cst_14 = arith.constant 0.000000e+00 : f32
    %30 = vector.broadcast %cst_14 : f32 to vector<16x32xf32>
    %c0_15 = arith.constant 0 : index
    %c0_16 = arith.constant 0 : index
    %c0_17 = arith.constant 0 : index
    %c0_18 = arith.constant 0 : index
    %31 = vector.load %arg5[%c0_15, %c0_16, %c0_17, %c0_18] : memref<2x4x32x8xf32, #tpu.memory_space<vmem>>, vector<1x1x32x8xf32>
    %32 = vector.shape_cast %31 : vector<1x1x32x8xf32> to vector<32x8xf32>
    %cst_19 = arith.constant dense<0.000000e+00> : vector<16x8xf32>
    %33 = tpu.matmul %29, %32, %cst_19 {dimension_numbers = #tpu.dot_dimension_numbers<[1], [0], [0], [1], [0, 0, 1, 1], [], []>} : vector<16x32xf32>, vector<32x8xf32>, vector<16x8xf32> -> vector<16x8xf32>
    %c0_20 = arith.constant 0 : index
    %c0_21 = arith.constant 0 : index
    %c0_22 = arith.constant 0 : index
    %c0_23 = arith.constant 0 : index
    %34 = vector.load %arg6[%c0_20, %c0_21, %c0_22, %c0_23] : memref<2x4x1x8xf32, #tpu.memory_space<vmem>>, vector<1x1x1x8xf32>
    %35 = vector.shape_cast %34 : vector<1x1x1x8xf32> to vector<1x8xf32>
    %36 = vector.broadcast %35 : vector<1x8xf32> to vector<16x8xf32>
    %37 = arith.addf %33, %36 : vector<16x8xf32>
    %38 = vector.shape_cast %37 : vector<16x8xf32> to vector<2x8x8xf32>
    %c0_24 = arith.constant 0 : index
    %c0_25 = arith.constant 0 : index
    %c0_26 = arith.constant 0 : index
    %c0_27 = arith.constant 0 : index
    %39 = vector.load %arg7[%c0_24, %c0_25, %c0_26, %c0_27] : memref<2x4x32x8xf32, #tpu.memory_space<vmem>>, vector<1x1x32x8xf32>
    %40 = vector.shape_cast %39 : vector<1x1x32x8xf32> to vector<32x8xf32>
    %cst_28 = arith.constant dense<0.000000e+00> : vector<16x8xf32>
    %41 = tpu.matmul %29, %40, %cst_28 {dimension_numbers = #tpu.dot_dimension_numbers<[1], [0], [0], [1], [0, 0, 1, 1], [], []>} : vector<16x32xf32>, vector<32x8xf32>, vector<16x8xf32> -> vector<16x8xf32>
    %c0_29 = arith.constant 0 : index
    %c0_30 = arith.constant 0 : index
    %c0_31 = arith.constant 0 : index
    %c0_32 = arith.constant 0 : index
    %42 = vector.load %arg8[%c0_29, %c0_30, %c0_31, %c0_32] : memref<2x4x1x8xf32, #tpu.memory_space<vmem>>, vector<1x1x1x8xf32>
    %43 = vector.shape_cast %42 : vector<1x1x1x8xf32> to vector<1x8xf32>
    %44 = vector.broadcast %43 : vector<1x8xf32> to vector<16x8xf32>
    %45 = arith.addf %41, %44 : vector<16x8xf32>
    %46 = vector.shape_cast %45 : vector<16x8xf32> to vector<2x8x8xf32>
    %c0_33 = arith.constant 0 : index
    %c0_34 = arith.constant 0 : index
    %c0_35 = arith.constant 0 : index
    %c0_36 = arith.constant 0 : index
    %47 = vector.load %arg9[%c0_33, %c0_34, %c0_35, %c0_36] : memref<2x4x32x8xf32, #tpu.memory_space<vmem>>, vector<1x1x32x8xf32>
    %48 = vector.shape_cast %47 : vector<1x1x32x8xf32> to vector<32x8xf32>
    %cst_37 = arith.constant dense<0.000000e+00> : vector<16x8xf32>
    %49 = tpu.matmul %29, %48, %cst_37 {dimension_numbers = #tpu.dot_dimension_numbers<[1], [0], [0], [1], [0, 0, 1, 1], [], []>} : vector<16x32xf32>, vector<32x8xf32>, vector<16x8xf32> -> vector<16x8xf32>
    %c0_38 = arith.constant 0 : index
    %c0_39 = arith.constant 0 : index
    %c0_40 = arith.constant 0 : index
    %c0_41 = arith.constant 0 : index
    %50 = vector.load %arg10[%c0_38, %c0_39, %c0_40, %c0_41] : memref<2x4x1x8xf32, #tpu.memory_space<vmem>>, vector<1x1x1x8xf32>
    %51 = vector.shape_cast %50 : vector<1x1x1x8xf32> to vector<1x8xf32>
    %52 = vector.broadcast %51 : vector<1x8xf32> to vector<16x8xf32>
    %53 = arith.addf %49, %52 : vector<16x8xf32>
    %54 = vector.shape_cast %53 : vector<16x8xf32> to vector<2x8x8xf32>
    "tpu.trace_start"() <{level = 10 : i32, message = "bqd,bkd->bqk"}> : () -> ()
    %cst_42 = arith.constant dense<0.000000e+00> : vector<2x8x8xf32>
    %55 = tpu.matmul %38, %46, %cst_42 {dimension_numbers = #tpu.dot_dimension_numbers<[2], [2], [1], [1], [0, 0, 0, 1, 1, 1], [0], [0]>} : vector<2x8x8xf32>, vector<2x8x8xf32>, vector<2x8x8xf32> -> vector<2x8x8xf32>
    "tpu.trace_stop"() : () -> ()
    %cst_43 = arith.constant 0.353553385 : f32
    %56 = vector.broadcast %cst_43 : f32 to vector<2x8x8xf32>
    %57 = arith.mulf %55, %56 : vector<2x8x8xf32>
    %58 = vector.broadcast %5 : vector<2x1x8xf32> to vector<2x8x8xf32>
    %59 = arith.addf %57, %58 : vector<2x8x8xf32>
    %cst_44 = arith.constant dense<0xFF800000> : vector<2x8xf32>
    %60 = vector.multi_reduction <maximumf>, %59, %cst_44 [2] : vector<2x8x8xf32> to vector<2x8xf32>
    %61 = vector.shape_cast %60 : vector<2x8xf32> to vector<2x8x1xf32>
    %62 = vector.broadcast %61 : vector<2x8x1xf32> to vector<2x8x8xf32>
    %63 = arith.subf %59, %62 : vector<2x8x8xf32>
    %64 = math.exp %63 : vector<2x8x8xf32>
    %cst_45 = arith.constant dense<0.000000e+00> : vector<2x8xf32>
    %65 = vector.multi_reduction <add>, %64, %cst_45 [2] : vector<2x8x8xf32> to vector<2x8xf32>
    %66 = vector.shape_cast %65 : vector<2x8xf32> to vector<2x8x1xf32>
    %67 = tpu.reciprocal %66 {approx = true} : vector<2x8x1xf32> -> vector<2x8x1xf32>
    %68 = vector.broadcast %67 : vector<2x8x1xf32> to vector<2x8x8xf32>
    %69 = arith.mulf %64, %68 : vector<2x8x8xf32>
    "tpu.trace_start"() <{level = 10 : i32, message = "bqk,bkd->bqd"}> : () -> ()
    %cst_46 = arith.constant dense<0.000000e+00> : vector<2x8x8xf32>
    %70 = tpu.matmul %69, %54, %cst_46 {dimension_numbers = #tpu.dot_dimension_numbers<[2], [1], [1], [2], [0, 0, 0, 1, 1, 2], [0], [0]>} : vector<2x8x8xf32>, vector<2x8x8xf32>, vector<2x8x8xf32> -> vector<2x8x8xf32>
    "tpu.trace_stop"() : () -> ()
    %71 = vector.shape_cast %70 : vector<2x8x8xf32> to vector<16x8xf32>
    %c0_47 = arith.constant 0 : index
    %c0_48 = arith.constant 0 : index
    %c0_49 = arith.constant 0 : index
    %c0_50 = arith.constant 0 : index
    %72 = vector.load %arg11[%c0_47, %c0_48, %c0_49, %c0_50] : memref<2x4x8x32xf32, #tpu.memory_space<vmem>>, vector<1x1x8x32xf32>
    %73 = vector.shape_cast %72 : vector<1x1x8x32xf32> to vector<8x32xf32>
    %cst_51 = arith.constant dense<0.000000e+00> : vector<16x32xf32>
    %74 = tpu.matmul %71, %73, %cst_51 {dimension_numbers = #tpu.dot_dimension_numbers<[1], [0], [0], [1], [0, 0, 1, 1], [], []>} : vector<16x8xf32>, vector<8x32xf32>, vector<16x32xf32> -> vector<16x32xf32>
    %75 = arith.addf %30, %74 : vector<16x32xf32>
    %c0_52 = arith.constant 0 : index
    %c1 = arith.constant 1 : index
    %c0_53 = arith.constant 0 : index
    %c0_54 = arith.constant 0 : index
    %76 = vector.load %arg5[%c0_52, %c1, %c0_53, %c0_54] : memref<2x4x32x8xf32, #tpu.memory_space<vmem>>, vector<1x1x32x8xf32>
    %77 = vector.shape_cast %76 : vector<1x1x32x8xf32> to vector<32x8xf32>
    %cst_55 = arith.constant dense<0.000000e+00> : vector<16x8xf32>
    %78 = tpu.matmul %29, %77, %cst_55 {dimension_numbers = #tpu.dot_dimension_numbers<[1], [0], [0], [1], [0, 0, 1, 1], [], []>} : vector<16x32xf32>, vector<32x8xf32>, vector<16x8xf32> -> vector<16x8xf32>
    %c0_56 = arith.constant 0 : index
    %c1_57 = arith.constant 1 : index
    %c0_58 = arith.constant 0 : index
    %c0_59 = arith.constant 0 : index
    %79 = vector.load %arg6[%c0_56, %c1_57, %c0_58, %c0_59] : memref<2x4x1x8xf32, #tpu.memory_space<vmem>>, vector<1x1x1x8xf32>
    %80 = vector.shape_cast %79 : vector<1x1x1x8xf32> to vector<1x8xf32>
    %81 = vector.broadcast %80 : vector<1x8xf32> to vector<16x8xf32>
    %82 = arith.addf %78, %81 : vector<16x8xf32>
    %83 = vector.shape_cast %82 : vector<16x8xf32> to vector<2x8x8xf32>
    %c0_60 = arith.constant 0 : index
    %c1_61 = arith.constant 1 : index
    %c0_62 = arith.constant 0 : index
    %c0_63 = arith.constant 0 : index
    %84 = vector.load %arg7[%c0_60, %c1_61, %c0_62, %c0_63] : memref<2x4x32x8xf32, #tpu.memory_space<vmem>>, vector<1x1x32x8xf32>
    %85 = vector.shape_cast %84 : vector<1x1x32x8xf32> to vector<32x8xf32>
    %cst_64 = arith.constant dense<0.000000e+00> : vector<16x8xf32>
    %86 = tpu.matmul %29, %85, %cst_64 {dimension_numbers = #tpu.dot_dimension_numbers<[1], [0], [0], [1], [0, 0, 1, 1], [], []>} : vector<16x32xf32>, vector<32x8xf32>, vector<16x8xf32> -> vector<16x8xf32>
    %c0_65 = arith.constant 0 : index
    %c1_66 = arith.constant 1 : index
    %c0_67 = arith.constant 0 : index
    %c0_68 = arith.constant 0 : index
    %87 = vector.load %arg8[%c0_65, %c1_66, %c0_67, %c0_68] : memref<2x4x1x8xf32, #tpu.memory_space<vmem>>, vector<1x1x1x8xf32>
    %88 = vector.shape_cast %87 : vector<1x1x1x8xf32> to vector<1x8xf32>
    %89 = vector.broadcast %88 : vector<1x8xf32> to vector<16x8xf32>
    %90 = arith.addf %86, %89 : vector<16x8xf32>
    %91 = vector.shape_cast %90 : vector<16x8xf32> to vector<2x8x8xf32>
    %c0_69 = arith.constant 0 : index
    %c1_70 = arith.constant 1 : index
    %c0_71 = arith.constant 0 : index
    %c0_72 = arith.constant 0 : index
    %92 = vector.load %arg9[%c0_69, %c1_70, %c0_71, %c0_72] : memref<2x4x32x8xf32, #tpu.memory_space<vmem>>, vector<1x1x32x8xf32>
    %93 = vector.shape_cast %92 : vector<1x1x32x8xf32> to vector<32x8xf32>
    %cst_73 = arith.constant dense<0.000000e+00> : vector<16x8xf32>
    %94 = tpu.matmul %29, %93, %cst_73 {dimension_numbers = #tpu.dot_dimension_numbers<[1], [0], [0], [1], [0, 0, 1, 1], [], []>} : vector<16x32xf32>, vector<32x8xf32>, vector<16x8xf32> -> vector<16x8xf32>
    %c0_74 = arith.constant 0 : index
    %c1_75 = arith.constant 1 : index
    %c0_76 = arith.constant 0 : index
    %c0_77 = arith.constant 0 : index
    %95 = vector.load %arg10[%c0_74, %c1_75, %c0_76, %c0_77] : memref<2x4x1x8xf32, #tpu.memory_space<vmem>>, vector<1x1x1x8xf32>
    %96 = vector.shape_cast %95 : vector<1x1x1x8xf32> to vector<1x8xf32>
    %97 = vector.broadcast %96 : vector<1x8xf32> to vector<16x8xf32>
    %98 = arith.addf %94, %97 : vector<16x8xf32>
    %99 = vector.shape_cast %98 : vector<16x8xf32> to vector<2x8x8xf32>
    "tpu.trace_start"() <{level = 10 : i32, message = "bqd,bkd->bqk"}> : () -> ()
    %cst_78 = arith.constant dense<0.000000e+00> : vector<2x8x8xf32>
    %100 = tpu.matmul %83, %91, %cst_78 {dimension_numbers = #tpu.dot_dimension_numbers<[2], [2], [1], [1], [0, 0, 0, 1, 1, 1], [0], [0]>} : vector<2x8x8xf32>, vector<2x8x8xf32>, vector<2x8x8xf32> -> vector<2x8x8xf32>
    "tpu.trace_stop"() : () -> ()
    %cst_79 = arith.constant 0.353553385 : f32
    %101 = vector.broadcast %cst_79 : f32 to vector<2x8x8xf32>
    %102 = arith.mulf %100, %101 : vector<2x8x8xf32>
    %103 = vector.broadcast %5 : vector<2x1x8xf32> to vector<2x8x8xf32>
    %104 = arith.addf %102, %103 : vector<2x8x8xf32>
    %cst_80 = arith.constant dense<0xFF800000> : vector<2x8xf32>
    %105 = vector.multi_reduction <maximumf>, %104, %cst_80 [2] : vector<2x8x8xf32> to vector<2x8xf32>
    %106 = vector.shape_cast %105 : vector<2x8xf32> to vector<2x8x1xf32>
    %107 = vector.broadcast %106 : vector<2x8x1xf32> to vector<2x8x8xf32>
    %108 = arith.subf %104, %107 : vector<2x8x8xf32>
    %109 = math.exp %108 : vector<2x8x8xf32>
    %cst_81 = arith.constant dense<0.000000e+00> : vector<2x8xf32>
    %110 = vector.multi_reduction <add>, %109, %cst_81 [2] : vector<2x8x8xf32> to vector<2x8xf32>
    %111 = vector.shape_cast %110 : vector<2x8xf32> to vector<2x8x1xf32>
    %112 = tpu.reciprocal %111 {approx = true} : vector<2x8x1xf32> -> vector<2x8x1xf32>
    %113 = vector.broadcast %112 : vector<2x8x1xf32> to vector<2x8x8xf32>
    %114 = arith.mulf %109, %113 : vector<2x8x8xf32>
    "tpu.trace_start"() <{level = 10 : i32, message = "bqk,bkd->bqd"}> : () -> ()
    %cst_82 = arith.constant dense<0.000000e+00> : vector<2x8x8xf32>
    %115 = tpu.matmul %114, %99, %cst_82 {dimension_numbers = #tpu.dot_dimension_numbers<[2], [1], [1], [2], [0, 0, 0, 1, 1, 2], [0], [0]>} : vector<2x8x8xf32>, vector<2x8x8xf32>, vector<2x8x8xf32> -> vector<2x8x8xf32>
    "tpu.trace_stop"() : () -> ()
    %116 = vector.shape_cast %115 : vector<2x8x8xf32> to vector<16x8xf32>
    %c0_83 = arith.constant 0 : index
    %c1_84 = arith.constant 1 : index
    %c0_85 = arith.constant 0 : index
    %c0_86 = arith.constant 0 : index
    %117 = vector.load %arg11[%c0_83, %c1_84, %c0_85, %c0_86] : memref<2x4x8x32xf32, #tpu.memory_space<vmem>>, vector<1x1x8x32xf32>
    %118 = vector.shape_cast %117 : vector<1x1x8x32xf32> to vector<8x32xf32>
    %cst_87 = arith.constant dense<0.000000e+00> : vector<16x32xf32>
    %119 = tpu.matmul %116, %118, %cst_87 {dimension_numbers = #tpu.dot_dimension_numbers<[1], [0], [0], [1], [0, 0, 1, 1], [], []>} : vector<16x8xf32>, vector<8x32xf32>, vector<16x32xf32> -> vector<16x32xf32>
    %120 = arith.addf %75, %119 : vector<16x32xf32>
    %c0_88 = arith.constant 0 : index
    %c2 = arith.constant 2 : index
    %c0_89 = arith.constant 0 : index
    %c0_90 = arith.constant 0 : index
    %121 = vector.load %arg5[%c0_88, %c2, %c0_89, %c0_90] : memref<2x4x32x8xf32, #tpu.memory_space<vmem>>, vector<1x1x32x8xf32>
    %122 = vector.shape_cast %121 : vector<1x1x32x8xf32> to vector<32x8xf32>
    %cst_91 = arith.constant dense<0.000000e+00> : vector<16x8xf32>
    %123 = tpu.matmul %29, %122, %cst_91 {dimension_numbers = #tpu.dot_dimension_numbers<[1], [0], [0], [1], [0, 0, 1, 1], [], []>} : vector<16x32xf32>, vector<32x8xf32>, vector<16x8xf32> -> vector<16x8xf32>
    %c0_92 = arith.constant 0 : index
    %c2_93 = arith.constant 2 : index
    %c0_94 = arith.constant 0 : index
    %c0_95 = arith.constant 0 : index
    %124 = vector.load %arg6[%c0_92, %c2_93, %c0_94, %c0_95] : memref<2x4x1x8xf32, #tpu.memory_space<vmem>>, vector<1x1x1x8xf32>
    %125 = vector.shape_cast %124 : vector<1x1x1x8xf32> to vector<1x8xf32>
    %126 = vector.broadcast %125 : vector<1x8xf32> to vector<16x8xf32>
    %127 = arith.addf %123, %126 : vector<16x8xf32>
    %128 = vector.shape_cast %127 : vector<16x8xf32> to vector<2x8x8xf32>
    %c0_96 = arith.constant 0 : index
    %c2_97 = arith.constant 2 : index
    %c0_98 = arith.constant 0 : index
    %c0_99 = arith.constant 0 : index
    %129 = vector.load %arg7[%c0_96, %c2_97, %c0_98, %c0_99] : memref<2x4x32x8xf32, #tpu.memory_space<vmem>>, vector<1x1x32x8xf32>
    %130 = vector.shape_cast %129 : vector<1x1x32x8xf32> to vector<32x8xf32>
    %cst_100 = arith.constant dense<0.000000e+00> : vector<16x8xf32>
    %131 = tpu.matmul %29, %130, %cst_100 {dimension_numbers = #tpu.dot_dimension_numbers<[1], [0], [0], [1], [0, 0, 1, 1], [], []>} : vector<16x32xf32>, vector<32x8xf32>, vector<16x8xf32> -> vector<16x8xf32>
    %c0_101 = arith.constant 0 : index
    %c2_102 = arith.constant 2 : index
    %c0_103 = arith.constant 0 : index
    %c0_104 = arith.constant 0 : index
    %132 = vector.load %arg8[%c0_101, %c2_102, %c0_103, %c0_104] : memref<2x4x1x8xf32, #tpu.memory_space<vmem>>, vector<1x1x1x8xf32>
    %133 = vector.shape_cast %132 : vector<1x1x1x8xf32> to vector<1x8xf32>
    %134 = vector.broadcast %133 : vector<1x8xf32> to vector<16x8xf32>
    %135 = arith.addf %131, %134 : vector<16x8xf32>
    %136 = vector.shape_cast %135 : vector<16x8xf32> to vector<2x8x8xf32>
    %c0_105 = arith.constant 0 : index
    %c2_106 = arith.constant 2 : index
    %c0_107 = arith.constant 0 : index
    %c0_108 = arith.constant 0 : index
    %137 = vector.load %arg9[%c0_105, %c2_106, %c0_107, %c0_108] : memref<2x4x32x8xf32, #tpu.memory_space<vmem>>, vector<1x1x32x8xf32>
    %138 = vector.shape_cast %137 : vector<1x1x32x8xf32> to vector<32x8xf32>
    %cst_109 = arith.constant dense<0.000000e+00> : vector<16x8xf32>
    %139 = tpu.matmul %29, %138, %cst_109 {dimension_numbers = #tpu.dot_dimension_numbers<[1], [0], [0], [1], [0, 0, 1, 1], [], []>} : vector<16x32xf32>, vector<32x8xf32>, vector<16x8xf32> -> vector<16x8xf32>
    %c0_110 = arith.constant 0 : index
    %c2_111 = arith.constant 2 : index
    %c0_112 = arith.constant 0 : index
    %c0_113 = arith.constant 0 : index
    %140 = vector.load %arg10[%c0_110, %c2_111, %c0_112, %c0_113] : memref<2x4x1x8xf32, #tpu.memory_space<vmem>>, vector<1x1x1x8xf32>
    %141 = vector.shape_cast %140 : vector<1x1x1x8xf32> to vector<1x8xf32>
    %142 = vector.broadcast %141 : vector<1x8xf32> to vector<16x8xf32>
    %143 = arith.addf %139, %142 : vector<16x8xf32>
    %144 = vector.shape_cast %143 : vector<16x8xf32> to vector<2x8x8xf32>
    "tpu.trace_start"() <{level = 10 : i32, message = "bqd,bkd->bqk"}> : () -> ()
    %cst_114 = arith.constant dense<0.000000e+00> : vector<2x8x8xf32>
    %145 = tpu.matmul %128, %136, %cst_114 {dimension_numbers = #tpu.dot_dimension_numbers<[2], [2], [1], [1], [0, 0, 0, 1, 1, 1], [0], [0]>} : vector<2x8x8xf32>, vector<2x8x8xf32>, vector<2x8x8xf32> -> vector<2x8x8xf32>
    "tpu.trace_stop"() : () -> ()
    %cst_115 = arith.constant 0.353553385 : f32
    %146 = vector.broadcast %cst_115 : f32 to vector<2x8x8xf32>
    %147 = arith.mulf %145, %146 : vector<2x8x8xf32>
    %148 = vector.broadcast %5 : vector<2x1x8xf32> to vector<2x8x8xf32>
    %149 = arith.addf %147, %148 : vector<2x8x8xf32>
    %cst_116 = arith.constant dense<0xFF800000> : vector<2x8xf32>
    %150 = vector.multi_reduction <maximumf>, %149, %cst_116 [2] : vector<2x8x8xf32> to vector<2x8xf32>
    %151 = vector.shape_cast %150 : vector<2x8xf32> to vector<2x8x1xf32>
    %152 = vector.broadcast %151 : vector<2x8x1xf32> to vector<2x8x8xf32>
    %153 = arith.subf %149, %152 : vector<2x8x8xf32>
    %154 = math.exp %153 : vector<2x8x8xf32>
    %cst_117 = arith.constant dense<0.000000e+00> : vector<2x8xf32>
    %155 = vector.multi_reduction <add>, %154, %cst_117 [2] : vector<2x8x8xf32> to vector<2x8xf32>
    %156 = vector.shape_cast %155 : vector<2x8xf32> to vector<2x8x1xf32>
    %157 = tpu.reciprocal %156 {approx = true} : vector<2x8x1xf32> -> vector<2x8x1xf32>
    %158 = vector.broadcast %157 : vector<2x8x1xf32> to vector<2x8x8xf32>
    %159 = arith.mulf %154, %158 : vector<2x8x8xf32>
    "tpu.trace_start"() <{level = 10 : i32, message = "bqk,bkd->bqd"}> : () -> ()
    %cst_118 = arith.constant dense<0.000000e+00> : vector<2x8x8xf32>
    %160 = tpu.matmul %159, %144, %cst_118 {dimension_numbers = #tpu.dot_dimension_numbers<[2], [1], [1], [2], [0, 0, 0, 1, 1, 2], [0], [0]>} : vector<2x8x8xf32>, vector<2x8x8xf32>, vector<2x8x8xf32> -> vector<2x8x8xf32>
    "tpu.trace_stop"() : () -> ()
    %161 = vector.shape_cast %160 : vector<2x8x8xf32> to vector<16x8xf32>
    %c0_119 = arith.constant 0 : index
    %c2_120 = arith.constant 2 : index
    %c0_121 = arith.constant 0 : index
    %c0_122 = arith.constant 0 : index
    %162 = vector.load %arg11[%c0_119, %c2_120, %c0_121, %c0_122] : memref<2x4x8x32xf32, #tpu.memory_space<vmem>>, vector<1x1x8x32xf32>
    %163 = vector.shape_cast %162 : vector<1x1x8x32xf32> to vector<8x32xf32>
    %cst_123 = arith.constant dense<0.000000e+00> : vector<16x32xf32>
    %164 = tpu.matmul %161, %163, %cst_123 {dimension_numbers = #tpu.dot_dimension_numbers<[1], [0], [0], [1], [0, 0, 1, 1], [], []>} : vector<16x8xf32>, vector<8x32xf32>, vector<16x32xf32> -> vector<16x32xf32>
    %165 = arith.addf %120, %164 : vector<16x32xf32>
    %c0_124 = arith.constant 0 : index
    %c3 = arith.constant 3 : index
    %c0_125 = arith.constant 0 : index
    %c0_126 = arith.constant 0 : index
    %166 = vector.load %arg5[%c0_124, %c3, %c0_125, %c0_126] : memref<2x4x32x8xf32, #tpu.memory_space<vmem>>, vector<1x1x32x8xf32>
    %167 = vector.shape_cast %166 : vector<1x1x32x8xf32> to vector<32x8xf32>
    %cst_127 = arith.constant dense<0.000000e+00> : vector<16x8xf32>
    %168 = tpu.matmul %29, %167, %cst_127 {dimension_numbers = #tpu.dot_dimension_numbers<[1], [0], [0], [1], [0, 0, 1, 1], [], []>} : vector<16x32xf32>, vector<32x8xf32>, vector<16x8xf32> -> vector<16x8xf32>
    %c0_128 = arith.constant 0 : index
    %c3_129 = arith.constant 3 : index
    %c0_130 = arith.constant 0 : index
    %c0_131 = arith.constant 0 : index
    %169 = vector.load %arg6[%c0_128, %c3_129, %c0_130, %c0_131] : memref<2x4x1x8xf32, #tpu.memory_space<vmem>>, vector<1x1x1x8xf32>
    %170 = vector.shape_cast %169 : vector<1x1x1x8xf32> to vector<1x8xf32>
    %171 = vector.broadcast %170 : vector<1x8xf32> to vector<16x8xf32>
    %172 = arith.addf %168, %171 : vector<16x8xf32>
    %173 = vector.shape_cast %172 : vector<16x8xf32> to vector<2x8x8xf32>
    %c0_132 = arith.constant 0 : index
    %c3_133 = arith.constant 3 : index
    %c0_134 = arith.constant 0 : index
    %c0_135 = arith.constant 0 : index
    %174 = vector.load %arg7[%c0_132, %c3_133, %c0_134, %c0_135] : memref<2x4x32x8xf32, #tpu.memory_space<vmem>>, vector<1x1x32x8xf32>
    %175 = vector.shape_cast %174 : vector<1x1x32x8xf32> to vector<32x8xf32>
    %cst_136 = arith.constant dense<0.000000e+00> : vector<16x8xf32>
    %176 = tpu.matmul %29, %175, %cst_136 {dimension_numbers = #tpu.dot_dimension_numbers<[1], [0], [0], [1], [0, 0, 1, 1], [], []>} : vector<16x32xf32>, vector<32x8xf32>, vector<16x8xf32> -> vector<16x8xf32>
    %c0_137 = arith.constant 0 : index
    %c3_138 = arith.constant 3 : index
    %c0_139 = arith.constant 0 : index
    %c0_140 = arith.constant 0 : index
    %177 = vector.load %arg8[%c0_137, %c3_138, %c0_139, %c0_140] : memref<2x4x1x8xf32, #tpu.memory_space<vmem>>, vector<1x1x1x8xf32>
    %178 = vector.shape_cast %177 : vector<1x1x1x8xf32> to vector<1x8xf32>
    %179 = vector.broadcast %178 : vector<1x8xf32> to vector<16x8xf32>
    %180 = arith.addf %176, %179 : vector<16x8xf32>
    %181 = vector.shape_cast %180 : vector<16x8xf32> to vector<2x8x8xf32>
    %c0_141 = arith.constant 0 : index
    %c3_142 = arith.constant 3 : index
    %c0_143 = arith.constant 0 : index
    %c0_144 = arith.constant 0 : index
    %182 = vector.load %arg9[%c0_141, %c3_142, %c0_143, %c0_144] : memref<2x4x32x8xf32, #tpu.memory_space<vmem>>, vector<1x1x32x8xf32>
    %183 = vector.shape_cast %182 : vector<1x1x32x8xf32> to vector<32x8xf32>
    %cst_145 = arith.constant dense<0.000000e+00> : vector<16x8xf32>
    %184 = tpu.matmul %29, %183, %cst_145 {dimension_numbers = #tpu.dot_dimension_numbers<[1], [0], [0], [1], [0, 0, 1, 1], [], []>} : vector<16x32xf32>, vector<32x8xf32>, vector<16x8xf32> -> vector<16x8xf32>
    %c0_146 = arith.constant 0 : index
    %c3_147 = arith.constant 3 : index
    %c0_148 = arith.constant 0 : index
    %c0_149 = arith.constant 0 : index
    %185 = vector.load %arg10[%c0_146, %c3_147, %c0_148, %c0_149] : memref<2x4x1x8xf32, #tpu.memory_space<vmem>>, vector<1x1x1x8xf32>
    %186 = vector.shape_cast %185 : vector<1x1x1x8xf32> to vector<1x8xf32>
    %187 = vector.broadcast %186 : vector<1x8xf32> to vector<16x8xf32>
    %188 = arith.addf %184, %187 : vector<16x8xf32>
    %189 = vector.shape_cast %188 : vector<16x8xf32> to vector<2x8x8xf32>
    "tpu.trace_start"() <{level = 10 : i32, message = "bqd,bkd->bqk"}> : () -> ()
    %cst_150 = arith.constant dense<0.000000e+00> : vector<2x8x8xf32>
    %190 = tpu.matmul %173, %181, %cst_150 {dimension_numbers = #tpu.dot_dimension_numbers<[2], [2], [1], [1], [0, 0, 0, 1, 1, 1], [0], [0]>} : vector<2x8x8xf32>, vector<2x8x8xf32>, vector<2x8x8xf32> -> vector<2x8x8xf32>
    "tpu.trace_stop"() : () -> ()
    %cst_151 = arith.constant 0.353553385 : f32
    %191 = vector.broadcast %cst_151 : f32 to vector<2x8x8xf32>
    %192 = arith.mulf %190, %191 : vector<2x8x8xf32>
    %193 = vector.broadcast %5 : vector<2x1x8xf32> to vector<2x8x8xf32>
    %194 = arith.addf %192, %193 : vector<2x8x8xf32>
    %cst_152 = arith.constant dense<0xFF800000> : vector<2x8xf32>
    %195 = vector.multi_reduction <maximumf>, %194, %cst_152 [2] : vector<2x8x8xf32> to vector<2x8xf32>
    %196 = vector.shape_cast %195 : vector<2x8xf32> to vector<2x8x1xf32>
    %197 = vector.broadcast %196 : vector<2x8x1xf32> to vector<2x8x8xf32>
    %198 = arith.subf %194, %197 : vector<2x8x8xf32>
    %199 = math.exp %198 : vector<2x8x8xf32>
    %cst_153 = arith.constant dense<0.000000e+00> : vector<2x8xf32>
    %200 = vector.multi_reduction <add>, %199, %cst_153 [2] : vector<2x8x8xf32> to vector<2x8xf32>
    %201 = vector.shape_cast %200 : vector<2x8xf32> to vector<2x8x1xf32>
    %202 = tpu.reciprocal %201 {approx = true} : vector<2x8x1xf32> -> vector<2x8x1xf32>
    %203 = vector.broadcast %202 : vector<2x8x1xf32> to vector<2x8x8xf32>
    %204 = arith.mulf %199, %203 : vector<2x8x8xf32>
    "tpu.trace_start"() <{level = 10 : i32, message = "bqk,bkd->bqd"}> : () -> ()
    %cst_154 = arith.constant dense<0.000000e+00> : vector<2x8x8xf32>
    %205 = tpu.matmul %204, %189, %cst_154 {dimension_numbers = #tpu.dot_dimension_numbers<[2], [1], [1], [2], [0, 0, 0, 1, 1, 2], [0], [0]>} : vector<2x8x8xf32>, vector<2x8x8xf32>, vector<2x8x8xf32> -> vector<2x8x8xf32>
    "tpu.trace_stop"() : () -> ()
    %206 = vector.shape_cast %205 : vector<2x8x8xf32> to vector<16x8xf32>
    %c0_155 = arith.constant 0 : index
    %c3_156 = arith.constant 3 : index
    %c0_157 = arith.constant 0 : index
    %c0_158 = arith.constant 0 : index
    %207 = vector.load %arg11[%c0_155, %c3_156, %c0_157, %c0_158] : memref<2x4x8x32xf32, #tpu.memory_space<vmem>>, vector<1x1x8x32xf32>
    %208 = vector.shape_cast %207 : vector<1x1x8x32xf32> to vector<8x32xf32>
    %cst_159 = arith.constant dense<0.000000e+00> : vector<16x32xf32>
    %209 = tpu.matmul %206, %208, %cst_159 {dimension_numbers = #tpu.dot_dimension_numbers<[1], [0], [0], [1], [0, 0, 1, 1], [], []>} : vector<16x8xf32>, vector<8x32xf32>, vector<16x32xf32> -> vector<16x32xf32>
    %210 = arith.addf %165, %209 : vector<16x32xf32>
    %c0_160 = arith.constant 0 : index
    %c0_161 = arith.constant 0 : index
    %c0_162 = arith.constant 0 : index
    %211 = vector.load %arg12[%c0_160, %c0_161, %c0_162] : memref<2x1x32xf32, #tpu.memory_space<vmem>>, vector<1x1x32xf32>
    %212 = vector.shape_cast %211 : vector<1x1x32xf32> to vector<1x32xf32>
    %213 = vector.broadcast %212 : vector<1x32xf32> to vector<16x32xf32>
    %214 = arith.addf %210, %213 : vector<16x32xf32>
    %215 = arith.addf %214, %29 : vector<16x32xf32>
    %c0_163 = arith.constant 0 : index
    %c0_164 = arith.constant 0 : index
    %c0_165 = arith.constant 0 : index
    %216 = vector.load %arg13[%c0_163, %c0_164, %c0_165] : memref<2x1x32xf32, #tpu.memory_space<vmem>>, vector<1x1x32xf32>
    %217 = vector.shape_cast %216 : vector<1x1x32xf32> to vector<1x32xf32>
    %c0_166 = arith.constant 0 : index
    %c0_167 = arith.constant 0 : index
    %c0_168 = arith.constant 0 : index
    %218 = vector.load %arg14[%c0_166, %c0_167, %c0_168] : memref<2x1x32xf32, #tpu.memory_space<vmem>>, vector<1x1x32xf32>
    %219 = vector.shape_cast %218 : vector<1x1x32xf32> to vector<1x32xf32>
    %cst_169 = arith.constant dense<0.000000e+00> : vector<16xf32>
    %220 = vector.multi_reduction <add>, %215, %cst_169 [1] : vector<16x32xf32> to vector<16xf32>
    %221 = vector.shape_cast %220 : vector<16xf32> to vector<16x1xf32>
    %cst_170 = arith.constant 3.125000e-02 : f32
    %222 = vector.broadcast %cst_170 : f32 to vector<16x1xf32>
    %223 = arith.mulf %221, %222 : vector<16x1xf32>
    %224 = vector.broadcast %223 : vector<16x1xf32> to vector<16x32xf32>
    %225 = arith.subf %215, %224 : vector<16x32xf32>
    %226 = arith.mulf %225, %225 : vector<16x32xf32>
    %cst_171 = arith.constant dense<0.000000e+00> : vector<16xf32>
    %227 = vector.multi_reduction <add>, %226, %cst_171 [1] : vector<16x32xf32> to vector<16xf32>
    %228 = vector.shape_cast %227 : vector<16xf32> to vector<16x1xf32>
    %cst_172 = arith.constant 3.125000e-02 : f32
    %229 = vector.broadcast %cst_172 : f32 to vector<16x1xf32>
    %230 = arith.mulf %228, %229 : vector<16x1xf32>
    %cst_173 = arith.constant 9.99999996E-13 : f32
    %231 = vector.broadcast %cst_173 : f32 to vector<16x1xf32>
    %232 = arith.addf %230, %231 : vector<16x1xf32>
    %233 = math.rsqrt %232 : vector<16x1xf32>
    %234 = vector.broadcast %233 : vector<16x1xf32> to vector<16x32xf32>
    %235 = arith.mulf %225, %234 : vector<16x32xf32>
    %236 = vector.broadcast %217 : vector<1x32xf32> to vector<16x32xf32>
    %237 = arith.mulf %235, %236 : vector<16x32xf32>
    %238 = vector.broadcast %219 : vector<1x32xf32> to vector<16x32xf32>
    %239 = arith.addf %237, %238 : vector<16x32xf32>
    %c0_174 = arith.constant 0 : index
    %c0_175 = arith.constant 0 : index
    %c0_176 = arith.constant 0 : index
    %240 = vector.load %arg15[%c0_174, %c0_175, %c0_176] : memref<2x32x64xf32, #tpu.memory_space<vmem>>, vector<1x32x64xf32>
    %241 = vector.shape_cast %240 : vector<1x32x64xf32> to vector<32x64xf32>
    %cst_177 = arith.constant dense<0.000000e+00> : vector<16x64xf32>
    %242 = tpu.matmul %239, %241, %cst_177 {dimension_numbers = #tpu.dot_dimension_numbers<[1], [0], [0], [1], [0, 0, 1, 1], [], []>} : vector<16x32xf32>, vector<32x64xf32>, vector<16x64xf32> -> vector<16x64xf32>
    %c0_178 = arith.constant 0 : index
    %c0_179 = arith.constant 0 : index
    %c0_180 = arith.constant 0 : index
    %243 = vector.load %arg16[%c0_178, %c0_179, %c0_180] : memref<2x1x64xf32, #tpu.memory_space<vmem>>, vector<1x1x64xf32>
    %244 = vector.shape_cast %243 : vector<1x1x64xf32> to vector<1x64xf32>
    %245 = vector.broadcast %244 : vector<1x64xf32> to vector<16x64xf32>
    %246 = arith.addf %242, %245 : vector<16x64xf32>
    %cst_181 = arith.constant 5.000000e-01 : f32
    %247 = vector.broadcast %cst_181 : f32 to vector<16x64xf32>
    %248 = arith.mulf %247, %246 : vector<16x64xf32>
    %cst_182 = arith.constant 4.471500e-02 : f32
    %249 = vector.broadcast %cst_182 : f32 to vector<16x64xf32>
    %250 = arith.mulf %249, %246 : vector<16x64xf32>
    %251 = arith.mulf %250, %246 : vector<16x64xf32>
    %252 = arith.mulf %251, %246 : vector<16x64xf32>
    %253 = arith.addf %246, %252 : vector<16x64xf32>
    %cst_183 = arith.constant 0.797884583 : f32
    %254 = vector.broadcast %cst_183 : f32 to vector<16x64xf32>
    %255 = arith.mulf %254, %253 : vector<16x64xf32>
    %256 = math.tanh %255 : vector<16x64xf32>
    %cst_184 = arith.constant 1.000000e+00 : f32
    %257 = vector.broadcast %cst_184 : f32 to vector<16x64xf32>
    %258 = arith.addf %257, %256 : vector<16x64xf32>
    %259 = arith.mulf %248, %258 : vector<16x64xf32>
    %c0_185 = arith.constant 0 : index
    %c0_186 = arith.constant 0 : index
    %c0_187 = arith.constant 0 : index
    %260 = vector.load %arg17[%c0_185, %c0_186, %c0_187] : memref<2x64x32xf32, #tpu.memory_space<vmem>>, vector<1x64x32xf32>
    %261 = vector.shape_cast %260 : vector<1x64x32xf32> to vector<64x32xf32>
    %cst_188 = arith.constant dense<0.000000e+00> : vector<16x32xf32>
    %262 = tpu.matmul %259, %261, %cst_188 {dimension_numbers = #tpu.dot_dimension_numbers<[1], [0], [0], [1], [0, 0, 1, 1], [], []>} : vector<16x64xf32>, vector<64x32xf32>, vector<16x32xf32> -> vector<16x32xf32>
    %c0_189 = arith.constant 0 : index
    %c0_190 = arith.constant 0 : index
    %c0_191 = arith.constant 0 : index
    %263 = vector.load %arg18[%c0_189, %c0_190, %c0_191] : memref<2x1x32xf32, #tpu.memory_space<vmem>>, vector<1x1x32xf32>
    %264 = vector.shape_cast %263 : vector<1x1x32xf32> to vector<1x32xf32>
    %265 = vector.broadcast %264 : vector<1x32xf32> to vector<16x32xf32>
    %266 = arith.addf %262, %265 : vector<16x32xf32>
    %267 = arith.addf %266, %239 : vector<16x32xf32>
    %c0_192 = arith.constant 0 : index
    %c0_193 = arith.constant 0 : index
    %c0_194 = arith.constant 0 : index
    %268 = vector.load %arg19[%c0_192, %c0_193, %c0_194] : memref<2x1x32xf32, #tpu.memory_space<vmem>>, vector<1x1x32xf32>
    %269 = vector.shape_cast %268 : vector<1x1x32xf32> to vector<1x32xf32>
    %c0_195 = arith.constant 0 : index
    %c0_196 = arith.constant 0 : index
    %c0_197 = arith.constant 0 : index
    %270 = vector.load %arg20[%c0_195, %c0_196, %c0_197] : memref<2x1x32xf32, #tpu.memory_space<vmem>>, vector<1x1x32xf32>
    %271 = vector.shape_cast %270 : vector<1x1x32xf32> to vector<1x32xf32>
    %cst_198 = arith.constant dense<0.000000e+00> : vector<16xf32>
    %272 = vector.multi_reduction <add>, %267, %cst_198 [1] : vector<16x32xf32> to vector<16xf32>
    %273 = vector.shape_cast %272 : vector<16xf32> to vector<16x1xf32>
    %cst_199 = arith.constant 3.125000e-02 : f32
    %274 = vector.broadcast %cst_199 : f32 to vector<16x1xf32>
    %275 = arith.mulf %273, %274 : vector<16x1xf32>
    %276 = vector.broadcast %275 : vector<16x1xf32> to vector<16x32xf32>
    %277 = arith.subf %267, %276 : vector<16x32xf32>
    %278 = arith.mulf %277, %277 : vector<16x32xf32>
    %cst_200 = arith.constant dense<0.000000e+00> : vector<16xf32>
    %279 = vector.multi_reduction <add>, %278, %cst_200 [1] : vector<16x32xf32> to vector<16xf32>
    %280 = vector.shape_cast %279 : vector<16xf32> to vector<16x1xf32>
    %cst_201 = arith.constant 3.125000e-02 : f32
    %281 = vector.broadcast %cst_201 : f32 to vector<16x1xf32>
    %282 = arith.mulf %280, %281 : vector<16x1xf32>
    %cst_202 = arith.constant 9.99999996E-13 : f32
    %283 = vector.broadcast %cst_202 : f32 to vector<16x1xf32>
    %284 = arith.addf %282, %283 : vector<16x1xf32>
    %285 = math.rsqrt %284 : vector<16x1xf32>
    %286 = vector.broadcast %285 : vector<16x1xf32> to vector<16x32xf32>
    %287 = arith.mulf %277, %286 : vector<16x32xf32>
    %288 = vector.broadcast %269 : vector<1x32xf32> to vector<16x32xf32>
    %289 = arith.mulf %287, %288 : vector<16x32xf32>
    %290 = vector.broadcast %271 : vector<1x32xf32> to vector<16x32xf32>
    %291 = arith.addf %289, %290 : vector<16x32xf32>
    %cst_203 = arith.constant 0.000000e+00 : f32
    %292 = vector.broadcast %cst_203 : f32 to vector<16x32xf32>
    %c1_204 = arith.constant 1 : index
    %c0_205 = arith.constant 0 : index
    %c0_206 = arith.constant 0 : index
    %c0_207 = arith.constant 0 : index
    %293 = vector.load %arg5[%c1_204, %c0_205, %c0_206, %c0_207] : memref<2x4x32x8xf32, #tpu.memory_space<vmem>>, vector<1x1x32x8xf32>
    %294 = vector.shape_cast %293 : vector<1x1x32x8xf32> to vector<32x8xf32>
    %cst_208 = arith.constant dense<0.000000e+00> : vector<16x8xf32>
    %295 = tpu.matmul %291, %294, %cst_208 {dimension_numbers = #tpu.dot_dimension_numbers<[1], [0], [0], [1], [0, 0, 1, 1], [], []>} : vector<16x32xf32>, vector<32x8xf32>, vector<16x8xf32> -> vector<16x8xf32>
    %c1_209 = arith.constant 1 : index
    %c0_210 = arith.constant 0 : index
    %c0_211 = arith.constant 0 : index
    %c0_212 = arith.constant 0 : index
    %296 = vector.load %arg6[%c1_209, %c0_210, %c0_211, %c0_212] : memref<2x4x1x8xf32, #tpu.memory_space<vmem>>, vector<1x1x1x8xf32>
    %297 = vector.shape_cast %296 : vector<1x1x1x8xf32> to vector<1x8xf32>
    %298 = vector.broadcast %297 : vector<1x8xf32> to vector<16x8xf32>
    %299 = arith.addf %295, %298 : vector<16x8xf32>
    %300 = vector.shape_cast %299 : vector<16x8xf32> to vector<2x8x8xf32>
    %c1_213 = arith.constant 1 : index
    %c0_214 = arith.constant 0 : index
    %c0_215 = arith.constant 0 : index
    %c0_216 = arith.constant 0 : index
    %301 = vector.load %arg7[%c1_213, %c0_214, %c0_215, %c0_216] : memref<2x4x32x8xf32, #tpu.memory_space<vmem>>, vector<1x1x32x8xf32>
    %302 = vector.shape_cast %301 : vector<1x1x32x8xf32> to vector<32x8xf32>
    %cst_217 = arith.constant dense<0.000000e+00> : vector<16x8xf32>
    %303 = tpu.matmul %291, %302, %cst_217 {dimension_numbers = #tpu.dot_dimension_numbers<[1], [0], [0], [1], [0, 0, 1, 1], [], []>} : vector<16x32xf32>, vector<32x8xf32>, vector<16x8xf32> -> vector<16x8xf32>
    %c1_218 = arith.constant 1 : index
    %c0_219 = arith.constant 0 : index
    %c0_220 = arith.constant 0 : index
    %c0_221 = arith.constant 0 : index
    %304 = vector.load %arg8[%c1_218, %c0_219, %c0_220, %c0_221] : memref<2x4x1x8xf32, #tpu.memory_space<vmem>>, vector<1x1x1x8xf32>
    %305 = vector.shape_cast %304 : vector<1x1x1x8xf32> to vector<1x8xf32>
    %306 = vector.broadcast %305 : vector<1x8xf32> to vector<16x8xf32>
    %307 = arith.addf %303, %306 : vector<16x8xf32>
    %308 = vector.shape_cast %307 : vector<16x8xf32> to vector<2x8x8xf32>
    %c1_222 = arith.constant 1 : index
    %c0_223 = arith.constant 0 : index
    %c0_224 = arith.constant 0 : index
    %c0_225 = arith.constant 0 : index
    %309 = vector.load %arg9[%c1_222, %c0_223, %c0_224, %c0_225] : memref<2x4x32x8xf32, #tpu.memory_space<vmem>>, vector<1x1x32x8xf32>
    %310 = vector.shape_cast %309 : vector<1x1x32x8xf32> to vector<32x8xf32>
    %cst_226 = arith.constant dense<0.000000e+00> : vector<16x8xf32>
    %311 = tpu.matmul %291, %310, %cst_226 {dimension_numbers = #tpu.dot_dimension_numbers<[1], [0], [0], [1], [0, 0, 1, 1], [], []>} : vector<16x32xf32>, vector<32x8xf32>, vector<16x8xf32> -> vector<16x8xf32>
    %c1_227 = arith.constant 1 : index
    %c0_228 = arith.constant 0 : index
    %c0_229 = arith.constant 0 : index
    %c0_230 = arith.constant 0 : index
    %312 = vector.load %arg10[%c1_227, %c0_228, %c0_229, %c0_230] : memref<2x4x1x8xf32, #tpu.memory_space<vmem>>, vector<1x1x1x8xf32>
    %313 = vector.shape_cast %312 : vector<1x1x1x8xf32> to vector<1x8xf32>
    %314 = vector.broadcast %313 : vector<1x8xf32> to vector<16x8xf32>
    %315 = arith.addf %311, %314 : vector<16x8xf32>
    %316 = vector.shape_cast %315 : vector<16x8xf32> to vector<2x8x8xf32>
    "tpu.trace_start"() <{level = 10 : i32, message = "bqd,bkd->bqk"}> : () -> ()
    %cst_231 = arith.constant dense<0.000000e+00> : vector<2x8x8xf32>
    %317 = tpu.matmul %300, %308, %cst_231 {dimension_numbers = #tpu.dot_dimension_numbers<[2], [2], [1], [1], [0, 0, 0, 1, 1, 1], [0], [0]>} : vector<2x8x8xf32>, vector<2x8x8xf32>, vector<2x8x8xf32> -> vector<2x8x8xf32>
    "tpu.trace_stop"() : () -> ()
    %cst_232 = arith.constant 0.353553385 : f32
    %318 = vector.broadcast %cst_232 : f32 to vector<2x8x8xf32>
    %319 = arith.mulf %317, %318 : vector<2x8x8xf32>
    %320 = vector.broadcast %5 : vector<2x1x8xf32> to vector<2x8x8xf32>
    %321 = arith.addf %319, %320 : vector<2x8x8xf32>
    %cst_233 = arith.constant dense<0xFF800000> : vector<2x8xf32>
    %322 = vector.multi_reduction <maximumf>, %321, %cst_233 [2] : vector<2x8x8xf32> to vector<2x8xf32>
    %323 = vector.shape_cast %322 : vector<2x8xf32> to vector<2x8x1xf32>
    %324 = vector.broadcast %323 : vector<2x8x1xf32> to vector<2x8x8xf32>
    %325 = arith.subf %321, %324 : vector<2x8x8xf32>
    %326 = math.exp %325 : vector<2x8x8xf32>
    %cst_234 = arith.constant dense<0.000000e+00> : vector<2x8xf32>
    %327 = vector.multi_reduction <add>, %326, %cst_234 [2] : vector<2x8x8xf32> to vector<2x8xf32>
    %328 = vector.shape_cast %327 : vector<2x8xf32> to vector<2x8x1xf32>
    %329 = tpu.reciprocal %328 {approx = true} : vector<2x8x1xf32> -> vector<2x8x1xf32>
    %330 = vector.broadcast %329 : vector<2x8x1xf32> to vector<2x8x8xf32>
    %331 = arith.mulf %326, %330 : vector<2x8x8xf32>
    "tpu.trace_start"() <{level = 10 : i32, message = "bqk,bkd->bqd"}> : () -> ()
    %cst_235 = arith.constant dense<0.000000e+00> : vector<2x8x8xf32>
    %332 = tpu.matmul %331, %316, %cst_235 {dimension_numbers = #tpu.dot_dimension_numbers<[2], [1], [1], [2], [0, 0, 0, 1, 1, 2], [0], [0]>} : vector<2x8x8xf32>, vector<2x8x8xf32>, vector<2x8x8xf32> -> vector<2x8x8xf32>
    "tpu.trace_stop"() : () -> ()
    %333 = vector.shape_cast %332 : vector<2x8x8xf32> to vector<16x8xf32>
    %c1_236 = arith.constant 1 : index
    %c0_237 = arith.constant 0 : index
    %c0_238 = arith.constant 0 : index
    %c0_239 = arith.constant 0 : index
    %334 = vector.load %arg11[%c1_236, %c0_237, %c0_238, %c0_239] : memref<2x4x8x32xf32, #tpu.memory_space<vmem>>, vector<1x1x8x32xf32>
    %335 = vector.shape_cast %334 : vector<1x1x8x32xf32> to vector<8x32xf32>
    %cst_240 = arith.constant dense<0.000000e+00> : vector<16x32xf32>
    %336 = tpu.matmul %333, %335, %cst_240 {dimension_numbers = #tpu.dot_dimension_numbers<[1], [0], [0], [1], [0, 0, 1, 1], [], []>} : vector<16x8xf32>, vector<8x32xf32>, vector<16x32xf32> -> vector<16x32xf32>
    %337 = arith.addf %292, %336 : vector<16x32xf32>
    %c1_241 = arith.constant 1 : index
    %c1_242 = arith.constant 1 : index
    %c0_243 = arith.constant 0 : index
    %c0_244 = arith.constant 0 : index
    %338 = vector.load %arg5[%c1_241, %c1_242, %c0_243, %c0_244] : memref<2x4x32x8xf32, #tpu.memory_space<vmem>>, vector<1x1x32x8xf32>
    %339 = vector.shape_cast %338 : vector<1x1x32x8xf32> to vector<32x8xf32>
    %cst_245 = arith.constant dense<0.000000e+00> : vector<16x8xf32>
    %340 = tpu.matmul %291, %339, %cst_245 {dimension_numbers = #tpu.dot_dimension_numbers<[1], [0], [0], [1], [0, 0, 1, 1], [], []>} : vector<16x32xf32>, vector<32x8xf32>, vector<16x8xf32> -> vector<16x8xf32>
    %c1_246 = arith.constant 1 : index
    %c1_247 = arith.constant 1 : index
    %c0_248 = arith.constant 0 : index
    %c0_249 = arith.constant 0 : index
    %341 = vector.load %arg6[%c1_246, %c1_247, %c0_248, %c0_249] : memref<2x4x1x8xf32, #tpu.memory_space<vmem>>, vector<1x1x1x8xf32>
    %342 = vector.shape_cast %341 : vector<1x1x1x8xf32> to vector<1x8xf32>
    %343 = vector.broadcast %342 : vector<1x8xf32> to vector<16x8xf32>
    %344 = arith.addf %340, %343 : vector<16x8xf32>
    %345 = vector.shape_cast %344 : vector<16x8xf32> to vector<2x8x8xf32>
    %c1_250 = arith.constant 1 : index
    %c1_251 = arith.constant 1 : index
    %c0_252 = arith.constant 0 : index
    %c0_253 = arith.constant 0 : index
    %346 = vector.load %arg7[%c1_250, %c1_251, %c0_252, %c0_253] : memref<2x4x32x8xf32, #tpu.memory_space<vmem>>, vector<1x1x32x8xf32>
    %347 = vector.shape_cast %346 : vector<1x1x32x8xf32> to vector<32x8xf32>
    %cst_254 = arith.constant dense<0.000000e+00> : vector<16x8xf32>
    %348 = tpu.matmul %291, %347, %cst_254 {dimension_numbers = #tpu.dot_dimension_numbers<[1], [0], [0], [1], [0, 0, 1, 1], [], []>} : vector<16x32xf32>, vector<32x8xf32>, vector<16x8xf32> -> vector<16x8xf32>
    %c1_255 = arith.constant 1 : index
    %c1_256 = arith.constant 1 : index
    %c0_257 = arith.constant 0 : index
    %c0_258 = arith.constant 0 : index
    %349 = vector.load %arg8[%c1_255, %c1_256, %c0_257, %c0_258] : memref<2x4x1x8xf32, #tpu.memory_space<vmem>>, vector<1x1x1x8xf32>
    %350 = vector.shape_cast %349 : vector<1x1x1x8xf32> to vector<1x8xf32>
    %351 = vector.broadcast %350 : vector<1x8xf32> to vector<16x8xf32>
    %352 = arith.addf %348, %351 : vector<16x8xf32>
    %353 = vector.shape_cast %352 : vector<16x8xf32> to vector<2x8x8xf32>
    %c1_259 = arith.constant 1 : index
    %c1_260 = arith.constant 1 : index
    %c0_261 = arith.constant 0 : index
    %c0_262 = arith.constant 0 : index
    %354 = vector.load %arg9[%c1_259, %c1_260, %c0_261, %c0_262] : memref<2x4x32x8xf32, #tpu.memory_space<vmem>>, vector<1x1x32x8xf32>
    %355 = vector.shape_cast %354 : vector<1x1x32x8xf32> to vector<32x8xf32>
    %cst_263 = arith.constant dense<0.000000e+00> : vector<16x8xf32>
    %356 = tpu.matmul %291, %355, %cst_263 {dimension_numbers = #tpu.dot_dimension_numbers<[1], [0], [0], [1], [0, 0, 1, 1], [], []>} : vector<16x32xf32>, vector<32x8xf32>, vector<16x8xf32> -> vector<16x8xf32>
    %c1_264 = arith.constant 1 : index
    %c1_265 = arith.constant 1 : index
    %c0_266 = arith.constant 0 : index
    %c0_267 = arith.constant 0 : index
    %357 = vector.load %arg10[%c1_264, %c1_265, %c0_266, %c0_267] : memref<2x4x1x8xf32, #tpu.memory_space<vmem>>, vector<1x1x1x8xf32>
    %358 = vector.shape_cast %357 : vector<1x1x1x8xf32> to vector<1x8xf32>
    %359 = vector.broadcast %358 : vector<1x8xf32> to vector<16x8xf32>
    %360 = arith.addf %356, %359 : vector<16x8xf32>
    %361 = vector.shape_cast %360 : vector<16x8xf32> to vector<2x8x8xf32>
    "tpu.trace_start"() <{level = 10 : i32, message = "bqd,bkd->bqk"}> : () -> ()
    %cst_268 = arith.constant dense<0.000000e+00> : vector<2x8x8xf32>
    %362 = tpu.matmul %345, %353, %cst_268 {dimension_numbers = #tpu.dot_dimension_numbers<[2], [2], [1], [1], [0, 0, 0, 1, 1, 1], [0], [0]>} : vector<2x8x8xf32>, vector<2x8x8xf32>, vector<2x8x8xf32> -> vector<2x8x8xf32>
    "tpu.trace_stop"() : () -> ()
    %cst_269 = arith.constant 0.353553385 : f32
    %363 = vector.broadcast %cst_269 : f32 to vector<2x8x8xf32>
    %364 = arith.mulf %362, %363 : vector<2x8x8xf32>
    %365 = vector.broadcast %5 : vector<2x1x8xf32> to vector<2x8x8xf32>
    %366 = arith.addf %364, %365 : vector<2x8x8xf32>
    %cst_270 = arith.constant dense<0xFF800000> : vector<2x8xf32>
    %367 = vector.multi_reduction <maximumf>, %366, %cst_270 [2] : vector<2x8x8xf32> to vector<2x8xf32>
    %368 = vector.shape_cast %367 : vector<2x8xf32> to vector<2x8x1xf32>
    %369 = vector.broadcast %368 : vector<2x8x1xf32> to vector<2x8x8xf32>
    %370 = arith.subf %366, %369 : vector<2x8x8xf32>
    %371 = math.exp %370 : vector<2x8x8xf32>
    %cst_271 = arith.constant dense<0.000000e+00> : vector<2x8xf32>
    %372 = vector.multi_reduction <add>, %371, %cst_271 [2] : vector<2x8x8xf32> to vector<2x8xf32>
    %373 = vector.shape_cast %372 : vector<2x8xf32> to vector<2x8x1xf32>
    %374 = tpu.reciprocal %373 {approx = true} : vector<2x8x1xf32> -> vector<2x8x1xf32>
    %375 = vector.broadcast %374 : vector<2x8x1xf32> to vector<2x8x8xf32>
    %376 = arith.mulf %371, %375 : vector<2x8x8xf32>
    "tpu.trace_start"() <{level = 10 : i32, message = "bqk,bkd->bqd"}> : () -> ()
    %cst_272 = arith.constant dense<0.000000e+00> : vector<2x8x8xf32>
    %377 = tpu.matmul %376, %361, %cst_272 {dimension_numbers = #tpu.dot_dimension_numbers<[2], [1], [1], [2], [0, 0, 0, 1, 1, 2], [0], [0]>} : vector<2x8x8xf32>, vector<2x8x8xf32>, vector<2x8x8xf32> -> vector<2x8x8xf32>
    "tpu.trace_stop"() : () -> ()
    %378 = vector.shape_cast %377 : vector<2x8x8xf32> to vector<16x8xf32>
    %c1_273 = arith.constant 1 : index
    %c1_274 = arith.constant 1 : index
    %c0_275 = arith.constant 0 : index
    %c0_276 = arith.constant 0 : index
    %379 = vector.load %arg11[%c1_273, %c1_274, %c0_275, %c0_276] : memref<2x4x8x32xf32, #tpu.memory_space<vmem>>, vector<1x1x8x32xf32>
    %380 = vector.shape_cast %379 : vector<1x1x8x32xf32> to vector<8x32xf32>
    %cst_277 = arith.constant dense<0.000000e+00> : vector<16x32xf32>
    %381 = tpu.matmul %378, %380, %cst_277 {dimension_numbers = #tpu.dot_dimension_numbers<[1], [0], [0], [1], [0, 0, 1, 1], [], []>} : vector<16x8xf32>, vector<8x32xf32>, vector<16x32xf32> -> vector<16x32xf32>
    %382 = arith.addf %337, %381 : vector<16x32xf32>
    %c1_278 = arith.constant 1 : index
    %c2_279 = arith.constant 2 : index
    %c0_280 = arith.constant 0 : index
    %c0_281 = arith.constant 0 : index
    %383 = vector.load %arg5[%c1_278, %c2_279, %c0_280, %c0_281] : memref<2x4x32x8xf32, #tpu.memory_space<vmem>>, vector<1x1x32x8xf32>
    %384 = vector.shape_cast %383 : vector<1x1x32x8xf32> to vector<32x8xf32>
    %cst_282 = arith.constant dense<0.000000e+00> : vector<16x8xf32>
    %385 = tpu.matmul %291, %384, %cst_282 {dimension_numbers = #tpu.dot_dimension_numbers<[1], [0], [0], [1], [0, 0, 1, 1], [], []>} : vector<16x32xf32>, vector<32x8xf32>, vector<16x8xf32> -> vector<16x8xf32>
    %c1_283 = arith.constant 1 : index
    %c2_284 = arith.constant 2 : index
    %c0_285 = arith.constant 0 : index
    %c0_286 = arith.constant 0 : index
    %386 = vector.load %arg6[%c1_283, %c2_284, %c0_285, %c0_286] : memref<2x4x1x8xf32, #tpu.memory_space<vmem>>, vector<1x1x1x8xf32>
    %387 = vector.shape_cast %386 : vector<1x1x1x8xf32> to vector<1x8xf32>
    %388 = vector.broadcast %387 : vector<1x8xf32> to vector<16x8xf32>
    %389 = arith.addf %385, %388 : vector<16x8xf32>
    %390 = vector.shape_cast %389 : vector<16x8xf32> to vector<2x8x8xf32>
    %c1_287 = arith.constant 1 : index
    %c2_288 = arith.constant 2 : index
    %c0_289 = arith.constant 0 : index
    %c0_290 = arith.constant 0 : index
    %391 = vector.load %arg7[%c1_287, %c2_288, %c0_289, %c0_290] : memref<2x4x32x8xf32, #tpu.memory_space<vmem>>, vector<1x1x32x8xf32>
    %392 = vector.shape_cast %391 : vector<1x1x32x8xf32> to vector<32x8xf32>
    %cst_291 = arith.constant dense<0.000000e+00> : vector<16x8xf32>
    %393 = tpu.matmul %291, %392, %cst_291 {dimension_numbers = #tpu.dot_dimension_numbers<[1], [0], [0], [1], [0, 0, 1, 1], [], []>} : vector<16x32xf32>, vector<32x8xf32>, vector<16x8xf32> -> vector<16x8xf32>
    %c1_292 = arith.constant 1 : index
    %c2_293 = arith.constant 2 : index
    %c0_294 = arith.constant 0 : index
    %c0_295 = arith.constant 0 : index
    %394 = vector.load %arg8[%c1_292, %c2_293, %c0_294, %c0_295] : memref<2x4x1x8xf32, #tpu.memory_space<vmem>>, vector<1x1x1x8xf32>
    %395 = vector.shape_cast %394 : vector<1x1x1x8xf32> to vector<1x8xf32>
    %396 = vector.broadcast %395 : vector<1x8xf32> to vector<16x8xf32>
    %397 = arith.addf %393, %396 : vector<16x8xf32>
    %398 = vector.shape_cast %397 : vector<16x8xf32> to vector<2x8x8xf32>
    %c1_296 = arith.constant 1 : index
    %c2_297 = arith.constant 2 : index
    %c0_298 = arith.constant 0 : index
    %c0_299 = arith.constant 0 : index
    %399 = vector.load %arg9[%c1_296, %c2_297, %c0_298, %c0_299] : memref<2x4x32x8xf32, #tpu.memory_space<vmem>>, vector<1x1x32x8xf32>
    %400 = vector.shape_cast %399 : vector<1x1x32x8xf32> to vector<32x8xf32>
    %cst_300 = arith.constant dense<0.000000e+00> : vector<16x8xf32>
    %401 = tpu.matmul %291, %400, %cst_300 {dimension_numbers = #tpu.dot_dimension_numbers<[1], [0], [0], [1], [0, 0, 1, 1], [], []>} : vector<16x32xf32>, vector<32x8xf32>, vector<16x8xf32> -> vector<16x8xf32>
    %c1_301 = arith.constant 1 : index
    %c2_302 = arith.constant 2 : index
    %c0_303 = arith.constant 0 : index
    %c0_304 = arith.constant 0 : index
    %402 = vector.load %arg10[%c1_301, %c2_302, %c0_303, %c0_304] : memref<2x4x1x8xf32, #tpu.memory_space<vmem>>, vector<1x1x1x8xf32>
    %403 = vector.shape_cast %402 : vector<1x1x1x8xf32> to vector<1x8xf32>
    %404 = vector.broadcast %403 : vector<1x8xf32> to vector<16x8xf32>
    %405 = arith.addf %401, %404 : vector<16x8xf32>
    %406 = vector.shape_cast %405 : vector<16x8xf32> to vector<2x8x8xf32>
    "tpu.trace_start"() <{level = 10 : i32, message = "bqd,bkd->bqk"}> : () -> ()
    %cst_305 = arith.constant dense<0.000000e+00> : vector<2x8x8xf32>
    %407 = tpu.matmul %390, %398, %cst_305 {dimension_numbers = #tpu.dot_dimension_numbers<[2], [2], [1], [1], [0, 0, 0, 1, 1, 1], [0], [0]>} : vector<2x8x8xf32>, vector<2x8x8xf32>, vector<2x8x8xf32> -> vector<2x8x8xf32>
    "tpu.trace_stop"() : () -> ()
    %cst_306 = arith.constant 0.353553385 : f32
    %408 = vector.broadcast %cst_306 : f32 to vector<2x8x8xf32>
    %409 = arith.mulf %407, %408 : vector<2x8x8xf32>
    %410 = vector.broadcast %5 : vector<2x1x8xf32> to vector<2x8x8xf32>
    %411 = arith.addf %409, %410 : vector<2x8x8xf32>
    %cst_307 = arith.constant dense<0xFF800000> : vector<2x8xf32>
    %412 = vector.multi_reduction <maximumf>, %411, %cst_307 [2] : vector<2x8x8xf32> to vector<2x8xf32>
    %413 = vector.shape_cast %412 : vector<2x8xf32> to vector<2x8x1xf32>
    %414 = vector.broadcast %413 : vector<2x8x1xf32> to vector<2x8x8xf32>
    %415 = arith.subf %411, %414 : vector<2x8x8xf32>
    %416 = math.exp %415 : vector<2x8x8xf32>
    %cst_308 = arith.constant dense<0.000000e+00> : vector<2x8xf32>
    %417 = vector.multi_reduction <add>, %416, %cst_308 [2] : vector<2x8x8xf32> to vector<2x8xf32>
    %418 = vector.shape_cast %417 : vector<2x8xf32> to vector<2x8x1xf32>
    %419 = tpu.reciprocal %418 {approx = true} : vector<2x8x1xf32> -> vector<2x8x1xf32>
    %420 = vector.broadcast %419 : vector<2x8x1xf32> to vector<2x8x8xf32>
    %421 = arith.mulf %416, %420 : vector<2x8x8xf32>
    "tpu.trace_start"() <{level = 10 : i32, message = "bqk,bkd->bqd"}> : () -> ()
    %cst_309 = arith.constant dense<0.000000e+00> : vector<2x8x8xf32>
    %422 = tpu.matmul %421, %406, %cst_309 {dimension_numbers = #tpu.dot_dimension_numbers<[2], [1], [1], [2], [0, 0, 0, 1, 1, 2], [0], [0]>} : vector<2x8x8xf32>, vector<2x8x8xf32>, vector<2x8x8xf32> -> vector<2x8x8xf32>
    "tpu.trace_stop"() : () -> ()
    %423 = vector.shape_cast %422 : vector<2x8x8xf32> to vector<16x8xf32>
    %c1_310 = arith.constant 1 : index
    %c2_311 = arith.constant 2 : index
    %c0_312 = arith.constant 0 : index
    %c0_313 = arith.constant 0 : index
    %424 = vector.load %arg11[%c1_310, %c2_311, %c0_312, %c0_313] : memref<2x4x8x32xf32, #tpu.memory_space<vmem>>, vector<1x1x8x32xf32>
    %425 = vector.shape_cast %424 : vector<1x1x8x32xf32> to vector<8x32xf32>
    %cst_314 = arith.constant dense<0.000000e+00> : vector<16x32xf32>
    %426 = tpu.matmul %423, %425, %cst_314 {dimension_numbers = #tpu.dot_dimension_numbers<[1], [0], [0], [1], [0, 0, 1, 1], [], []>} : vector<16x8xf32>, vector<8x32xf32>, vector<16x32xf32> -> vector<16x32xf32>
    %427 = arith.addf %382, %426 : vector<16x32xf32>
    %c1_315 = arith.constant 1 : index
    %c3_316 = arith.constant 3 : index
    %c0_317 = arith.constant 0 : index
    %c0_318 = arith.constant 0 : index
    %428 = vector.load %arg5[%c1_315, %c3_316, %c0_317, %c0_318] : memref<2x4x32x8xf32, #tpu.memory_space<vmem>>, vector<1x1x32x8xf32>
    %429 = vector.shape_cast %428 : vector<1x1x32x8xf32> to vector<32x8xf32>
    %cst_319 = arith.constant dense<0.000000e+00> : vector<16x8xf32>
    %430 = tpu.matmul %291, %429, %cst_319 {dimension_numbers = #tpu.dot_dimension_numbers<[1], [0], [0], [1], [0, 0, 1, 1], [], []>} : vector<16x32xf32>, vector<32x8xf32>, vector<16x8xf32> -> vector<16x8xf32>
    %c1_320 = arith.constant 1 : index
    %c3_321 = arith.constant 3 : index
    %c0_322 = arith.constant 0 : index
    %c0_323 = arith.constant 0 : index
    %431 = vector.load %arg6[%c1_320, %c3_321, %c0_322, %c0_323] : memref<2x4x1x8xf32, #tpu.memory_space<vmem>>, vector<1x1x1x8xf32>
    %432 = vector.shape_cast %431 : vector<1x1x1x8xf32> to vector<1x8xf32>
    %433 = vector.broadcast %432 : vector<1x8xf32> to vector<16x8xf32>
    %434 = arith.addf %430, %433 : vector<16x8xf32>
    %435 = vector.shape_cast %434 : vector<16x8xf32> to vector<2x8x8xf32>
    %c1_324 = arith.constant 1 : index
    %c3_325 = arith.constant 3 : index
    %c0_326 = arith.constant 0 : index
    %c0_327 = arith.constant 0 : index
    %436 = vector.load %arg7[%c1_324, %c3_325, %c0_326, %c0_327] : memref<2x4x32x8xf32, #tpu.memory_space<vmem>>, vector<1x1x32x8xf32>
    %437 = vector.shape_cast %436 : vector<1x1x32x8xf32> to vector<32x8xf32>
    %cst_328 = arith.constant dense<0.000000e+00> : vector<16x8xf32>
    %438 = tpu.matmul %291, %437, %cst_328 {dimension_numbers = #tpu.dot_dimension_numbers<[1], [0], [0], [1], [0, 0, 1, 1], [], []>} : vector<16x32xf32>, vector<32x8xf32>, vector<16x8xf32> -> vector<16x8xf32>
    %c1_329 = arith.constant 1 : index
    %c3_330 = arith.constant 3 : index
    %c0_331 = arith.constant 0 : index
    %c0_332 = arith.constant 0 : index
    %439 = vector.load %arg8[%c1_329, %c3_330, %c0_331, %c0_332] : memref<2x4x1x8xf32, #tpu.memory_space<vmem>>, vector<1x1x1x8xf32>
    %440 = vector.shape_cast %439 : vector<1x1x1x8xf32> to vector<1x8xf32>
    %441 = vector.broadcast %440 : vector<1x8xf32> to vector<16x8xf32>
    %442 = arith.addf %438, %441 : vector<16x8xf32>
    %443 = vector.shape_cast %442 : vector<16x8xf32> to vector<2x8x8xf32>
    %c1_333 = arith.constant 1 : index
    %c3_334 = arith.constant 3 : index
    %c0_335 = arith.constant 0 : index
    %c0_336 = arith.constant 0 : index
    %444 = vector.load %arg9[%c1_333, %c3_334, %c0_335, %c0_336] : memref<2x4x32x8xf32, #tpu.memory_space<vmem>>, vector<1x1x32x8xf32>
    %445 = vector.shape_cast %444 : vector<1x1x32x8xf32> to vector<32x8xf32>
    %cst_337 = arith.constant dense<0.000000e+00> : vector<16x8xf32>
    %446 = tpu.matmul %291, %445, %cst_337 {dimension_numbers = #tpu.dot_dimension_numbers<[1], [0], [0], [1], [0, 0, 1, 1], [], []>} : vector<16x32xf32>, vector<32x8xf32>, vector<16x8xf32> -> vector<16x8xf32>
    %c1_338 = arith.constant 1 : index
    %c3_339 = arith.constant 3 : index
    %c0_340 = arith.constant 0 : index
    %c0_341 = arith.constant 0 : index
    %447 = vector.load %arg10[%c1_338, %c3_339, %c0_340, %c0_341] : memref<2x4x1x8xf32, #tpu.memory_space<vmem>>, vector<1x1x1x8xf32>
    %448 = vector.shape_cast %447 : vector<1x1x1x8xf32> to vector<1x8xf32>
    %449 = vector.broadcast %448 : vector<1x8xf32> to vector<16x8xf32>
    %450 = arith.addf %446, %449 : vector<16x8xf32>
    %451 = vector.shape_cast %450 : vector<16x8xf32> to vector<2x8x8xf32>
    "tpu.trace_start"() <{level = 10 : i32, message = "bqd,bkd->bqk"}> : () -> ()
    %cst_342 = arith.constant dense<0.000000e+00> : vector<2x8x8xf32>
    %452 = tpu.matmul %435, %443, %cst_342 {dimension_numbers = #tpu.dot_dimension_numbers<[2], [2], [1], [1], [0, 0, 0, 1, 1, 1], [0], [0]>} : vector<2x8x8xf32>, vector<2x8x8xf32>, vector<2x8x8xf32> -> vector<2x8x8xf32>
    "tpu.trace_stop"() : () -> ()
    %cst_343 = arith.constant 0.353553385 : f32
    %453 = vector.broadcast %cst_343 : f32 to vector<2x8x8xf32>
    %454 = arith.mulf %452, %453 : vector<2x8x8xf32>
    %455 = vector.broadcast %5 : vector<2x1x8xf32> to vector<2x8x8xf32>
    %456 = arith.addf %454, %455 : vector<2x8x8xf32>
    %cst_344 = arith.constant dense<0xFF800000> : vector<2x8xf32>
    %457 = vector.multi_reduction <maximumf>, %456, %cst_344 [2] : vector<2x8x8xf32> to vector<2x8xf32>
    %458 = vector.shape_cast %457 : vector<2x8xf32> to vector<2x8x1xf32>
    %459 = vector.broadcast %458 : vector<2x8x1xf32> to vector<2x8x8xf32>
    %460 = arith.subf %456, %459 : vector<2x8x8xf32>
    %461 = math.exp %460 : vector<2x8x8xf32>
    %cst_345 = arith.constant dense<0.000000e+00> : vector<2x8xf32>
    %462 = vector.multi_reduction <add>, %461, %cst_345 [2] : vector<2x8x8xf32> to vector<2x8xf32>
    %463 = vector.shape_cast %462 : vector<2x8xf32> to vector<2x8x1xf32>
    %464 = tpu.reciprocal %463 {approx = true} : vector<2x8x1xf32> -> vector<2x8x1xf32>
    %465 = vector.broadcast %464 : vector<2x8x1xf32> to vector<2x8x8xf32>
    %466 = arith.mulf %461, %465 : vector<2x8x8xf32>
    "tpu.trace_start"() <{level = 10 : i32, message = "bqk,bkd->bqd"}> : () -> ()
    %cst_346 = arith.constant dense<0.000000e+00> : vector<2x8x8xf32>
    %467 = tpu.matmul %466, %451, %cst_346 {dimension_numbers = #tpu.dot_dimension_numbers<[2], [1], [1], [2], [0, 0, 0, 1, 1, 2], [0], [0]>} : vector<2x8x8xf32>, vector<2x8x8xf32>, vector<2x8x8xf32> -> vector<2x8x8xf32>
    "tpu.trace_stop"() : () -> ()
    %468 = vector.shape_cast %467 : vector<2x8x8xf32> to vector<16x8xf32>
    %c1_347 = arith.constant 1 : index
    %c3_348 = arith.constant 3 : index
    %c0_349 = arith.constant 0 : index
    %c0_350 = arith.constant 0 : index
    %469 = vector.load %arg11[%c1_347, %c3_348, %c0_349, %c0_350] : memref<2x4x8x32xf32, #tpu.memory_space<vmem>>, vector<1x1x8x32xf32>
    %470 = vector.shape_cast %469 : vector<1x1x8x32xf32> to vector<8x32xf32>
    %cst_351 = arith.constant dense<0.000000e+00> : vector<16x32xf32>
    %471 = tpu.matmul %468, %470, %cst_351 {dimension_numbers = #tpu.dot_dimension_numbers<[1], [0], [0], [1], [0, 0, 1, 1], [], []>} : vector<16x8xf32>, vector<8x32xf32>, vector<16x32xf32> -> vector<16x32xf32>
    %472 = arith.addf %427, %471 : vector<16x32xf32>
    %c1_352 = arith.constant 1 : index
    %c0_353 = arith.constant 0 : index
    %c0_354 = arith.constant 0 : index
    %473 = vector.load %arg12[%c1_352, %c0_353, %c0_354] : memref<2x1x32xf32, #tpu.memory_space<vmem>>, vector<1x1x32xf32>
    %474 = vector.shape_cast %473 : vector<1x1x32xf32> to vector<1x32xf32>
    %475 = vector.broadcast %474 : vector<1x32xf32> to vector<16x32xf32>
    %476 = arith.addf %472, %475 : vector<16x32xf32>
    %477 = arith.addf %476, %291 : vector<16x32xf32>
    %c1_355 = arith.constant 1 : index
    %c0_356 = arith.constant 0 : index
    %c0_357 = arith.constant 0 : index
    %478 = vector.load %arg13[%c1_355, %c0_356, %c0_357] : memref<2x1x32xf32, #tpu.memory_space<vmem>>, vector<1x1x32xf32>
    %479 = vector.shape_cast %478 : vector<1x1x32xf32> to vector<1x32xf32>
    %c1_358 = arith.constant 1 : index
    %c0_359 = arith.constant 0 : index
    %c0_360 = arith.constant 0 : index
    %480 = vector.load %arg14[%c1_358, %c0_359, %c0_360] : memref<2x1x32xf32, #tpu.memory_space<vmem>>, vector<1x1x32xf32>
    %481 = vector.shape_cast %480 : vector<1x1x32xf32> to vector<1x32xf32>
    %cst_361 = arith.constant dense<0.000000e+00> : vector<16xf32>
    %482 = vector.multi_reduction <add>, %477, %cst_361 [1] : vector<16x32xf32> to vector<16xf32>
    %483 = vector.shape_cast %482 : vector<16xf32> to vector<16x1xf32>
    %cst_362 = arith.constant 3.125000e-02 : f32
    %484 = vector.broadcast %cst_362 : f32 to vector<16x1xf32>
    %485 = arith.mulf %483, %484 : vector<16x1xf32>
    %486 = vector.broadcast %485 : vector<16x1xf32> to vector<16x32xf32>
    %487 = arith.subf %477, %486 : vector<16x32xf32>
    %488 = arith.mulf %487, %487 : vector<16x32xf32>
    %cst_363 = arith.constant dense<0.000000e+00> : vector<16xf32>
    %489 = vector.multi_reduction <add>, %488, %cst_363 [1] : vector<16x32xf32> to vector<16xf32>
    %490 = vector.shape_cast %489 : vector<16xf32> to vector<16x1xf32>
    %cst_364 = arith.constant 3.125000e-02 : f32
    %491 = vector.broadcast %cst_364 : f32 to vector<16x1xf32>
    %492 = arith.mulf %490, %491 : vector<16x1xf32>
    %cst_365 = arith.constant 9.99999996E-13 : f32
    %493 = vector.broadcast %cst_365 : f32 to vector<16x1xf32>
    %494 = arith.addf %492, %493 : vector<16x1xf32>
    %495 = math.rsqrt %494 : vector<16x1xf32>
    %496 = vector.broadcast %495 : vector<16x1xf32> to vector<16x32xf32>
    %497 = arith.mulf %487, %496 : vector<16x32xf32>
    %498 = vector.broadcast %479 : vector<1x32xf32> to vector<16x32xf32>
    %499 = arith.mulf %497, %498 : vector<16x32xf32>
    %500 = vector.broadcast %481 : vector<1x32xf32> to vector<16x32xf32>
    %501 = arith.addf %499, %500 : vector<16x32xf32>
    %c1_366 = arith.constant 1 : index
    %c0_367 = arith.constant 0 : index
    %c0_368 = arith.constant 0 : index
    %502 = vector.load %arg15[%c1_366, %c0_367, %c0_368] : memref<2x32x64xf32, #tpu.memory_space<vmem>>, vector<1x32x64xf32>
    %503 = vector.shape_cast %502 : vector<1x32x64xf32> to vector<32x64xf32>
    %cst_369 = arith.constant dense<0.000000e+00> : vector<16x64xf32>
    %504 = tpu.matmul %501, %503, %cst_369 {dimension_numbers = #tpu.dot_dimension_numbers<[1], [0], [0], [1], [0, 0, 1, 1], [], []>} : vector<16x32xf32>, vector<32x64xf32>, vector<16x64xf32> -> vector<16x64xf32>
    %c1_370 = arith.constant 1 : index
    %c0_371 = arith.constant 0 : index
    %c0_372 = arith.constant 0 : index
    %505 = vector.load %arg16[%c1_370, %c0_371, %c0_372] : memref<2x1x64xf32, #tpu.memory_space<vmem>>, vector<1x1x64xf32>
    %506 = vector.shape_cast %505 : vector<1x1x64xf32> to vector<1x64xf32>
    %507 = vector.broadcast %506 : vector<1x64xf32> to vector<16x64xf32>
    %508 = arith.addf %504, %507 : vector<16x64xf32>
    %cst_373 = arith.constant 5.000000e-01 : f32
    %509 = vector.broadcast %cst_373 : f32 to vector<16x64xf32>
    %510 = arith.mulf %509, %508 : vector<16x64xf32>
    %cst_374 = arith.constant 4.471500e-02 : f32
    %511 = vector.broadcast %cst_374 : f32 to vector<16x64xf32>
    %512 = arith.mulf %511, %508 : vector<16x64xf32>
    %513 = arith.mulf %512, %508 : vector<16x64xf32>
    %514 = arith.mulf %513, %508 : vector<16x64xf32>
    %515 = arith.addf %508, %514 : vector<16x64xf32>
    %cst_375 = arith.constant 0.797884583 : f32
    %516 = vector.broadcast %cst_375 : f32 to vector<16x64xf32>
    %517 = arith.mulf %516, %515 : vector<16x64xf32>
    %518 = math.tanh %517 : vector<16x64xf32>
    %cst_376 = arith.constant 1.000000e+00 : f32
    %519 = vector.broadcast %cst_376 : f32 to vector<16x64xf32>
    %520 = arith.addf %519, %518 : vector<16x64xf32>
    %521 = arith.mulf %510, %520 : vector<16x64xf32>
    %c1_377 = arith.constant 1 : index
    %c0_378 = arith.constant 0 : index
    %c0_379 = arith.constant 0 : index
    %522 = vector.load %arg17[%c1_377, %c0_378, %c0_379] : memref<2x64x32xf32, #tpu.memory_space<vmem>>, vector<1x64x32xf32>
    %523 = vector.shape_cast %522 : vector<1x64x32xf32> to vector<64x32xf32>
    %cst_380 = arith.constant dense<0.000000e+00> : vector<16x32xf32>
    %524 = tpu.matmul %521, %523, %cst_380 {dimension_numbers = #tpu.dot_dimension_numbers<[1], [0], [0], [1], [0, 0, 1, 1], [], []>} : vector<16x64xf32>, vector<64x32xf32>, vector<16x32xf32> -> vector<16x32xf32>
    %c1_381 = arith.constant 1 : index
    %c0_382 = arith.constant 0 : index
    %c0_383 = arith.constant 0 : index
    %525 = vector.load %arg18[%c1_381, %c0_382, %c0_383] : memref<2x1x32xf32, #tpu.memory_space<vmem>>, vector<1x1x32xf32>
    %526 = vector.shape_cast %525 : vector<1x1x32xf32> to vector<1x32xf32>
    %527 = vector.broadcast %526 : vector<1x32xf32> to vector<16x32xf32>
    %528 = arith.addf %524, %527 : vector<16x32xf32>
    %529 = arith.addf %528, %501 : vector<16x32xf32>
    %c1_384 = arith.constant 1 : index
    %c0_385 = arith.constant 0 : index
    %c0_386 = arith.constant 0 : index
    %530 = vector.load %arg19[%c1_384, %c0_385, %c0_386] : memref<2x1x32xf32, #tpu.memory_space<vmem>>, vector<1x1x32xf32>
    %531 = vector.shape_cast %530 : vector<1x1x32xf32> to vector<1x32xf32>
    %c1_387 = arith.constant 1 : index
    %c0_388 = arith.constant 0 : index
    %c0_389 = arith.constant 0 : index
    %532 = vector.load %arg20[%c1_387, %c0_388, %c0_389] : memref<2x1x32xf32, #tpu.memory_space<vmem>>, vector<1x1x32xf32>
    %533 = vector.shape_cast %532 : vector<1x1x32xf32> to vector<1x32xf32>
    %cst_390 = arith.constant dense<0.000000e+00> : vector<16xf32>
    %534 = vector.multi_reduction <add>, %529, %cst_390 [1] : vector<16x32xf32> to vector<16xf32>
    %535 = vector.shape_cast %534 : vector<16xf32> to vector<16x1xf32>
    %cst_391 = arith.constant 3.125000e-02 : f32
    %536 = vector.broadcast %cst_391 : f32 to vector<16x1xf32>
    %537 = arith.mulf %535, %536 : vector<16x1xf32>
    %538 = vector.broadcast %537 : vector<16x1xf32> to vector<16x32xf32>
    %539 = arith.subf %529, %538 : vector<16x32xf32>
    %540 = arith.mulf %539, %539 : vector<16x32xf32>
    %cst_392 = arith.constant dense<0.000000e+00> : vector<16xf32>
    %541 = vector.multi_reduction <add>, %540, %cst_392 [1] : vector<16x32xf32> to vector<16xf32>
    %542 = vector.shape_cast %541 : vector<16xf32> to vector<16x1xf32>
    %cst_393 = arith.constant 3.125000e-02 : f32
    %543 = vector.broadcast %cst_393 : f32 to vector<16x1xf32>
    %544 = arith.mulf %542, %543 : vector<16x1xf32>
    %cst_394 = arith.constant 9.99999996E-13 : f32
    %545 = vector.broadcast %cst_394 : f32 to vector<16x1xf32>
    %546 = arith.addf %544, %545 : vector<16x1xf32>
    %547 = math.rsqrt %546 : vector<16x1xf32>
    %548 = vector.broadcast %547 : vector<16x1xf32> to vector<16x32xf32>
    %549 = arith.mulf %539, %548 : vector<16x32xf32>
    %550 = vector.broadcast %531 : vector<1x32xf32> to vector<16x32xf32>
    %551 = arith.mulf %549, %550 : vector<16x32xf32>
    %552 = vector.broadcast %533 : vector<1x32xf32> to vector<16x32xf32>
    %553 = arith.addf %551, %552 : vector<16x32xf32>
    %554 = vector.shape_cast %553 : vector<16x32xf32> to vector<2x8x32xf32>
    %555 = vector.extract_strided_slice %554 {offsets = [0, 0, 0], sizes = [2, 1, 32], strides = [1, 1, 1]} : vector<2x8x32xf32> to vector<2x1x32xf32>
    %556 = vector.shape_cast %555 : vector<2x1x32xf32> to vector<2x32xf32>
    %c0_395 = arith.constant 0 : index
    %c0_396 = arith.constant 0 : index
    %557 = vector.load %arg21[%c0_395, %c0_396] : memref<2x32xf32, #tpu.memory_space<vmem>>, vector<2x32xf32>
    tpu.vector_store %arg21[%c0_395, %c0_396], %556 {strides = array<i32>} : memref<2x32xf32, #tpu.memory_space<vmem>>, vector<2x32xf32>,
    return
  }
  func.func @transform_0(%arg0: i32) -> (i32, i32, i32) {
    %c0_i32 = arith.constant 0 : i32
    %c0_i32_0 = arith.constant 0 : i32
    %c0_i32_1 = arith.constant 0 : i32
    return %arg0, %c0_i32, %c0_i32_0 : i32, i32, i32
  }
  func.func @transform_1(%arg0: i32) -> (i32, i32) {
    %c0_i32 = arith.constant 0 : i32
    %c0_i32_0 = arith.constant 0 : i32
    return %arg0, %c0_i32 : i32, i32
  }
  func.func @transform_2(%arg0: i32) -> (i32, i32) {
    %c0_i32 = arith.constant 0 : i32
    %c0_i32_0 = arith.constant 0 : i32
    %c0_i32_1 = arith.constant 0 : i32
    return %c0_i32, %c0_i32_0 : i32, i32
  }
  func.func @transform_3(%arg0: i32) -> (i32, i32) {
    %c0_i32 = arith.constant 0 : i32
    %c0_i32_0 = arith.constant 0 : i32
    %c0_i32_1 = arith.constant 0 : i32
    return %c0_i32, %c0_i32_0 : i32, i32
  }
  func.func @transform_4(%arg0: i32) -> (i32, i32, i32, i32) {
    %c0_i32 = arith.constant 0 : i32
    %c0_i32_0 = arith.constant 0 : i32
    %c0_i32_1 = arith.constant 0 : i32
    %c0_i32_2 = arith.constant 0 : i32
    %c0_i32_3 = arith.constant 0 : i32
    return %c0_i32, %c0_i32_0, %c0_i32_1, %c0_i32_2 : i32, i32, i32, i32
  }
  func.func @transform_5(%arg0: i32) -> (i32, i32, i32, i32) {
    %c0_i32 = arith.constant 0 : i32
    %c0_i32_0 = arith.constant 0 : i32
    %c0_i32_1 = arith.constant 0 : i32
    %c0_i32_2 = arith.constant 0 : i32
    %c0_i32_3 = arith.constant 0 : i32
    return %c0_i32, %c0_i32_0, %c0_i32_1, %c0_i32_2 : i32, i32, i32, i32
  }
  func.func @transform_6(%arg0: i32) -> (i32, i32, i32, i32) {
    %c0_i32 = arith.constant 0 : i32
    %c0_i32_0 = arith.constant 0 : i32
    %c0_i32_1 = arith.constant 0 : i32
    %c0_i32_2 = arith.constant 0 : i32
    %c0_i32_3 = arith.constant 0 : i32
    return %c0_i32, %c0_i32_0, %c0_i32_1, %c0_i32_2 : i32, i32, i32, i32
  }
  func.func @transform_7(%arg0: i32) -> (i32, i32, i32, i32) {
    %c0_i32 = arith.constant 0 : i32
    %c0_i32_0 = arith.constant 0 : i32
    %c0_i32_1 = arith.constant 0 : i32
    %c0_i32_2 = arith.constant 0 : i32
    %c0_i32_3 = arith.constant 0 : i32
    return %c0_i32, %c0_i32_0, %c0_i32_1, %c0_i32_2 : i32, i32, i32, i32
  }
  func.func @transform_8(%arg0: i32) -> (i32, i32, i32, i32) {
    %c0_i32 = arith.constant 0 : i32
    %c0_i32_0 = arith.constant 0 : i32
    %c0_i32_1 = arith.constant 0 : i32
    %c0_i32_2 = arith.constant 0 : i32
    %c0_i32_3 = arith.constant 0 : i32
    return %c0_i32, %c0_i32_0, %c0_i32_1, %c0_i32_2 : i32, i32, i32, i32
  }
  func.func @transform_9(%arg0: i32) -> (i32, i32, i32, i32) {
    %c0_i32 = arith.constant 0 : i32
    %c0_i32_0 = arith.constant 0 : i32
    %c0_i32_1 = arith.constant 0 : i32
    %c0_i32_2 = arith.constant 0 : i32
    %c0_i32_3 = arith.constant 0 : i32
    return %c0_i32, %c0_i32_0, %c0_i32_1, %c0_i32_2 : i32, i32, i32, i32
  }
  func.func @transform_10(%arg0: i32) -> (i32, i32, i32, i32) {
    %c0_i32 = arith.constant 0 : i32
    %c0_i32_0 = arith.constant 0 : i32
    %c0_i32_1 = arith.constant 0 : i32
    %c0_i32_2 = arith.constant 0 : i32
    %c0_i32_3 = arith.constant 0 : i32
    return %c0_i32, %c0_i32_0, %c0_i32_1, %c0_i32_2 : i32, i32, i32, i32
  }
  func.func @transform_11(%arg0: i32) -> (i32, i32, i32) {
    %c0_i32 = arith.constant 0 : i32
    %c0_i32_0 = arith.constant 0 : i32
    %c0_i32_1 = arith.constant 0 : i32
    %c0_i32_2 = arith.constant 0 : i32
    return %c0_i32, %c0_i32_0, %c0_i32_1 : i32, i32, i32
  }
  func.func @transform_12(%arg0: i32) -> (i32, i32, i32) {
    %c0_i32 = arith.constant 0 : i32
    %c0_i32_0 = arith.constant 0 : i32
    %c0_i32_1 = arith.constant 0 : i32
    %c0_i32_2 = arith.constant 0 : i32
    return %c0_i32, %c0_i32_0, %c0_i32_1 : i32, i32, i32
  }
  func.func @transform_13(%arg0: i32) -> (i32, i32, i32) {
    %c0_i32 = arith.constant 0 : i32
    %c0_i32_0 = arith.constant 0 : i32
    %c0_i32_1 = arith.constant 0 : i32
    %c0_i32_2 = arith.constant 0 : i32
    return %c0_i32, %c0_i32_0, %c0_i32_1 : i32, i32, i32
  }
  func.func @transform_14(%arg0: i32) -> (i32, i32, i32) {
    %c0_i32 = arith.constant 0 : i32
    %c0_i32_0 = arith.constant 0 : i32
    %c0_i32_1 = arith.constant 0 : i32
    %c0_i32_2 = arith.constant 0 : i32
    return %c0_i32, %c0_i32_0, %c0_i32_1 : i32, i32, i32
  }
  func.func @transform_15(%arg0: i32) -> (i32, i32, i32) {
    %c0_i32 = arith.constant 0 : i32
    %c0_i32_0 = arith.constant 0 : i32
    %c0_i32_1 = arith.constant 0 : i32
    %c0_i32_2 = arith.constant 0 : i32
    return %c0_i32, %c0_i32_0, %c0_i32_1 : i32, i32, i32
  }
  func.func @transform_16(%arg0: i32) -> (i32, i32, i32) {
    %c0_i32 = arith.constant 0 : i32
    %c0_i32_0 = arith.constant 0 : i32
    %c0_i32_1 = arith.constant 0 : i32
    %c0_i32_2 = arith.constant 0 : i32
    return %c0_i32, %c0_i32_0, %c0_i32_1 : i32, i32, i32
  }
  func.func @transform_17(%arg0: i32) -> (i32, i32, i32) {
    %c0_i32 = arith.constant 0 : i32
    %c0_i32_0 = arith.constant 0 : i32
    %c0_i32_1 = arith.constant 0 : i32
    %c0_i32_2 = arith.constant 0 : i32
    return %c0_i32, %c0_i32_0, %c0_i32_1 : i32, i32, i32
  }
  func.func @transform_18(%arg0: i32) -> (i32, i32, i32) {
    %c0_i32 = arith.constant 0 : i32
    %c0_i32_0 = arith.constant 0 : i32
    %c0_i32_1 = arith.constant 0 : i32
    %c0_i32_2 = arith.constant 0 : i32
    return %c0_i32, %c0_i32_0, %c0_i32_1 : i32, i32, i32
  }
  func.func @transform_19(%arg0: i32) -> (i32, i32, i32) {
    %c0_i32 = arith.constant 0 : i32
    %c0_i32_0 = arith.constant 0 : i32
    %c0_i32_1 = arith.constant 0 : i32
    %c0_i32_2 = arith.constant 0 : i32
    return %c0_i32, %c0_i32_0, %c0_i32_1 : i32, i32, i32
  }
  func.func @transform_20(%arg0: i32) -> (i32, i32) {
    %c0_i32 = arith.constant 0 : i32
    %c0_i32_0 = arith.constant 0 : i32
    return %arg0, %c0_i32 : i32, i32
  }
}

</mosaic_0001>

<bundles_post_ra>
// kernel: tpu_custom_call.1
= control target key start
LH: loop header
LB: loop body
LE: loop exit
PB: predicated region body
PF: predicated region fallthrough
CT: control target
= control target key end

     0   :  { %s3972_s0 = inlined_call_operand.vmem [shape: f32[2,8,32], index: 0, kind: input, shape index: {}]   ;;  %s3973_s1 = inlined_call_operand.vmem [shape: f32[2,8], index: 1, kind: input, shape index: {}]   ;;  %s3974_s2 = inlined_call_operand.vmem [shape: f32[1,32], index: 2, kind: input, shape index: {}]   ;;  %s3975_s3 = inlined_call_operand.vmem [shape: f32[1,32], index: 3, kind: input, shape index: {}]   ;;  %s3976_s4 = inlined_call_operand.vmem [shape: f32[2,4,32,8], index: 4, kind: input, shape index: {}]   ;;  %s3977_s5 = inlined_call_operand.vmem [shape: f32[2,4,1,8], index: 5, kind: input, shape index: {}]   ;;  %s3978_s6 = inlined_call_operand.vmem [shape: f32[2,4,32,8], index: 6, kind: input, shape index: {}]   ;;  %s3979_s7 = inlined_call_operand.vmem [shape: f32[2,4,1,8], index: 7, kind: input, shape index: {}]   ;;  %s3980_s8 = inlined_call_operand.vmem [shape: f32[2,4,32,8], index: 8, kind: input, shape index: {}]   ;;  %s3981_s9 = inlined_call_operand.vmem [shape: f32[2,4,1,8], index: 9, kind: input, shape index: {}]   ;;  %s3982_s10 = inlined_call_operand.vmem [shape: f32[2,4,8,32], index: 10, kind: input, shape index: {}]   ;;  %s3983_s11 = inlined_call_operand.vmem [shape: f32[2,1,32], index: 11, kind: input, shape index: {}]   ;;  %s3984_s12 = inlined_call_operand.vmem [shape: f32[2,1,32], index: 12, kind: input, shape index: {}]   ;;  %s3985_s13 = inlined_call_operand.vmem [shape: f32[2,1,32], index: 13, kind: input, shape index: {}]   ;;  %s3986_s14 = inlined_call_operand.vmem [shape: f32[2,32,64], index: 14, kind: input, shape index: {}]   ;;  %s3987_s15 = inlined_call_operand.vmem [shape: f32[2,1,64], index: 15, kind: input, shape index: {}]   ;;  %s3988_s16 = inlined_call_operand.vmem [shape: f32[2,64,32], index: 16, kind: input, shape index: {}]   ;;  %s3989_s17 = inlined_call_operand.vmem [shape: f32[2,1,32], index: 17, kind: input, shape index: {}]   ;;  %s3990_s18 = inlined_call_operand.vmem [shape: f32[2,1,32], index: 18, kind: input, shape index: {}]   ;;  %s3991_s19 = inlined_call_operand.vmem [shape: f32[2,1,32], index: 19, kind: input, shape index: {}]   ;;  %s3992_s20 = inlined_call_operand.hbm [shape: f32[2,32], index: 20, kind: output, shape index: {}]  }
   0x1   :  { %3995 = sst [smem:[#allocation5_spill]] %s3972_s0 }
   0x2   :  { %3996 = sst [smem:[#allocation6_spill]] %s3973_s1 }
   0x3   :  { %3997 = sst [smem:[#allocation7_spill]] %s3974_s2 }
   0x4   :  { %3998 = sst [smem:[#allocation8_spill]] %s3975_s3 }
   0x5   :  { %3999 = sst [smem:[#allocation9_spill]] %s3976_s4 }
   0x6   :  { %s4000_s23 = sld [smem:[#allocation5_spill]]  ;;  %vm75_vm0 = vcmask 261120  }
   0xc   :  { %v71_v0 = vld [vmem:[%s4000_s23] sm:$0xff]  ;;  %v72_v1 = vld [vmem:[%s4000_s23 + $0x8] sm:$0xff] }
   0xd   :  { %v76_v2 = vsel %vm75_vm0, %v71_v0, 0.0  ;;  %v79_v3 = vsel %vm75_vm0, %v72_v1, 0.0 }
   0xe   :  { %77 = vadd.xlane.f32.xlu0 %v76_v2 }
  0x16   :  { %80 = vadd.xlane.f32.xlu0 %v79_v3 }
  0x17   :  { %25 = vsyncpa [#allocation3], 0  ;;  %s4001_s26 = sld [smem:[#allocation9_spill]]  ;;  %v170_v15 = vld [vmem:[%s3978_s6 + $0x18] sm:$0xff]  ;;  %v169_v18 = vld [vmem:[%s3978_s6 + $0x10] sm:$0xff]  ;;  %vm229_vm7 = vcmask 64512  }
  0x18   :  { %v201_v16 = vld [vmem:[%s3980_s8 + $0x18] sm:$0xff]  ;;  %187 = vmatpush.msra.mxu1 %v170_v15  ;;  %v200_v19 = vld [vmem:[%s3980_s8 + $0x10] sm:$0xff]  ;;  %v168_v21 = vld [vmem:[%s3978_s6 + $0x8] sm:$0xff]  ;;  %s4002_s25 = sld [smem:[#allocation7_spill]]  ;;  %vm1285_vm14 = vcmask 523264  }
  0x19   :  { %218 = vmatpush.msra.mxu2 %v201_v16  ;;  %v199_v22 = vld [vmem:[%s3980_s8 + $0x8] sm:$0xff]  ;;  %v167_v24 = vld [vmem:[%s3978_s6] sm:$0xff]  ;;  %v2672_v30 = vld [vmem:[%s3978_s6 + $0x38] sm:$0xff]  ;;  %s4003_s28 = sld [smem:[#allocation8_spill]] }
  0x1a   :  { %188 = vmatpush.msra.mxu1 %v169_v18  ;;  %v198_v25 = vld [vmem:[%s3980_s8] sm:$0xff]  ;;  %v2671_v32 = vld [vmem:[%s3978_s6 + $0x30] sm:$0xff]  ;;  %v2670_v35 = vld [vmem:[%s3978_s6 + $0x28] sm:$0xff] }
  0x1b   :  { %219 = vmatpush.msra.mxu2 %v200_v19  ;;  %v2669_v38 = vld [vmem:[%s3978_s6 + $0x20] sm:$0xff] }
  0x1c   :  { %189 = vmatpush.msra.mxu1 %v168_v21  ;;  %v2905_v62 = vld [vmem:[%s3979_s7] ss:$0 sm:$0xff] }
  0x1d   :  { %v133_v14 = vld [vmem:[%s4001_s26 + $0x18] sm:$0xff]  ;;  %v132_v17 = vld [vmem:[%s4001_s26 + $0x10] sm:$0xff]  ;;  %v131_v20 = vld [vmem:[%s4001_s26 + $0x8] sm:$0xff]  ;;  %220 = vmatpush.msra.mxu2 %v199_v22 }
  0x1e   :  { %156 = vmatpush.msra.mxu0 %v133_v14  ;;  %v130_v23 = vld [vmem:[%s4001_s26] sm:$0xff]  ;;  %190 = vmatpush.msra.mxu1 %v167_v24  ;;  %v2665_v29 = vld [vmem:[%s4001_s26 + $0x38] sm:$0xff]  ;;  %v2664_v31 = vld [vmem:[%s4001_s26 + $0x30] sm:$0xff] }
  0x1f   :  { %221 = vmatpush.msra.mxu2 %v198_v25  ;;  %v2663_v34 = vld [vmem:[%s4001_s26 + $0x28] sm:$0xff]  ;;  %v2662_v37 = vld [vmem:[%s4001_s26 + $0x20] sm:$0xff] }
  0x20   :  { %157 = vmatpush.msra.mxu0 %v132_v17  ;;  %381 = vmatpush.msrb.mxu1 %v2665_v29  ;;  %v2902_v48 = vld [vmem:[%s4002_s25] ss:$0 sm:$0xff]  ;;  %s4004_s25 = sld [smem:[#allocation6_spill]] }
  0x21   :  { %414 = vmatpush.msrb.mxu2 %v2672_v30  ;;  %v2903_v51 = vld [vmem:[%s4003_s28] ss:$0 sm:$0xff] }
  0x22   :  { %158 = vmatpush.msra.mxu0 %v131_v20  ;;  %382 = vmatpush.msrb.mxu1 %v2664_v31  ;;  %v2904_v63 = vld [vmem:[%s3977_s5] ss:$0 sm:$0xff] }
  0x23   :  { %415 = vmatpush.msrb.mxu2 %v2671_v32 }
  0x24   :  { %159 = vmatpush.msra.mxu0 %v130_v23  ;;  %383 = vmatpush.msrb.mxu1 %v2663_v34 }
  0x25   :  { %416 = vmatpush.msrb.mxu2 %v2670_v35 }
  0x26   :  { %384 = vmatpush.msrb.mxu1 %v2662_v37  ;;  %v66_v16 = vld [vmem:[%s4004_s25] sm:$0x3] }
  0x27   :  { %417 = vmatpush.msrb.mxu2 %v2669_v38  ;;  %v67_v17 = vsub.f32 1.0, %v66_v16 }
  0x29   :  { %v68_v18 = vmul.f32 -1e+09, %v67_v17 }
  0x2b   :  { %v3296_v19 = vperm.slane %v68_v18, 0  ;;  %v70_v23 = vrot.slane %v68_v18, 1 }
  0x2d   :  { %v3300_v25 = vperm.slane %v70_v23, 0  ;;  %v2696_v23 = vld [vmem:[%s4001_s26 + $0x50] sm:$0xff] }
  0x81   :  { %v78_v4 = vpop.xlane.xlu0 %77 }
  0x82   :  { %v82_v5 = vmul.f32 0.03125, %v78_v4  ;;  %v2906_v4 = vld [vmem:[%s3981_s9] ss:$0 sm:$0xff] }
  0x84   :  { %v3174_v6 = vsub.f32 %v71_v0, %v82_v5 }
  0x86   :  { %v86_v7 = vmul.f32 %v3174_v6, %v3174_v6 }
  0x88   :  { %v88_v8 = vsel %vm75_vm0, %v86_v7, 0.0 }
  0x89   :  { %89 = vadd.xlane.f32.xlu1 %v88_v8  ;;  %v81_v9 = vpop.xlane.xlu0 %80 }
  0x8a   :  { %v83_v10 = vmul.f32 0.03125, %v81_v9 }
  0x8c   :  { %v3179_v11 = vsub.f32 %v72_v1, %v83_v10 }
  0x8e   :  { %v87_v12 = vmul.f32 %v3179_v11, %v3179_v11 }
  0x90   :  { %v91_v13 = vsel %vm75_vm0, %v87_v12, 0.0 }
  0x91   :  { %92 = vadd.xlane.f32.xlu1 %v91_v13  ;;  %v2908_v13 = vld [vmem:[%s3979_s7 + $0x1] ss:$0 sm:$0xff] }
  0xfc   :  { %v90_v26 = vpop.xlane.xlu1 %89 }
  0xfd   :  { %v94_v27 = vmul.f32 0.03125, %v90_v26 }
  0xff   :  { %v96_v28 = vadd.f32 1e-12, %v94_v27 }
 0x101   :  { %2942 = vrsqrt.f32 %v96_v28  ;;  %vm104_vm2 = vweird.f32 %v96_v28 }
 0x104   :  { %v93_v33 = vpop.xlane.xlu1 %92 }
 0x105   :  { %v95_v36 = vmul.f32 0.03125, %v93_v33 }
 0x107   :  { %v2943_v39 = vpop.eup %2942  ;;  %v97_v40 = vadd.f32 1e-12, %v95_v36 }
 0x108   :  { %v99_v41 = vmul.f32 %v2943_v39, %v96_v28  ;;  %vm105_vm1 = vweird.f32 %v2943_v39 }
 0x109   :  { %2944 = vrsqrt.f32 %v97_v40  ;;  %vm106_vm3 = vmor %vm104_vm2, %vm105_vm1  ;;  %vm114_vm5 = vweird.f32 %v97_v40 }
 0x10a   :  { %v100_v42 = vmul.f32 %v2943_v39, %v99_v41  ;;  %v2678_v41 = vld [vmem:[%s3980_s8 + $0x30] sm:$0xff] }
 0x10c   :  { %v101_v43 = vmul.f32 0.5, %v100_v42  ;;  %v2677_v42 = vld [vmem:[%s3980_s8 + $0x28] sm:$0xff] }
 0x10e   :  { %v102_v44 = vsub.f32 1.5, %v101_v43  ;;  %v2676_v43 = vld [vmem:[%s3980_s8 + $0x20] sm:$0xff] }
 0x10f   :  { %v2945_v45 = vpop.eup %2944 }
 0x110   :  { %v103_v46 = vmul.f32 %v2943_v39, %v102_v44  ;;  %v109_v47 = vmul.f32 %v2945_v45, %v97_v40  ;;  %vm115_vm4 = vweird.f32 %v2945_v45  ;;  %v2679_v40 = vld [vmem:[%s3980_s8 + $0x38] sm:$0xff] }
 0x111   :  { %vm116_vm6 = vmor %vm114_vm5, %vm115_vm4 }
 0x112   :  { %v107_v49 = vsel %vm106_vm3, %v2943_v39, %v103_v46  ;;  %v110_v50 = vmul.f32 %v2945_v45, %v109_v47 }
 0x113   :  { %v118_v52 = vmul.f32 %v107_v49, %v3174_v6 }
 0x114   :  { %v111_v53 = vmul.f32 0.5, %v110_v50 }
 0x115   :  { %v123_v54 = vmul.f32 %v2902_v48, %v118_v52 }
 0x116   :  { %v112_v55 = vsub.f32 1.5, %v111_v53  ;;  %v2907_v53 = vld [vmem:[%s3977_s5 + $0x1] ss:$0 sm:$0xff] }
 0x117   :  { %v3251_v56 = vadd.f32 %v2903_v51, %v123_v54 }
 0x118   :  { %v113_v57 = vmul.f32 %v2945_v45, %v112_v55 }
 0x119   :  { %2650 = vmatmul.msk.f32.vlgmr.msra.gmra.mxu0 %vm75_vm0, %v3251_v56  ;;  %2652 = vmatmul.msk.f32.vlgmr.msra.gmra.mxu1 %vm75_vm0, %v3251_v56 }
 0x11a   :  { %v117_v58 = vsel %vm116_vm6, %v2945_v45, %v113_v57  ;;  %2654 = vmatmul.msk.f32.vlgmr.msra.gmra.mxu2 %vm75_vm0, %v3251_v56 }
 0x11b   :  { %v119_v59 = vmul.f32 %v117_v58, %v3179_v11  ;;  %v358_v58 = vld [vmem:[%s3982_s10] sm:$0xff] }
 0x11d   :  { %v124_v60 = vmul.f32 %v2902_v48, %v119_v59 }
 0x11f   :  { %v3260_v61 = vadd.f32 %v2903_v51, %v124_v60 }
 0x121   :  { %2651 = vmatmul.msk.f32.gmra.mxu0 %vm75_vm0, %v3260_v61  ;;  %2653 = vmatmul.msk.f32.gmra.mxu1 %vm75_vm0, %v3260_v61 }
 0x122   :  { %2655 = vmatmul.msk.f32.gmra.mxu2 %vm75_vm0, %v3260_v61 }
 0x129   :  { %2667 = vmatmul.msk.f32.vlgmr.msrb.gmra.mxu1 %vm75_vm0, %v3251_v56 }
 0x12a   :  { %2674 = vmatmul.msk.f32.vlgmr.msrb.gmra.mxu2 %vm75_vm0, %v3251_v56 }
 0x131   :  { %2668 = vmatmul.msk.f32.gmra.mxu1 %vm75_vm0, %v3260_v61 }
 0x132   :  { %2675 = vmatmul.msk.f32.gmra.mxu2 %vm75_vm0, %v3260_v61 }
 0x196   :  { %v161_v0 = vpop.f32.mrf.mxu0  ;;  %v192_v1 = vpop.f32.mrf.mxu1 }
 0x197   :  { %v193_v2 = vadd.f32 %v2905_v62, %v192_v1  ;;  %v162_v3 = vadd.f32 %v2904_v63, %v161_v0 }
 0x199   :  { %2656 = vmatpush.xpose.msk.msra.mxu3 %vm229_vm7, %v193_v2 }
 0x19c   :  { %2657 = vmatmul.msk.f32.vlgmr.msra.gmra.mxu3 %vm229_vm7, %v162_v3 }
 0x19d   :  { %v223_v5 = vpop.f32.mrf.mxu2 }
 0x19e   :  { %v195_v6 = vpop.f32.mrf.mxu1  ;;  %v164_v7 = vpop.f32.mrf.mxu0  ;;  %v224_v9 = vadd.f32 %v2906_v4, %v223_v5 }
 0x19f   :  { %v196_v8 = vadd.f32 %v2905_v62, %v195_v6  ;;  %v165_v10 = vadd.f32 %v2904_v63, %v164_v7  ;;  %v2909_v62 = vld [vmem:[%s3981_s9 + $0x1] ss:$0 sm:$0xff] }
 0x1a1   :  { %2658 = vmatpush.xpose.msk.msrb.mxu3 %vm229_vm7, %v196_v8 }
 0x1a4   :  { %2659 = vmatmul.msk.f32.vlgmr.msrb.gmra.mxu3 %vm229_vm7, %v165_v10 }
 0x1a5   :  { %330 = vmatpush.msra.mxu3 %v224_v9  ;;  %v226_v11 = vpop.f32.mrf.mxu2 }
 0x1a6   :  { %v227_v12 = vadd.f32 %v2906_v4, %v226_v11  ;;  %v386_v52 = vpop.f32.mrf.mxu1 }
 0x1a7   :  { %447 = vmatpush.msrb.mxu3 %v2679_v40  ;;  %v387_v54 = vadd.f32 %v2907_v53, %v386_v52  ;;  %v2709_v40 = vld [vmem:[%s3980_s8 + $0x48] sm:$0xff] }
 0x1a8   :  { %353 = vmatpush.msrb.mxu0 %v227_v12 }
 0x1a9   :  { %448 = vmatpush.msrb.mxu3 %v2678_v41  ;;  %v2708_v41 = vld [vmem:[%s3980_s8 + $0x40] sm:$0xff] }
 0x1ab   :  { %449 = vmatpush.msrb.mxu3 %v2677_v42  ;;  %v2734_v42 = vld [vmem:[%s3978_s6 + $0x78] sm:$0xff] }
 0x1ad   :  { %v419_v14 = vpop.f32.mrf.mxu2  ;;  %450 = vmatpush.msrb.mxu3 %v2676_v43 }
 0x1ae   :  { %v420_v15 = vadd.f32 %v2908_v13, %v419_v14  ;;  %v389_v55 = vpop.f32.mrf.mxu1 }
 0x1af   :  { %v390_v57 = vadd.f32 %v2907_v53, %v389_v55 }
 0x1b0   :  { %2683 = vmatpush.xpose.msk.msra.mxu0 %vm229_vm7, %v420_v15 }
 0x1b5   :  { %v422_v48 = vpop.f32.mrf.mxu2 }
 0x1b6   :  { %v423_v51 = vadd.f32 %v2908_v13, %v422_v48  ;;  %v2911_v48 = vld [vmem:[%s3979_s7 + $0x2] ss:$0 sm:$0xff] }
 0x21f   :  { %v253_v20 = vpop.f32.mrf.mxu3 }
 0x220   :  { %v282_v21 = vmul.f32 0.35355338, %v253_v20 }
 0x222   :  { %v288_v22 = vadd.f32 %v3296_v19, %v282_v21 }
 0x224   :  { %v290_v24 = vsel %vm229_vm7, %v288_v22, -inf }
 0x225   :  { %291 = vmax.xlane.f32.xlu0 %v290_v24  ;;  %v2695_v24 = vld [vmem:[%s4001_s26 + $0x48] sm:$0xff] }
 0x227   :  { %v279_v26 = vpop.f32.mrf.mxu3 }
 0x228   :  { %v283_v27 = vmul.f32 0.35355338, %v279_v26  ;;  %v2694_v26 = vld [vmem:[%s4001_s26 + $0x40] sm:$0xff] }
 0x22a   :  { %v289_v28 = vadd.f32 %v3300_v25, %v283_v27  ;;  %v2704_v27 = vld [vmem:[%s3978_s6 + $0x58] sm:$0xff] }
 0x22c   :  { %v293_v29 = vsel %vm229_vm7, %v289_v28, -inf }
 0x22d   :  { %294 = vmax.xlane.f32.xlu2 %v293_v29  ;;  %v2702_v29 = vld [vmem:[%s3978_s6 + $0x48] sm:$0xff] }
 0x298   :  { %v292_v30 = vpop.xlane.xlu0 %291 }
 0x299   :  { %v296_v31 = vsub.f32 %v288_v22, %v292_v30  ;;  %v2697_v22 = vld [vmem:[%s4001_s26 + $0x58] sm:$0xff]  ;;  %v2701_v30 = vld [vmem:[%s3978_s6 + $0x40] sm:$0xff] }
 0x29b   :  { %v298_v32 = vmul.f32 1.442695, %v296_v31 }
 0x29d   :  { %2946 = vpow2.f32 %v298_v32 }
 0x2a0   :  { %v295_v33 = vpop.xlane.xlu2 %294 }
 0x2a1   :  { %v297_v34 = vsub.f32 %v289_v28, %v295_v33  ;;  %v2703_v28 = vld [vmem:[%s3978_s6 + $0x50] sm:$0xff] }
 0x2a3   :  { %v2947_v35 = vpop.eup %2946  ;;  %v300_v36 = vmul.f32 1.442695, %v297_v34 }
 0x2a4   :  { %v302_v37 = vsel %vm229_vm7, %v2947_v35, 0.0 }
 0x2a5   :  { %2948 = vpow2.f32 %v300_v36  ;;  %303 = vadd.xlane.f32.xlu1 %v302_v37  ;;  %v2689_v37 = vld [vmem:[%s3982_s10 + $0x8] sm:$0xff] }
 0x2ab   :  { %v2949_v38 = vpop.eup %2948 }
 0x2ac   :  { %v305_v39 = vsel %vm229_vm7, %v2949_v38, 0.0 }
 0x2ad   :  { %306 = vadd.xlane.f32.xlu2 %v305_v39  ;;  %v2710_v39 = vld [vmem:[%s3980_s8 + $0x50] sm:$0xff] }
 0x318   :  { %v304_v44 = vpop.xlane.xlu1 %303 }
 0x319   :  { %2950 = vrcp.f32 %v304_v44  ;;  %v2733_v44 = vld [vmem:[%s3978_s6 + $0x70] sm:$0xff] }
 0x31f   :  { %v2951_v45 = vpop.eup %2950 }
 0x320   :  { %v310_v46 = vmul.f32 %v2951_v45, %v2947_v35  ;;  %v307_v47 = vpop.xlane.xlu2 %306  ;;  %v2732_v45 = vld [vmem:[%s3978_s6 + $0x68] sm:$0xff] }
 0x321   :  { %2952 = vrcp.f32 %v307_v47 }
 0x322   :  { %2660 = vmatmul.msk.f32.vlgmr.msra.gmra.mxu3 %vm229_vm7, %v310_v46  ;;  %v2731_v46 = vld [vmem:[%s3978_s6 + $0x60] sm:$0xff] }
 0x323   :  { %605 = vmatpush.msra.mxu3 %v2689_v37  ;;  %v2738_v37 = vld [vmem:[%s3980_s8 + $0x60] sm:$0xff] }
 0x327   :  { %v2953_v49 = vpop.eup %2952 }
 0x328   :  { %v311_v50 = vmul.f32 %v2953_v49, %v2949_v38  ;;  %v2711_v38 = vld [vmem:[%s3980_s8 + $0x58] sm:$0xff] }
 0x32a   :  { %2661 = vmatmul.msk.f32.vlgmr.msrb.gmra.mxu0 %vm229_vm7, %v311_v50  ;;  %2681 = vmatmul.msk.f32.vlgmr.msrb.gmra.mxu3 %vm75_vm0, %v3251_v56  ;;  %v2910_v50 = vld [vmem:[%s3977_s5 + $0x2] ss:$0 sm:$0xff] }
 0x32b   :  { %2685 = vmatpush.xpose.msk.msrb.mxu0 %vm229_vm7, %v423_v51  ;;  %730 = vmatpush.msrb.mxu3 %v2711_v38 }
 0x32d   :  { %731 = vmatpush.msrb.mxu3 %v2710_v39 }
 0x32f   :  { %732 = vmatpush.msrb.mxu3 %v2709_v40 }
 0x331   :  { %733 = vmatpush.msrb.mxu3 %v2708_v41 }
 0x332   :  { %2682 = vmatmul.msk.f32.gmra.mxu3 %vm75_vm0, %v3260_v61  ;;  %2684 = vmatmul.msk.f32.vlgmr.msra.gmra.mxu0 %vm229_vm7, %v387_v54 }
 0x333   :  { %634 = vmatpush.msra.mxu0 %v358_v58 }
 0x33a   :  { %2686 = vmatmul.msk.f32.vlgmr.msrb.gmra.mxu0 %vm229_vm7, %v390_v57 }
 0x3a5   :  { %v332_v59 = vpop.f32.mrf.mxu3 }
 0x3a6   :  { %2692 = vmatmul.msk.f32.vlgmr.msra.gmra.mxu0 %vm229_vm7, %v332_v59 }
 0x3a7   :  { %v355_v60 = vpop.f32.mrf.mxu0 }
 0x3ad   :  { %v452_v63 = vpop.f32.mrf.mxu3 }
 0x3ae   :  { %v453_v0 = vadd.f32 %v2909_v62, %v452_v63  ;;  %2693 = vmatmul.msk.f32.gmra.mxu0 %vm229_vm7, %v355_v60 }
 0x3af   :  { %v481_v1 = vpop.f32.mrf.mxu0 }
 0x3b0   :  { %v510_v2 = vmul.f32 0.35355338, %v481_v1  ;;  %554 = vmatpush.msra.mxu1 %v453_v0 }
 0x3b2   :  { %v512_v3 = vadd.f32 %v510_v2, %v3296_v19  ;;  %664 = vmatpush.msrb.mxu1 %v2697_v22  ;;  %v2912_v2 = vld [vmem:[%s3981_s9 + $0x2] ss:$0 sm:$0xff] }
 0x3b4   :  { %v514_v4 = vsel %vm229_vm7, %v512_v3, -inf  ;;  %665 = vmatpush.msrb.mxu1 %v2696_v23 }
 0x3b5   :  { %v455_v5 = vpop.f32.mrf.mxu3  ;;  %515 = vmax.xlane.f32.xlu0 %v514_v4 }
 0x3b6   :  { %v456_v6 = vadd.f32 %v2909_v62, %v455_v5  ;;  %666 = vmatpush.msrb.mxu1 %v2695_v24  ;;  %v2721_v62 = vld [vmem:[%s3982_s10 + $0x10] sm:$0xff] }
 0x3b7   :  { %v507_v7 = vpop.f32.mrf.mxu0 }
 0x3b8   :  { %v511_v8 = vmul.f32 0.35355338, %v507_v7  ;;  %577 = vmatpush.msra.mxu2 %v456_v6  ;;  %667 = vmatpush.msrb.mxu1 %v2694_v26 }
 0x3ba   :  { %v513_v9 = vadd.f32 %v511_v8, %v3300_v25  ;;  %697 = vmatpush.msrb.mxu2 %v2704_v27 }
 0x3bc   :  { %v517_v10 = vsel %vm229_vm7, %v513_v9, -inf  ;;  %698 = vmatpush.msrb.mxu2 %v2703_v28 }
 0x3bd   :  { %518 = vmax.xlane.f32.xlu2 %v517_v10 }
 0x3be   :  { %699 = vmatpush.msrb.mxu2 %v2702_v29 }
 0x3c0   :  { %700 = vmatpush.msrb.mxu2 %v2701_v30  ;;  %v2727_v30 = vld [vmem:[%s4001_s26 + $0x78] sm:$0xff] }
 0x423   :  { %v3425_v59 = vpop.f32.mrf.mxu0 }
 0x428   :  { %v516_v11 = vpop.xlane.xlu0 %515 }
 0x429   :  { %v520_v12 = vsub.f32 %v512_v3, %v516_v11 }
 0x42b   :  { %v522_v13 = vmul.f32 1.442695, %v520_v12  ;;  %v639_v63 = vpop.f32.mrf.mxu0 }
 0x42d   :  { %2954 = vpow2.f32 %v522_v13 }
 0x430   :  { %v519_v14 = vpop.xlane.xlu2 %518 }
 0x431   :  { %v521_v15 = vsub.f32 %v513_v9, %v519_v14 }
 0x433   :  { %v2955_v16 = vpop.eup %2954  ;;  %v524_v17 = vmul.f32 1.442695, %v521_v15  ;;  %v2913_v15 = vld [vmem:[%s3979_s7 + $0x3] ss:$0 sm:$0xff] }
 0x434   :  { %v526_v18 = vsel %vm229_vm7, %v2955_v16, 0.0 }
 0x435   :  { %2956 = vpow2.f32 %v524_v17  ;;  %527 = vadd.xlane.f32.xlu2 %v526_v18 }
 0x43b   :  { %v2957_v20 = vpop.eup %2956 }
 0x43c   :  { %v529_v21 = vsel %vm229_vm7, %v2957_v20, 0.0 }
 0x43d   :  { %530 = vadd.xlane.f32.xlu1 %v529_v21 }
 0x4a8   :  { %v528_v31 = vpop.xlane.xlu2 %527 }
 0x4a9   :  { %2958 = vrcp.f32 %v528_v31  ;;  %v2726_v31 = vld [vmem:[%s4001_s26 + $0x70] sm:$0xff] }
 0x4af   :  { %v2959_v32 = vpop.eup %2958 }
 0x4b0   :  { %v534_v33 = vmul.f32 %v2959_v32, %v2955_v16  ;;  %v531_v34 = vpop.xlane.xlu1 %530  ;;  %v2725_v32 = vld [vmem:[%s4001_s26 + $0x68] sm:$0xff] }
 0x4b1   :  { %2960 = vrcp.f32 %v531_v34  ;;  %v2741_v34 = vld [vmem:[%s3980_s8 + $0x78] sm:$0xff] }
 0x4b2   :  { %2687 = vmatmul.msk.f32.vlgmr.msra.gmra.mxu1 %vm229_vm7, %v534_v33  ;;  %v2724_v33 = vld [vmem:[%s4001_s26 + $0x60] sm:$0xff] }
 0x4b7   :  { %v2961_v35 = vpop.eup %2960 }
 0x4b8   :  { %v535_v36 = vmul.f32 %v2961_v35, %v2957_v20  ;;  %v2740_v35 = vld [vmem:[%s3980_s8 + $0x70] sm:$0xff] }
 0x4ba   :  { %2688 = vmatmul.msk.f32.vlgmr.msra.gmra.mxu2 %vm229_vm7, %v535_v36  ;;  %2699 = vmatmul.msk.f32.vlgmr.msrb.gmra.mxu1 %vm75_vm0, %v3251_v56  ;;  %v2739_v36 = vld [vmem:[%s3980_s8 + $0x68] sm:$0xff] }
 0x4c2   :  { %2700 = vmatmul.msk.f32.gmra.mxu1 %vm75_vm0, %v3260_v61  ;;  %2706 = vmatmul.msk.f32.vlgmr.msrb.gmra.mxu2 %vm75_vm0, %v3251_v56 }
 0x4ca   :  { %2707 = vmatmul.msk.f32.gmra.mxu2 %vm75_vm0, %v3260_v61 }
 0x52f   :  { %v556_v43 = vpop.f32.mrf.mxu1 }
 0x530   :  { %2690 = vmatmul.msk.f32.vlgmr.msra.gmra.mxu3 %vm229_vm7, %v556_v43 }
 0x531   :  { %953 = vmatpush.msra.mxu3 %v2734_v42 }
 0x533   :  { %954 = vmatpush.msra.mxu3 %v2733_v44 }
 0x535   :  { %955 = vmatpush.msra.mxu3 %v2732_v45 }
 0x537   :  { %956 = vmatpush.msra.mxu3 %v2731_v46  ;;  %v669_v49 = vpop.f32.mrf.mxu1 }
 0x538   :  { %v670_v53 = vadd.f32 %v2910_v50, %v669_v49 }
 0x53d   :  { %v579_v47 = vpop.f32.mrf.mxu2 }
 0x53e   :  { %2691 = vmatmul.msk.f32.gmra.mxu3 %vm229_vm7, %v579_v47 }
 0x53f   :  { %v672_v55 = vpop.f32.mrf.mxu1 }
 0x540   :  { %v673_v58 = vadd.f32 %v2910_v50, %v672_v55 }
 0x545   :  { %v702_v51 = vpop.f32.mrf.mxu2 }
 0x546   :  { %v703_v52 = vadd.f32 %v2911_v48, %v702_v51  ;;  %2713 = vmatmul.msk.f32.vlgmr.msrb.gmra.mxu3 %vm75_vm0, %v3251_v56  ;;  %v2914_v51 = vld [vmem:[%s3977_s5 + $0x3] ss:$0 sm:$0xff] }
 0x548   :  { %2715 = vmatpush.xpose.msk.msrb.mxu0 %vm229_vm7, %v703_v52 }
 0x54b   :  { %2716 = vmatmul.msk.f32.vlgmr.msrb.gmra.mxu0 %vm229_vm7, %v670_v53 }
 0x54d   :  { %v705_v54 = vpop.f32.mrf.mxu2 }
 0x54e   :  { %v706_v57 = vadd.f32 %v2911_v48, %v705_v54  ;;  %2714 = vmatmul.msk.f32.gmra.mxu3 %vm75_vm0, %v3260_v61  ;;  %v2915_v48 = vld [vmem:[%s3981_s9 + $0x3] ss:$0 sm:$0xff] }
 0x550   :  { %2717 = vmatpush.xpose.msk.msra.mxu1 %vm229_vm7, %v706_v57 }
 0x553   :  { %2718 = vmatmul.msk.f32.vlgmr.msra.gmra.mxu1 %vm229_vm7, %v673_v58 }
 0x554   :  { %888 = vmatpush.msrb.mxu1 %v2721_v62 }
 0x556   :  { %2736 = vmatmul.msk.f32.vlgmr.msra.gmra.mxu3 %vm75_vm0, %v3251_v56 }
 0x55e   :  { %2737 = vmatmul.msk.f32.gmra.mxu3 %vm75_vm0, %v3260_v61 }
 0x5b3   :  { %v3427_v60 = vpop.f32.mrf.mxu3 }
 0x5b4   :  { %v637_v62 = vadd.f32 %v3425_v59, %v3427_v60 }
 0x5c1   :  { %v610_v0 = vpop.f32.mrf.mxu3 }
 0x5c2   :  { %v3432_v1 = vadd.f32 %v639_v63, %v610_v0 }
 0x5c8   :  { %v764_v3 = vpop.f32.mrf.mxu0 }
 0x5c9   :  { %v793_v4 = vmul.f32 0.35355338, %v764_v3  ;;  %v735_v5 = vpop.f32.mrf.mxu3 }
 0x5ca   :  { %v736_v6 = vadd.f32 %v2912_v2, %v735_v5 }
 0x5cb   :  { %v795_v7 = vadd.f32 %v793_v4, %v3296_v19 }
 0x5cc   :  { %837 = vmatpush.msra.mxu2 %v736_v6 }
 0x5cd   :  { %v797_v8 = vsel %vm229_vm7, %v795_v7, -inf }
 0x5ce   :  { %798 = vmax.xlane.f32.xlu0 %v797_v8  ;;  %920 = vmatpush.msrb.mxu2 %v2727_v30  ;;  %v2916_v30 = vld [vmem:[%s3983_s11] ss:$0 sm:$0xff] }
 0x5d0   :  { %v790_v9 = vpop.f32.mrf.mxu1  ;;  %921 = vmatpush.msrb.mxu2 %v2726_v31 }
 0x5d1   :  { %v794_v10 = vmul.f32 0.35355338, %v790_v9  ;;  %v738_v11 = vpop.f32.mrf.mxu3 }
 0x5d2   :  { %v739_v12 = vadd.f32 %v2912_v2, %v738_v11  ;;  %922 = vmatpush.msrb.mxu2 %v2725_v32 }
 0x5d3   :  { %v796_v13 = vadd.f32 %v794_v10, %v3300_v25 }
 0x5d4   :  { %860 = vmatpush.msra.mxu0 %v739_v12  ;;  %923 = vmatpush.msrb.mxu2 %v2724_v33 }
 0x5d5   :  { %v800_v14 = vsel %vm229_vm7, %v796_v13, -inf }
 0x5d6   :  { %801 = vmax.xlane.f32.xlu1 %v800_v14  ;;  %986 = vmatpush.msrb.mxu0 %v2741_v34 }
 0x5d8   :  { %987 = vmatpush.msrb.mxu0 %v2740_v35 }
 0x5d9   :  { %v958_v16 = vpop.f32.mrf.mxu3 }
 0x5da   :  { %v959_v17 = vadd.f32 %v2913_v15, %v958_v16  ;;  %988 = vmatpush.msrb.mxu0 %v2739_v36 }
 0x5dc   :  { %2745 = vmatpush.xpose.msk.msra.mxu1 %vm229_vm7, %v959_v17  ;;  %989 = vmatpush.msrb.mxu0 %v2738_v37 }
 0x5e1   :  { %v961_v39 = vpop.f32.mrf.mxu3 }
 0x5e2   :  { %v962_v43 = vadd.f32 %v2913_v15, %v961_v39 }
 0x641   :  { %v799_v18 = vpop.xlane.xlu0 %798 }
 0x642   :  { %v803_v20 = vsub.f32 %v795_v7, %v799_v18 }
 0x644   :  { %v805_v21 = vmul.f32 1.442695, %v803_v20 }
 0x646   :  { %2962 = vpow2.f32 %v805_v21 }
 0x649   :  { %v802_v22 = vpop.xlane.xlu1 %801 }
 0x64a   :  { %v804_v23 = vsub.f32 %v796_v13, %v802_v22 }
 0x64c   :  { %v2963_v24 = vpop.eup %2962  ;;  %v807_v26 = vmul.f32 1.442695, %v804_v23 }
 0x64d   :  { %v809_v27 = vsel %vm229_vm7, %v2963_v24, 0.0 }
 0x64e   :  { %2964 = vpow2.f32 %v807_v26  ;;  %810 = vadd.xlane.f32.xlu2 %v809_v27  ;;  %v2751_v27 = vld [vmem:[%s3982_s10 + $0x18] sm:$0xff] }
 0x654   :  { %v2965_v28 = vpop.eup %2964 }
 0x655   :  { %v812_v29 = vsel %vm229_vm7, %v2965_v28, 0.0 }
 0x656   :  { %813 = vadd.xlane.f32.xlu0 %v812_v29 }
 0x6c1   :  { %v811_v38 = vpop.xlane.xlu2 %810 }
 0x6c2   :  { %2966 = vrcp.f32 %v811_v38 }
 0x6c8   :  { %v2967_v40 = vpop.eup %2966 }
 0x6c9   :  { %v817_v41 = vmul.f32 %v2967_v40, %v2963_v24  ;;  %v814_v42 = vpop.xlane.xlu0 %813 }
 0x6ca   :  { %2968 = vrcp.f32 %v814_v42 }
 0x6cb   :  { %2719 = vmatmul.msk.f32.vlgmr.msra.gmra.mxu2 %vm229_vm7, %v817_v41 }
 0x6cc   :  { %2747 = vmatpush.xpose.msk.msra.mxu2 %vm229_vm7, %v962_v43 }
 0x6d0   :  { %v2969_v44 = vpop.eup %2968 }
 0x6d1   :  { %v818_v45 = vmul.f32 %v2969_v44, %v2965_v28 }
 0x6d3   :  { %2720 = vmatmul.msk.f32.vlgmr.msra.gmra.mxu0 %vm229_vm7, %v818_v45  ;;  %2729 = vmatmul.msk.f32.vlgmr.msrb.gmra.mxu2 %vm75_vm0, %v3251_v56 }
 0x6db   :  { %2730 = vmatmul.msk.f32.gmra.mxu2 %vm75_vm0, %v3260_v61  ;;  %2743 = vmatmul.msk.f32.vlgmr.msrb.gmra.mxu0 %vm75_vm0, %v3251_v56 }
 0x6e3   :  { %2744 = vmatmul.msk.f32.gmra.mxu0 %vm75_vm0, %v3260_v61 }
 0x74e   :  { %v839_v46 = vpop.f32.mrf.mxu2 }
 0x74f   :  { %2722 = vmatmul.msk.f32.vlgmr.msrb.gmra.mxu1 %vm229_vm7, %v839_v46 }
 0x750   :  { %v862_v47 = vpop.f32.mrf.mxu0  ;;  %1144 = vmatpush.msrb.mxu1 %v2751_v27  ;;  %v1274_v27 = vld [vmem:[%s3988_s16 + $0x8] sm:$0xff] }
 0x756   :  { %v925_v49 = vpop.f32.mrf.mxu2 }
 0x757   :  { %2723 = vmatmul.msk.f32.gmra.mxu1 %vm229_vm7, %v862_v47  ;;  %v926_v53 = vadd.f32 %v2914_v51, %v925_v49 }
 0x758   :  { %v991_v50 = vpop.f32.mrf.mxu0 }
 0x759   :  { %v992_v52 = vadd.f32 %v2915_v48, %v991_v50  ;;  %v1220_v50 = vld [vmem:[%s3986_s14 + $0x10] sm:$0xff] }
 0x75b   :  { %1093 = vmatpush.msrb.mxu3 %v992_v52  ;;  %v1218_v52 = vld [vmem:[%s3986_s14] sm:$0xff] }
 0x75e   :  { %v928_v54 = vpop.f32.mrf.mxu2 }
 0x75f   :  { %v929_v55 = vadd.f32 %v2914_v51, %v928_v54  ;;  %2746 = vmatmul.msk.f32.vlgmr.msra.gmra.mxu1 %vm229_vm7, %v926_v53  ;;  %v1219_v51 = vld [vmem:[%s3986_s14 + $0x8] sm:$0xff] }
 0x760   :  { %v994_v57 = vpop.f32.mrf.mxu0 }
 0x761   :  { %v995_v58 = vadd.f32 %v2915_v48, %v994_v57  ;;  %2748 = vmatmul.msk.f32.vlgmr.msra.gmra.mxu2 %vm229_vm7, %v929_v55 }
 0x763   :  { %1116 = vmatpush.msra.mxu0 %v995_v58 }
 0x7cc   :  { %v890_v63 = vpop.f32.mrf.mxu1 }
 0x7cd   :  { %v896_v0 = vadd.f32 %v890_v63, %v637_v62 }
 0x7d4   :  { %v893_v2 = vpop.f32.mrf.mxu1 }
 0x7d5   :  { %v897_v3 = vadd.f32 %v893_v2, %v3432_v1 }
 0x7dc   :  { %v1020_v4 = vpop.f32.mrf.mxu1 }
 0x7dd   :  { %v1049_v5 = vmul.f32 0.35355338, %v1020_v4 }
 0x7df   :  { %v1051_v6 = vadd.f32 %v1049_v5, %v3296_v19 }
 0x7e1   :  { %v1053_v7 = vsel %vm229_vm7, %v1051_v6, -inf }
 0x7e2   :  { %1054 = vmax.xlane.f32.xlu1 %v1053_v7 }
 0x7e4   :  { %v1046_v8 = vpop.f32.mrf.mxu2 }
 0x7e5   :  { %v1050_v9 = vmul.f32 0.35355338, %v1046_v8  ;;  %v2917_v8 = vld [vmem:[%s3984_s12] ss:$0 sm:$0xff] }
 0x7e7   :  { %v1052_v10 = vadd.f32 %v1050_v9, %v3300_v25 }
 0x7e9   :  { %v1056_v11 = vsel %vm229_vm7, %v1052_v10, -inf }
 0x7ea   :  { %1057 = vmax.xlane.f32.xlu2 %v1056_v11 }
 0x855   :  { %v1055_v59 = vpop.xlane.xlu1 %1054 }
 0x856   :  { %v1059_v60 = vsub.f32 %v1051_v6, %v1055_v59  ;;  %v2918_v59 = vld [vmem:[%s3985_s13] ss:$0 sm:$0xff] }
 0x858   :  { %v1061_v12 = vmul.f32 1.442695, %v1059_v60 }
 0x85a   :  { %2970 = vpow2.f32 %v1061_v12 }
 0x85d   :  { %v1058_v13 = vpop.xlane.xlu2 %1057 }
 0x85e   :  { %v1060_v1 = vsub.f32 %v1052_v10, %v1058_v13 }
 0x860   :  { %v2971_v14 = vpop.eup %2970  ;;  %v1063_v15 = vmul.f32 1.442695, %v1060_v1 }
 0x861   :  { %v1065_v16 = vsel %vm229_vm7, %v2971_v14, 0.0 }
 0x862   :  { %2972 = vpow2.f32 %v1063_v15  ;;  %1066 = vadd.xlane.f32.xlu0 %v1065_v16 }
 0x868   :  { %v2973_v17 = vpop.eup %2972 }
 0x869   :  { %v1068_v18 = vsel %vm229_vm7, %v2973_v17, 0.0 }
 0x86a   :  { %1069 = vadd.xlane.f32.xlu1 %v1068_v18 }
 0x8d5   :  { %v1067_v20 = vpop.xlane.xlu0 %1066 }
 0x8d6   :  { %2974 = vrcp.f32 %v1067_v20  ;;  %v1280_v20 = vld [vmem:[%s3988_s16 + $0x38] sm:$0xff] }
 0x8d7   :  { %1300 = vmatpush.msra.mxu3 %v1280_v20 }
 0x8dc   :  { %v2975_v21 = vpop.eup %2974 }
 0x8dd   :  { %v1073_v22 = vmul.f32 %v2975_v21, %v2971_v14  ;;  %v1070_v23 = vpop.xlane.xlu1 %1069  ;;  %v1279_v21 = vld [vmem:[%s3988_s16 + $0x30] sm:$0xff] }
 0x8de   :  { %2976 = vrcp.f32 %v1070_v23  ;;  %1301 = vmatpush.msra.mxu3 %v1279_v21  ;;  %v1277_v23 = vld [vmem:[%s3988_s16 + $0x20] sm:$0xff] }
 0x8df   :  { %2749 = vmatmul.msk.f32.vlgmr.msrb.gmra.mxu3 %vm229_vm7, %v1073_v22  ;;  %v1278_v22 = vld [vmem:[%s3988_s16 + $0x28] sm:$0xff] }
 0x8e0   :  { %1302 = vmatpush.msra.mxu3 %v1278_v22 }
 0x8e2   :  { %1303 = vmatpush.msra.mxu3 %v1277_v23  ;;  %v2789_v23 = vld [vmem:[%s4001_s26 + $0xb8] sm:$0xff] }
 0x8e4   :  { %v2977_v24 = vpop.eup %2976 }
 0x8e5   :  { %v1074_v26 = vmul.f32 %v2977_v24, %v2973_v17  ;;  %v1276_v24 = vld [vmem:[%s3988_s16 + $0x18] sm:$0xff] }
 0x8e6   :  { %1304 = vmatpush.msra.mxu3 %v1276_v24  ;;  %v2788_v24 = vld [vmem:[%s4001_s26 + $0xb0] sm:$0xff] }
 0x8e7   :  { %2750 = vmatmul.msk.f32.vlgmr.msra.gmra.mxu0 %vm229_vm7, %v1074_v26  ;;  %v1275_v26 = vld [vmem:[%s3988_s16 + $0x10] sm:$0xff] }
 0x8e8   :  { %1305 = vmatpush.msra.mxu3 %v1275_v26 }
 0x8ea   :  { %1306 = vmatpush.msra.mxu3 %v1274_v27  ;;  %v2787_v27 = vld [vmem:[%s4001_s26 + $0xa8] sm:$0xff] }
 0x962   :  { %v1095_v28 = vpop.f32.mrf.mxu3 }
 0x963   :  { %2752 = vmatmul.msk.f32.vlgmr.msrb.gmra.mxu1 %vm229_vm7, %v1095_v28  ;;  %v1273_v28 = vld [vmem:[%s3988_s16] sm:$0xff] }
 0x964   :  { %v1118_v29 = vpop.f32.mrf.mxu0  ;;  %1307 = vmatpush.msra.mxu3 %v1273_v28 }
 0x96b   :  { %2753 = vmatmul.msk.f32.gmra.mxu1 %vm229_vm7, %v1118_v29  ;;  %v2919_v29 = vld [vmem:[%s3987_s15] ss:$0 sm:$0xff] }
 0x9e0   :  { %v1146_v31 = vpop.f32.mrf.mxu1 }
 0x9e1   :  { %v1152_v32 = vadd.f32 %v1146_v31, %v896_v0 }
 0x9e3   :  { %v1158_v33 = vadd.f32 %v2916_v30, %v1152_v32 }
 0x9e5   :  { %v1160_v34 = vadd.f32 %v1158_v33, %v3251_v56 }
 0x9e7   :  { %v1164_v35 = vsel %vm75_vm0, %v1160_v34, 0.0 }
 0x9e8   :  { %1165 = vadd.xlane.f32.xlu2 %v1164_v35  ;;  %v1149_v36 = vpop.f32.mrf.mxu1 }
 0x9e9   :  { %v1153_v37 = vadd.f32 %v1149_v36, %v897_v3 }
 0x9eb   :  { %v1159_v38 = vadd.f32 %v2916_v30, %v1153_v37 }
 0x9ed   :  { %v1161_v39 = vadd.f32 %v1159_v38, %v3260_v61  ;;  %v1221_v61 = vld [vmem:[%s3986_s14 + $0x18] sm:$0xff] }
 0x9ee   :  { %1244 = vmatpush.msrb.mxu2 %v1221_v61 }
 0x9ef   :  { %v1167_v40 = vsel %vm75_vm0, %v1161_v39, 0.0 }
 0x9f0   :  { %1168 = vadd.xlane.f32.xlu0 %v1167_v40  ;;  %1245 = vmatpush.msrb.mxu2 %v1220_v50  ;;  %v2920_v50 = vld [vmem:[%s3989_s17] ss:$0 sm:$0xff] }
 0x9f2   :  { %1246 = vmatpush.msrb.mxu2 %v1219_v51 }
 0x9f4   :  { %1247 = vmatpush.msrb.mxu2 %v1218_v52 }
 0xa5b   :  { %v1166_v41 = vpop.xlane.xlu2 %1165 }
 0xa5c   :  { %v1170_v42 = vmul.f32 0.03125, %v1166_v41 }
 0xa5e   :  { %v1172_v43 = vsub.f32 %v1160_v34, %v1170_v42 }
 0xa60   :  { %v1174_v44 = vmul.f32 %v1172_v43, %v1172_v43 }
 0xa62   :  { %v1176_v45 = vsel %vm75_vm0, %v1174_v44, 0.0 }
 0xa63   :  { %1177 = vadd.xlane.f32.xlu1 %v1176_v45  ;;  %v1169_v46 = vpop.xlane.xlu0 %1168 }
 0xa64   :  { %v1171_v56 = vmul.f32 0.03125, %v1169_v46 }
 0xa66   :  { %v1173_v47 = vsub.f32 %v1161_v39, %v1171_v56 }
 0xa68   :  { %v1175_v48 = vmul.f32 %v1173_v47, %v1173_v47 }
 0xa6a   :  { %v1179_v49 = vsel %vm75_vm0, %v1175_v48, 0.0 }
 0xa6b   :  { %1180 = vadd.xlane.f32.xlu2 %v1179_v49 }
 0xad6   :  { %v1178_v53 = vpop.xlane.xlu1 %1177 }
 0xad7   :  { %v1182_v54 = vmul.f32 0.03125, %v1178_v53 }
 0xad9   :  { %v1184_v55 = vadd.f32 1e-12, %v1182_v54 }
 0xadb   :  { %2978 = vrsqrt.f32 %v1184_v55  ;;  %vm1192_vm9 = vweird.f32 %v1184_v55 }
 0xade   :  { %v1181_v57 = vpop.xlane.xlu2 %1180 }
 0xadf   :  { %v1183_v58 = vmul.f32 0.03125, %v1181_v57 }
 0xae1   :  { %v2979_v62 = vpop.eup %2978  ;;  %v1185_v63 = vadd.f32 1e-12, %v1183_v58 }
 0xae2   :  { %v1187_v0 = vmul.f32 %v2979_v62, %v1184_v55  ;;  %vm1193_vm8 = vweird.f32 %v2979_v62 }
 0xae3   :  { %2980 = vrsqrt.f32 %v1185_v63  ;;  %vm1194_vm10 = vmor %vm1192_vm9, %vm1193_vm8  ;;  %vm1202_vm12 = vweird.f32 %v1185_v63 }
 0xae4   :  { %v1188_v2 = vmul.f32 %v2979_v62, %v1187_v0 }
 0xae6   :  { %v1189_v3 = vmul.f32 0.5, %v1188_v2 }
 0xae8   :  { %v1190_v4 = vsub.f32 1.5, %v1189_v3 }
 0xae9   :  { %v2981_v5 = vpop.eup %2980 }
 0xaea   :  { %v1191_v6 = vmul.f32 %v2979_v62, %v1190_v4  ;;  %v1197_v7 = vmul.f32 %v2981_v5, %v1185_v63  ;;  %vm1203_vm11 = vweird.f32 %v2981_v5 }
 0xaeb   :  { %vm1204_vm13 = vmor %vm1202_vm12, %vm1203_vm11 }
 0xaec   :  { %v1195_v9 = vsel %vm1194_vm10, %v2979_v62, %v1191_v6  ;;  %v1198_v10 = vmul.f32 %v2981_v5, %v1197_v7 }
 0xaed   :  { %v1206_v11 = vmul.f32 %v1195_v9, %v1172_v43 }
 0xaee   :  { %v1199_v60 = vmul.f32 0.5, %v1198_v10  ;;  %v2761_v10 = vld [vmem:[%s4001_s26 + $0x98] sm:$0xff] }
 0xaef   :  { %v1211_v12 = vmul.f32 %v2917_v8, %v1206_v11  ;;  %v2768_v11 = vld [vmem:[%s3978_s6 + $0x98] sm:$0xff]  ;;  %1401 = vmatpush.msrb.mxu0 %v2761_v10  ;;  %v2793_v10 = vld [vmem:[%s3978_s6 + $0xa0] sm:$0xff] }
 0xaf0   :  { %v1200_v13 = vsub.f32 1.5, %v1199_v60  ;;  %1434 = vmatpush.msra.mxu1 %v2768_v11  ;;  %v2760_v60 = vld [vmem:[%s4001_s26 + $0x90] sm:$0xff] }
 0xaf1   :  { %v1216_v1 = vadd.f32 %v2918_v59, %v1211_v12  ;;  %v2767_v12 = vld [vmem:[%s3978_s6 + $0x90] sm:$0xff]  ;;  %1402 = vmatpush.msrb.mxu0 %v2760_v60 }
 0xaf2   :  { %v1201_v14 = vmul.f32 %v2981_v5, %v1200_v13  ;;  %v2774_v13 = vld [vmem:[%s3980_s8 + $0x90] sm:$0xff]  ;;  %1435 = vmatpush.msra.mxu1 %v2767_v12 }
 0xaf3   :  { %2754 = vmatmul.msk.f32.vlgmr.msrb.gmra.mxu2 %vm75_vm0, %v1216_v1 }
 0xaf4   :  { %v1205_v15 = vsel %vm1204_vm13, %v2981_v5, %v1201_v14  ;;  %v2766_v14 = vld [vmem:[%s3978_s6 + $0x88] sm:$0xff] }
 0xaf5   :  { %v1207_v16 = vmul.f32 %v1205_v15, %v1173_v47  ;;  %v2773_v15 = vld [vmem:[%s3980_s8 + $0x88] sm:$0xff]  ;;  %1436 = vmatpush.msra.mxu1 %v2766_v14 }
 0xaf7   :  { %v1212_v17 = vmul.f32 %v2917_v8, %v1207_v16  ;;  %v2758_v16 = vld [vmem:[%s4001_s26 + $0x80] sm:$0xff] }
 0xaf9   :  { %v1217_v18 = vadd.f32 %v2918_v59, %v1212_v17  ;;  %v2775_v59 = vld [vmem:[%s3980_s8 + $0x98] sm:$0xff]  ;;  %v2765_v17 = vld [vmem:[%s3978_s6 + $0x80] sm:$0xff] }
 0xafa   :  { %1467 = vmatpush.msra.mxu2 %v2775_v59  ;;  %1437 = vmatpush.msra.mxu1 %v2765_v17 }
 0xafb   :  { %2755 = vmatmul.msk.f32.gmra.mxu2 %vm75_vm0, %v1217_v18 }
 0xafc   :  { %1468 = vmatpush.msra.mxu2 %v2774_v13 }
 0xafe   :  { %1469 = vmatpush.msra.mxu2 %v2773_v15 }
 0xb76   :  { %v1249_v30 = vpop.f32.mrf.mxu2 }
 0xb77   :  { %v1250_v31 = vadd.f32 %v2919_v29, %v1249_v30 }
 0xb79   :  { %v1257_v32 = vmul.f32 0.044715, %v1250_v31  ;;  %v1255_v45 = vmul.f32 0.5, %v1250_v31 }
 0xb7b   :  { %v1259_v33 = vmul.f32 %v1257_v32, %v1250_v31 }
 0xb7d   :  { %v1261_v34 = vmul.f32 %v1259_v33, %v1250_v31 }
 0xb7e   :  { %v1252_v35 = vpop.f32.mrf.mxu2 }
 0xb7f   :  { %v1263_v36 = vadd.f32 %v1261_v34, %v1250_v31  ;;  %v1253_v37 = vadd.f32 %v2919_v29, %v1252_v35  ;;  %v2786_v29 = vld [vmem:[%s4001_s26 + $0xa0] sm:$0xff] }
 0xb81   :  { %v1265_v38 = vmul.f32 0.7978846, %v1263_v36  ;;  %v1258_v39 = vmul.f32 0.044715, %v1253_v37  ;;  %v1256_v48 = vmul.f32 0.5, %v1253_v37 }
 0xb83   :  { %2982 = vtanh.f32 %v1265_v38  ;;  %v1260_v40 = vmul.f32 %v1258_v39, %v1253_v37  ;;  %v2921_v39 = vld [vmem:[%s3990_s18] ss:$0 sm:$0xff] }
 0xb85   :  { %v1262_v41 = vmul.f32 %v1260_v40, %v1253_v37 }
 0xb87   :  { %v1264_v42 = vadd.f32 %v1262_v41, %v1253_v37 }
 0xb89   :  { %v2983_v43 = vpop.eup %2982  ;;  %v1266_v44 = vmul.f32 0.7978846, %v1264_v42  ;;  %v2922_v42 = vld [vmem:[%s3991_s19] ss:$0 sm:$0xff] }
 0xb8a   :  { %v1269_v46 = vadd.f32 1.0, %v2983_v43 }
 0xb8b   :  { %2984 = vtanh.f32 %v1266_v44 }
 0xb8c   :  { %v1271_v56 = vmul.f32 %v1269_v46, %v1255_v45 }
 0xb8e   :  { %2756 = vmatmul.msk.f32.vlgmr.msra.gmra.mxu3 %vm1285_vm14, %v1271_v56 }
 0xb91   :  { %v2985_v47 = vpop.eup %2984 }
 0xb92   :  { %v1270_v49 = vadd.f32 1.0, %v2985_v47 }
 0xb94   :  { %v1272_v61 = vmul.f32 %v1270_v49, %v1256_v48 }
 0xb96   :  { %2757 = vmatmul.msk.f32.gmra.mxu3 %vm1285_vm14, %v1272_v61 }
 0xc11   :  { %v1309_v51 = vpop.f32.mrf.mxu3 }
 0xc12   :  { %v1310_v52 = vadd.f32 %v2920_v50, %v1309_v51  ;;  %v2924_v51 = vld [vmem:[%s3979_s7 + $0x4] ss:$0 sm:$0xff] }
 0xc14   :  { %v1315_v53 = vadd.f32 %v1310_v52, %v1216_v1  ;;  %v2759_v1 = vld [vmem:[%s4001_s26 + $0x88] sm:$0xff]  ;;  %v2923_v52 = vld [vmem:[%s3977_s5 + $0x4] ss:$0 sm:$0xff] }
 0xc15   :  { %1403 = vmatpush.msrb.mxu0 %v2759_v1 }
 0xc16   :  { %v1319_v54 = vsel %vm75_vm0, %v1315_v53, 0.0 }
 0xc17   :  { %1320 = vadd.xlane.f32.xlu0 %v1319_v54  ;;  %1404 = vmatpush.msrb.mxu0 %v2758_v16  ;;  %v2927_v16 = vld [vmem:[%s3979_s7 + $0x5] ss:$0 sm:$0xff] }
 0xc19   :  { %v1312_v55 = vpop.f32.mrf.mxu3 }
 0xc1a   :  { %v1313_v57 = vadd.f32 %v2920_v50, %v1312_v55 }
 0xc1c   :  { %v1316_v58 = vadd.f32 %v1313_v57, %v1217_v18  ;;  %v2772_v18 = vld [vmem:[%s3980_s8 + $0x80] sm:$0xff] }
 0xc1d   :  { %1470 = vmatpush.msra.mxu2 %v2772_v18 }
 0xc1e   :  { %v1322_v62 = vsel %vm75_vm0, %v1316_v58, 0.0 }
 0xc1f   :  { %1323 = vadd.xlane.f32.xlu1 %v1322_v62  ;;  %1626 = vmatpush.msrb.mxu2 %v2789_v23 }
 0xc21   :  { %1627 = vmatpush.msrb.mxu2 %v2788_v24 }
 0xc23   :  { %1628 = vmatpush.msrb.mxu2 %v2787_v27 }
 0xc25   :  { %1629 = vmatpush.msrb.mxu2 %v2786_v29 }
 0xc8a   :  { %v1321_v63 = vpop.xlane.xlu0 %1320 }
 0xc8b   :  { %v1325_v0 = vmul.f32 0.03125, %v1321_v63 }
 0xc8d   :  { %v3571_v2 = vsub.f32 %v1315_v53, %v1325_v0 }
 0xc8f   :  { %v1329_v3 = vmul.f32 %v3571_v2, %v3571_v2 }
 0xc91   :  { %v1331_v4 = vsel %vm75_vm0, %v1329_v3, 0.0 }
 0xc92   :  { %v1324_v5 = vpop.xlane.xlu1 %1323  ;;  %1332 = vadd.xlane.f32.xlu2 %v1331_v4  ;;  %v2796_v4 = vld [vmem:[%s3978_s6 + $0xb8] sm:$0xff] }
 0xc93   :  { %v1326_v6 = vmul.f32 0.03125, %v1324_v5 }
 0xc95   :  { %v3576_v7 = vsub.f32 %v1316_v58, %v1326_v6  ;;  %v2925_v58 = vld [vmem:[%s3981_s9 + $0x4] ss:$0 sm:$0xff]  ;;  %v2795_v6 = vld [vmem:[%s3978_s6 + $0xb0] sm:$0xff] }
 0xc97   :  { %v1330_v8 = vmul.f32 %v3576_v7, %v3576_v7 }
 0xc99   :  { %v1334_v9 = vsel %vm75_vm0, %v1330_v8, 0.0 }
 0xc9a   :  { %1335 = vadd.xlane.f32.xlu0 %v1334_v9 }
 0xd05   :  { %v1333_v20 = vpop.xlane.xlu2 %1332 }
 0xd06   :  { %v1337_v21 = vmul.f32 0.03125, %v1333_v20 }
 0xd08   :  { %v1339_v22 = vadd.f32 1e-12, %v1337_v21 }
 0xd0a   :  { %2986 = vrsqrt.f32 %v1339_v22  ;;  %vm1347_vm1 = vweird.f32 %v1339_v22 }
 0xd0d   :  { %v1336_v26 = vpop.xlane.xlu0 %1335 }
 0xd0e   :  { %v1338_v28 = vmul.f32 0.03125, %v1336_v26 }
 0xd10   :  { %v2987_v30 = vpop.eup %2986  ;;  %v1340_v31 = vadd.f32 1e-12, %v1338_v28 }
 0xd11   :  { %v1342_v32 = vmul.f32 %v2987_v30, %v1339_v22  ;;  %vm1348_vm15 = vweird.f32 %v2987_v30 }
 0xd12   :  { %2988 = vrsqrt.f32 %v1340_v31  ;;  %vm1349_vm2 = vmor %vm1347_vm1, %vm1348_vm15  ;;  %vm1357_vm4 = vweird.f32 %v1340_v31 }
 0xd13   :  { %v1343_v33 = vmul.f32 %v2987_v30, %v1342_v32  ;;  %v2802_v32 = vld [vmem:[%s3980_s8 + $0xb0] sm:$0xff] }
 0xd15   :  { %v1344_v34 = vmul.f32 0.5, %v1343_v33  ;;  %v2801_v33 = vld [vmem:[%s3980_s8 + $0xa8] sm:$0xff] }
 0xd17   :  { %v1345_v35 = vsub.f32 1.5, %v1344_v34  ;;  %v2800_v34 = vld [vmem:[%s3980_s8 + $0xa0] sm:$0xff] }
 0xd18   :  { %v2989_v36 = vpop.eup %2988 }
 0xd19   :  { %v1346_v37 = vmul.f32 %v2987_v30, %v1345_v35  ;;  %v1352_v38 = vmul.f32 %v2989_v36, %v1340_v31  ;;  %vm1358_vm3 = vweird.f32 %v2989_v36  ;;  %v2803_v31 = vld [vmem:[%s3980_s8 + $0xb8] sm:$0xff] }
 0xd1a   :  { %vm1359_vm5 = vmor %vm1357_vm4, %vm1358_vm3  ;;  %vm2632_vm3 = vcmask 254976  }
 0xd1b   :  { %v1350_v40 = vsel %vm1349_vm2, %v2987_v30, %v1346_v37  ;;  %v1353_v41 = vmul.f32 %v2989_v36, %v1352_v38  ;;  %vm2629_vm2 = vcmask 1041409  }
 0xd1c   :  { %v1361_v43 = vmul.f32 %v1350_v40, %v3571_v2 }
 0xd1d   :  { %v1354_v44 = vmul.f32 0.5, %v1353_v41 }
 0xd1e   :  { %v1366_v45 = vmul.f32 %v2921_v39, %v1361_v43 }
 0xd1f   :  { %v1355_v46 = vsub.f32 1.5, %v1354_v44  ;;  %v2926_v44 = vld [vmem:[%s3977_s5 + $0x5] ss:$0 sm:$0xff] }
 0xd20   :  { %v3636_v56 = vadd.f32 %v2922_v42, %v1366_v45 }
 0xd21   :  { %v1356_v47 = vmul.f32 %v2989_v36, %v1355_v46 }
 0xd22   :  { %2763 = vmatmul.msk.f32.vlgmr.msrb.gmra.mxu0 %vm75_vm0, %v3636_v56  ;;  %2770 = vmatmul.msk.f32.vlgmr.msra.gmra.mxu1 %vm75_vm0, %v3636_v56 }
 0xd23   :  { %v1360_v48 = vsel %vm1359_vm5, %v2989_v36, %v1356_v47  ;;  %2777 = vmatmul.msk.f32.vlgmr.msra.gmra.mxu2 %vm75_vm0, %v3636_v56 }
 0xd24   :  { %v1362_v49 = vmul.f32 %v1360_v48, %v3576_v7  ;;  %v2794_v7 = vld [vmem:[%s3978_s6 + $0xa8] sm:$0xff]  ;;  %v2785_v48 = vld [vmem:[%s3982_s10 + $0x20] sm:$0xff] }
 0xd26   :  { %v1367_v61 = vmul.f32 %v2921_v39, %v1362_v49 }
 0xd28   :  { %v3645_v50 = vadd.f32 %v2922_v42, %v1367_v61  ;;  %v2928_v61 = vld [vmem:[%s3981_s9 + $0x5] ss:$0 sm:$0xff] }
 0xd2a   :  { %2764 = vmatmul.msk.f32.gmra.mxu0 %vm75_vm0, %v3645_v50  ;;  %2771 = vmatmul.msk.f32.gmra.mxu1 %vm75_vm0, %v3645_v50 }
 0xd2b   :  { %2778 = vmatmul.msk.f32.gmra.mxu2 %vm75_vm0, %v3645_v50 }
 0xd33   :  { %2791 = vmatmul.msk.f32.vlgmr.msrb.gmra.mxu2 %vm75_vm0, %v3636_v56 }
 0xd3b   :  { %2792 = vmatmul.msk.f32.gmra.mxu2 %vm75_vm0, %v3645_v50 }
 0xd9f   :  { %v1406_v53 = vpop.f32.mrf.mxu0  ;;  %v1439_v54 = vpop.f32.mrf.mxu1 }
 0xda0   :  { %v1440_v55 = vadd.f32 %v2924_v51, %v1439_v54  ;;  %v1407_v57 = vadd.f32 %v2923_v52, %v1406_v53 }
 0xda2   :  { %2779 = vmatpush.xpose.msk.msra.mxu0 %vm229_vm7, %v1440_v55 }
 0xda5   :  { %2780 = vmatmul.msk.f32.vlgmr.msra.gmra.mxu0 %vm229_vm7, %v1407_v57 }
 0xda6   :  { %v1472_v62 = vpop.f32.mrf.mxu2 }
 0xda7   :  { %v1473_v63 = vadd.f32 %v2925_v58, %v1472_v62  ;;  %v1442_v0 = vpop.f32.mrf.mxu1  ;;  %v1409_v2 = vpop.f32.mrf.mxu0 }
 0xda8   :  { %v1443_v3 = vadd.f32 %v2924_v51, %v1442_v0  ;;  %v1410_v5 = vadd.f32 %v2923_v52, %v1409_v2 }
 0xda9   :  { %1574 = vmatpush.msrb.mxu0 %v1473_v63 }
 0xdaa   :  { %2781 = vmatpush.xpose.msk.msrb.mxu3 %vm229_vm7, %v1443_v3 }
 0xdab   :  { %1692 = vmatpush.msra.mxu0 %v2803_v31  ;;  %v2833_v31 = vld [vmem:[%s3980_s8 + $0xc8] sm:$0xff] }
 0xdad   :  { %2782 = vmatmul.msk.f32.vlgmr.msrb.gmra.mxu3 %vm229_vm7, %v1410_v5  ;;  %1693 = vmatpush.msra.mxu0 %v2802_v32  ;;  %v2832_v32 = vld [vmem:[%s3980_s8 + $0xc0] sm:$0xff] }
 0xdae   :  { %1659 = vmatpush.msra.mxu3 %v2796_v4  ;;  %v1475_v8 = vpop.f32.mrf.mxu2 }
 0xdaf   :  { %v1476_v9 = vadd.f32 %v2925_v58, %v1475_v8  ;;  %1694 = vmatpush.msra.mxu0 %v2801_v33  ;;  %v2858_v33 = vld [vmem:[%s3978_s6 + $0xf8] sm:$0xff] }
 0xdb0   :  { %1660 = vmatpush.msra.mxu3 %v2795_v6 }
 0xdb1   :  { %1597 = vmatpush.msrb.mxu1 %v1476_v9  ;;  %1695 = vmatpush.msra.mxu0 %v2800_v34 }
 0xdb2   :  { %1661 = vmatpush.msra.mxu3 %v2794_v7 }
 0xdb4   :  { %1662 = vmatpush.msra.mxu3 %v2793_v10 }
 0xdb5   :  { %2798 = vmatmul.msk.f32.vlgmr.msra.gmra.mxu3 %vm75_vm0, %v3636_v56 }
 0xdb6   :  { %v1631_v43 = vpop.f32.mrf.mxu2 }
 0xdb7   :  { %v1632_v45 = vadd.f32 %v2926_v44, %v1631_v43 }
 0xdbd   :  { %2799 = vmatmul.msk.f32.gmra.mxu3 %vm75_vm0, %v3645_v50 }
 0xdbe   :  { %v1634_v46 = vpop.f32.mrf.mxu2 }
 0xdbf   :  { %v1635_v47 = vadd.f32 %v2926_v44, %v1634_v46 }
 0xe22   :  { %v1501_v11 = vpop.f32.mrf.mxu0 }
 0xe23   :  { %v1530_v59 = vmul.f32 0.35355338, %v1501_v11 }
 0xe25   :  { %v1532_v60 = vadd.f32 %v1530_v59, %v3296_v19 }
 0xe27   :  { %v1534_v12 = vsel %vm229_vm7, %v1532_v60, -inf }
 0xe28   :  { %1535 = vmax.xlane.f32.xlu0 %v1534_v12 }
 0xe30   :  { %v1527_v13 = vpop.f32.mrf.mxu3 }
 0xe31   :  { %v1531_v1 = vmul.f32 0.35355338, %v1527_v13  ;;  %v2821_v13 = vld [vmem:[%s4001_s26 + $0xd8] sm:$0xff] }
 0xe33   :  { %v1533_v14 = vadd.f32 %v1531_v1, %v3300_v25  ;;  %v2820_v1 = vld [vmem:[%s4001_s26 + $0xd0] sm:$0xff] }
 0xe35   :  { %v1537_v15 = vsel %vm229_vm7, %v1533_v14, -inf }
 0xe36   :  { %1538 = vmax.xlane.f32.xlu1 %v1537_v15  ;;  %v2818_v15 = vld [vmem:[%s4001_s26 + $0xc0] sm:$0xff] }
 0xe38   :  { %v1664_v17 = vpop.f32.mrf.mxu3 }
 0xe39   :  { %v1665_v18 = vadd.f32 %v2927_v16, %v1664_v17  ;;  %v2827_v17 = vld [vmem:[%s3978_s6 + $0xd0] sm:$0xff] }
 0xe3b   :  { %2807 = vmatpush.xpose.msk.msra.mxu1 %vm229_vm7, %v1665_v18  ;;  %v2826_v18 = vld [vmem:[%s3978_s6 + $0xc8] sm:$0xff] }
 0xe40   :  { %v1667_v39 = vpop.f32.mrf.mxu3 }
 0xe41   :  { %v1668_v42 = vadd.f32 %v2927_v16, %v1667_v39  ;;  %v2828_v16 = vld [vmem:[%s3978_s6 + $0xd8] sm:$0xff]  ;;  %v2930_v39 = vld [vmem:[%s3979_s7 + $0x6] ss:$0 sm:$0xff] }
 0xe9b   :  { %v1536_v20 = vpop.xlane.xlu0 %1535 }
 0xe9c   :  { %v1540_v21 = vsub.f32 %v1532_v60, %v1536_v20  ;;  %v2825_v20 = vld [vmem:[%s3978_s6 + $0xc0] sm:$0xff] }
 0xe9e   :  { %v1542_v22 = vmul.f32 1.442695, %v1540_v21 }
 0xea0   :  { %2990 = vpow2.f32 %v1542_v22 }
 0xea6   :  { %v2991_v23 = vpop.eup %2990 }
 0xea7   :  { %v1546_v24 = vsel %vm229_vm7, %v2991_v23, 0.0 }
 0xea8   :  { %1547 = vadd.xlane.f32.xlu1 %v1546_v24 }
 0xea9   :  { %v1539_v26 = vpop.xlane.xlu1 %1538 }
 0xeaa   :  { %v1541_v27 = vsub.f32 %v1533_v14, %v1539_v26  ;;  %v2819_v14 = vld [vmem:[%s4001_s26 + $0xc8] sm:$0xff] }
 0xeac   :  { %v1544_v28 = vmul.f32 1.442695, %v1541_v27 }
 0xeae   :  { %2992 = vpow2.f32 %v1544_v28  ;;  %v2813_v28 = vld [vmem:[%s3982_s10 + $0x28] sm:$0xff] }
 0xeb4   :  { %v2993_v29 = vpop.eup %2992 }
 0xeb5   :  { %v1549_v30 = vsel %vm229_vm7, %v2993_v29, 0.0 }
 0xeb6   :  { %1550 = vadd.xlane.f32.xlu2 %v1549_v30  ;;  %v2834_v30 = vld [vmem:[%s3980_s8 + $0xd0] sm:$0xff] }
 0xf1b   :  { %v1548_v35 = vpop.xlane.xlu1 %1547 }
 0xf1c   :  { %2994 = vrcp.f32 %v1548_v35  ;;  %v2857_v35 = vld [vmem:[%s3978_s6 + $0xf0] sm:$0xff] }
 0xf22   :  { %v2995_v36 = vpop.eup %2994 }
 0xf23   :  { %v1554_v37 = vmul.f32 %v2995_v36, %v2991_v23  ;;  %v2856_v36 = vld [vmem:[%s3978_s6 + $0xe8] sm:$0xff] }
 0xf25   :  { %2783 = vmatmul.msk.f32.vlgmr.msrb.gmra.mxu0 %vm229_vm7, %v1554_v37  ;;  %v2855_v37 = vld [vmem:[%s3978_s6 + $0xe0] sm:$0xff] }
 0xf26   :  { %1850 = vmatpush.msrb.mxu0 %v2813_v28  ;;  %v2862_v28 = vld [vmem:[%s3980_s8 + $0xe0] sm:$0xff] }
 0xf29   :  { %v1551_v38 = vpop.xlane.xlu2 %1550 }
 0xf2a   :  { %2996 = vrcp.f32 %v1551_v38 }
 0xf2d   :  { %2805 = vmatmul.msk.f32.vlgmr.msra.gmra.mxu0 %vm75_vm0, %v3636_v56 }
 0xf30   :  { %v2997_v40 = vpop.eup %2996 }
 0xf31   :  { %v1555_v41 = vmul.f32 %v2997_v40, %v2993_v29  ;;  %v2835_v29 = vld [vmem:[%s3980_s8 + $0xd8] sm:$0xff] }
 0xf32   :  { %1975 = vmatpush.msra.mxu0 %v2835_v29 }
 0xf33   :  { %2784 = vmatmul.msk.f32.vlgmr.msrb.gmra.mxu1 %vm229_vm7, %v1555_v41  ;;  %v2929_v41 = vld [vmem:[%s3977_s5 + $0x6] ss:$0 sm:$0xff] }
 0xf34   :  { %2809 = vmatpush.xpose.msk.msrb.mxu1 %vm229_vm7, %v1668_v42  ;;  %1976 = vmatpush.msra.mxu0 %v2834_v30 }
 0xf35   :  { %2806 = vmatmul.msk.f32.gmra.mxu0 %vm75_vm0, %v3645_v50 }
 0xf36   :  { %1977 = vmatpush.msra.mxu0 %v2833_v31 }
 0xf38   :  { %1978 = vmatpush.msra.mxu0 %v2832_v32 }
 0xf3b   :  { %2808 = vmatmul.msk.f32.vlgmr.msra.gmra.mxu1 %vm229_vm7, %v1632_v45 }
 0xf3c   :  { %1879 = vmatpush.msra.mxu1 %v2785_v48 }
 0xf43   :  { %2810 = vmatmul.msk.f32.vlgmr.msrb.gmra.mxu1 %vm229_vm7, %v1635_v47 }
 0xfa2   :  { %v1576_v49 = vpop.f32.mrf.mxu0 }
 0xfa3   :  { %2816 = vmatmul.msk.f32.vlgmr.msra.gmra.mxu1 %vm229_vm7, %v1576_v49 }
 0xfaa   :  { %v1697_v51 = vpop.f32.mrf.mxu0 }
 0xfab   :  { %v1698_v52 = vadd.f32 %v2928_v61, %v1697_v51  ;;  %v2845_v51 = vld [vmem:[%s3982_s10 + $0x30] sm:$0xff] }
 0xfad   :  { %1799 = vmatpush.msra.mxu2 %v1698_v52 }
 0xfaf   :  { %1909 = vmatpush.msrb.mxu2 %v2821_v13 }
 0xfb0   :  { %v1599_v53 = vpop.f32.mrf.mxu1 }
 0xfb1   :  { %2817 = vmatmul.msk.f32.gmra.mxu1 %vm229_vm7, %v1599_v53  ;;  %1910 = vmatpush.msrb.mxu2 %v2820_v1 }
 0xfb2   :  { %v1700_v54 = vpop.f32.mrf.mxu0 }
 0xfb3   :  { %v1701_v55 = vadd.f32 %v2928_v61, %v1700_v54  ;;  %1911 = vmatpush.msrb.mxu2 %v2819_v14 }
 0xfb5   :  { %1822 = vmatpush.msrb.mxu3 %v1701_v55  ;;  %1912 = vmatpush.msrb.mxu2 %v2818_v15  ;;  %v2931_v55 = vld [vmem:[%s3981_s9 + $0x6] ss:$0 sm:$0xff] }
 0xfb7   :  { %1942 = vmatpush.msra.mxu3 %v2828_v16 }
 0xfb8   :  { %v1726_v57 = vpop.f32.mrf.mxu1 }
 0xfb9   :  { %v1755_v58 = vmul.f32 0.35355338, %v1726_v57  ;;  %1943 = vmatpush.msra.mxu3 %v2827_v17 }
 0xfbb   :  { %v1757_v62 = vadd.f32 %v1755_v58, %v3296_v19  ;;  %1944 = vmatpush.msra.mxu3 %v2826_v18 }
 0xfbd   :  { %v1759_v63 = vsel %vm229_vm7, %v1757_v62, -inf  ;;  %1945 = vmatpush.msra.mxu3 %v2825_v20  ;;  %v2851_v20 = vld [vmem:[%s4001_s26 + $0xf8] sm:$0xff] }
 0xfbe   :  { %1760 = vmax.xlane.f32.xlu0 %v1759_v63 }
 0xfc0   :  { %v1752_v0 = vpop.f32.mrf.mxu1 }
 0xfc1   :  { %v1756_v2 = vmul.f32 0.35355338, %v1752_v0 }
 0xfc3   :  { %v1758_v3 = vadd.f32 %v1756_v2, %v3300_v25 }
 0xfc5   :  { %v1762_v4 = vsel %vm229_vm7, %v1758_v3, -inf }
 0xfc6   :  { %1763 = vmax.xlane.f32.xlu2 %v1762_v4 }
0x1020   :  { %v3815_v49 = vpop.f32.mrf.mxu1 }
0x102e   :  { %v1884_v52 = vpop.f32.mrf.mxu1 }
0x1031   :  { %v1761_v5 = vpop.xlane.xlu0 %1760 }
0x1032   :  { %v1765_v6 = vsub.f32 %v1757_v62, %v1761_v5  ;;  %v2932_v5 = vld [vmem:[%s3979_s7 + $0x7] ss:$0 sm:$0xff] }
0x1034   :  { %v1767_v7 = vmul.f32 1.442695, %v1765_v6 }
0x1036   :  { %2998 = vpow2.f32 %v1767_v7 }
0x1039   :  { %v1764_v8 = vpop.xlane.xlu2 %1763 }
0x103a   :  { %v1766_v9 = vsub.f32 %v1758_v3, %v1764_v8 }
0x103c   :  { %v2999_v10 = vpop.eup %2998  ;;  %v1769_v11 = vmul.f32 1.442695, %v1766_v9 }
0x103d   :  { %v1771_v59 = vsel %vm229_vm7, %v2999_v10, 0.0 }
0x103e   :  { %3000 = vpow2.f32 %v1769_v11  ;;  %1772 = vadd.xlane.f32.xlu2 %v1771_v59 }
0x1044   :  { %v3001_v60 = vpop.eup %3000 }
0x1045   :  { %v1774_v12 = vsel %vm229_vm7, %v3001_v60, 0.0 }
0x1046   :  { %1775 = vadd.xlane.f32.xlu1 %v1774_v12 }
0x10b1   :  { %v1773_v21 = vpop.xlane.xlu2 %1772 }
0x10b2   :  { %3002 = vrcp.f32 %v1773_v21  ;;  %v2850_v21 = vld [vmem:[%s4001_s26 + $0xf0] sm:$0xff] }
0x10b8   :  { %v3003_v22 = vpop.eup %3002 }
0x10b9   :  { %v1779_v23 = vmul.f32 %v3003_v22, %v2999_v10  ;;  %v1776_v24 = vpop.xlane.xlu1 %1775  ;;  %v2849_v22 = vld [vmem:[%s4001_s26 + $0xe8] sm:$0xff] }
0x10ba   :  { %3004 = vrcp.f32 %v1776_v24  ;;  %v2865_v24 = vld [vmem:[%s3980_s8 + $0xf8] sm:$0xff] }
0x10bb   :  { %2811 = vmatmul.msk.f32.vlgmr.msra.gmra.mxu2 %vm229_vm7, %v1779_v23  ;;  %v2848_v23 = vld [vmem:[%s4001_s26 + $0xe0] sm:$0xff] }
0x10c0   :  { %v3005_v26 = vpop.eup %3004 }
0x10c1   :  { %v1780_v27 = vmul.f32 %v3005_v26, %v3001_v60  ;;  %v2864_v26 = vld [vmem:[%s3980_s8 + $0xf0] sm:$0xff] }
0x10c3   :  { %2812 = vmatmul.msk.f32.vlgmr.msrb.gmra.mxu3 %vm229_vm7, %v1780_v27  ;;  %2823 = vmatmul.msk.f32.vlgmr.msrb.gmra.mxu2 %vm75_vm0, %v3636_v56  ;;  %v2863_v27 = vld [vmem:[%s3980_s8 + $0xe8] sm:$0xff] }
0x10cb   :  { %2824 = vmatmul.msk.f32.gmra.mxu2 %vm75_vm0, %v3645_v50  ;;  %2830 = vmatmul.msk.f32.vlgmr.msra.gmra.mxu3 %vm75_vm0, %v3636_v56 }
0x10d3   :  { %2831 = vmatmul.msk.f32.gmra.mxu3 %vm75_vm0, %v3645_v50 }
0x113e   :  { %v1801_v34 = vpop.f32.mrf.mxu2 }
0x113f   :  { %2814 = vmatmul.msk.f32.vlgmr.msrb.gmra.mxu0 %vm229_vm7, %v1801_v34 }
0x1140   :  { %2198 = vmatpush.msrb.mxu0 %v2858_v33 }
0x1142   :  { %2199 = vmatpush.msrb.mxu0 %v2857_v35 }
0x1144   :  { %2200 = vmatpush.msrb.mxu0 %v2856_v36 }
0x1146   :  { %v1824_v38 = vpop.f32.mrf.mxu3  ;;  %2201 = vmatpush.msrb.mxu0 %v2855_v37  ;;  %v1914_v40 = vpop.f32.mrf.mxu2 }
0x1147   :  { %2815 = vmatmul.msk.f32.gmra.mxu0 %vm229_vm7, %v1824_v38  ;;  %v1915_v44 = vadd.f32 %v2929_v41, %v1914_v40  ;;  %v2933_v40 = vld [vmem:[%s3977_s5 + $0x7] ss:$0 sm:$0xff] }
0x114e   :  { %v1947_v42 = vpop.f32.mrf.mxu3  ;;  %v1917_v46 = vpop.f32.mrf.mxu2 }
0x114f   :  { %v1948_v43 = vadd.f32 %v2930_v39, %v1947_v42  ;;  %2837 = vmatmul.msk.f32.vlgmr.msra.gmra.mxu0 %vm75_vm0, %v3636_v56  ;;  %v1918_v48 = vadd.f32 %v2929_v41, %v1917_v46  ;;  %v2934_v41 = vld [vmem:[%s3981_s9 + $0x7] ss:$0 sm:$0xff] }
0x1151   :  { %2839 = vmatpush.xpose.msk.msrb.mxu1 %vm229_vm7, %v1948_v43 }
0x1154   :  { %2840 = vmatmul.msk.f32.vlgmr.msrb.gmra.mxu1 %vm229_vm7, %v1915_v44 }
0x1156   :  { %v1950_v45 = vpop.f32.mrf.mxu3 }
0x1157   :  { %v1951_v47 = vadd.f32 %v2930_v39, %v1950_v45  ;;  %2838 = vmatmul.msk.f32.gmra.mxu0 %vm75_vm0, %v3645_v50 }
0x1159   :  { %2841 = vmatpush.xpose.msk.msra.mxu2 %vm229_vm7, %v1951_v47 }
0x115c   :  { %2842 = vmatmul.msk.f32.vlgmr.msra.gmra.mxu2 %vm229_vm7, %v1918_v48 }
0x115d   :  { %2133 = vmatpush.msrb.mxu2 %v2845_v51 }
0x115f   :  { %2860 = vmatmul.msk.f32.vlgmr.msrb.gmra.mxu0 %vm75_vm0, %v3636_v56 }
0x1167   :  { %2861 = vmatmul.msk.f32.gmra.mxu0 %vm75_vm0, %v3645_v50 }
0x11bc   :  { %v3817_v61 = vpop.f32.mrf.mxu0 }
0x11bd   :  { %v1882_v51 = vadd.f32 %v3815_v49, %v3817_v61 }
0x11c4   :  { %v1855_v53 = vpop.f32.mrf.mxu0 }
0x11c5   :  { %v3822_v54 = vadd.f32 %v1884_v52, %v1855_v53 }
0x11cc   :  { %v1980_v57 = vpop.f32.mrf.mxu0 }
0x11cd   :  { %v1981_v58 = vadd.f32 %v2931_v55, %v1980_v57 }
0x11cf   :  { %2082 = vmatpush.msrb.mxu3 %v1981_v58 }
0x11d1   :  { %v2009_v62 = vpop.f32.mrf.mxu1  ;;  %2165 = vmatpush.msra.mxu3 %v2851_v20 }
0x11d2   :  { %v2038_v63 = vmul.f32 0.35355338, %v2009_v62 }
0x11d3   :  { %2166 = vmatpush.msra.mxu3 %v2850_v21 }
0x11d4   :  { %v1983_v0 = vpop.f32.mrf.mxu0  ;;  %v2040_v2 = vadd.f32 %v2038_v63, %v3296_v19 }
0x11d5   :  { %v1984_v3 = vadd.f32 %v2931_v55, %v1983_v0  ;;  %2167 = vmatpush.msra.mxu3 %v2849_v22 }
0x11d6   :  { %v2042_v4 = vsel %vm229_vm7, %v2040_v2, -inf }
0x11d7   :  { %2043 = vmax.xlane.f32.xlu0 %v2042_v4  ;;  %2105 = vmatpush.msra.mxu1 %v1984_v3 }
0x11d8   :  { %2168 = vmatpush.msra.mxu3 %v2848_v23 }
0x11d9   :  { %2231 = vmatpush.msrb.mxu1 %v2865_v24 }
0x11db   :  { %2232 = vmatpush.msrb.mxu1 %v2864_v26 }
0x11dc   :  { %v2203_v6 = vpop.f32.mrf.mxu0 }
0x11dd   :  { %v2204_v7 = vadd.f32 %v2932_v5, %v2203_v6  ;;  %2233 = vmatpush.msrb.mxu1 %v2863_v27 }
0x11df   :  { %v2035_v8 = vpop.f32.mrf.mxu2  ;;  %2869 = vmatpush.xpose.msk.msra.mxu2 %vm229_vm7, %v2204_v7  ;;  %2234 = vmatpush.msrb.mxu1 %v2862_v28 }
0x11e0   :  { %v2039_v9 = vmul.f32 0.35355338, %v2035_v8 }
0x11e2   :  { %v2041_v10 = vadd.f32 %v2039_v9, %v3300_v25 }
0x11e4   :  { %v2045_v11 = vsel %vm229_vm7, %v2041_v10, -inf  ;;  %v2206_v30 = vpop.f32.mrf.mxu0 }
0x11e5   :  { %2046 = vmax.xlane.f32.xlu1 %v2045_v11  ;;  %v2207_v33 = vadd.f32 %v2932_v5, %v2206_v30 }
0x124a   :  { %v2044_v59 = vpop.xlane.xlu0 %2043 }
0x124b   :  { %v2048_v60 = vsub.f32 %v2040_v2, %v2044_v59 }
0x124d   :  { %v2050_v12 = vmul.f32 1.442695, %v2048_v60 }
0x124f   :  { %3006 = vpow2.f32 %v2050_v12 }
0x1255   :  { %v3007_v13 = vpop.eup %3006 }
0x1256   :  { %v2054_v1 = vsel %vm229_vm7, %v3007_v13, 0.0 }
0x1257   :  { %2055 = vadd.xlane.f32.xlu2 %v2054_v1 }
0x1258   :  { %v2047_v14 = vpop.xlane.xlu1 %2046 }
0x1259   :  { %v2049_v15 = vsub.f32 %v2041_v10, %v2047_v14  ;;  %v2875_v14 = vld [vmem:[%s3982_s10 + $0x38] sm:$0xff] }
0x125b   :  { %v2052_v16 = vmul.f32 1.442695, %v2049_v15 }
0x125d   :  { %3008 = vpow2.f32 %v2052_v16 }
0x1263   :  { %v3009_v17 = vpop.eup %3008 }
0x1264   :  { %v2057_v18 = vsel %vm229_vm7, %v3009_v17, 0.0 }
0x1265   :  { %2058 = vadd.xlane.f32.xlu0 %v2057_v18 }
0x12ca   :  { %v2056_v29 = vpop.xlane.xlu2 %2055 }
0x12cb   :  { %3010 = vrcp.f32 %v2056_v29 }
0x12d1   :  { %v3011_v31 = vpop.eup %3010 }
0x12d2   :  { %v2062_v32 = vmul.f32 %v3011_v31, %v3007_v13 }
0x12d4   :  { %2843 = vmatmul.msk.f32.vlgmr.msrb.gmra.mxu3 %vm229_vm7, %v2062_v32 }
0x12d5   :  { %2871 = vmatpush.xpose.msk.msrb.mxu3 %vm229_vm7, %v2207_v33 }
0x12d8   :  { %v2059_v34 = vpop.xlane.xlu0 %2058 }
0x12d9   :  { %3012 = vrcp.f32 %v2059_v34 }
0x12dc   :  { %2853 = vmatmul.msk.f32.vlgmr.msra.gmra.mxu3 %vm75_vm0, %v3636_v56 }
0x12df   :  { %v3013_v35 = vpop.eup %3012 }
0x12e0   :  { %v2063_v36 = vmul.f32 %v3013_v35, %v3009_v17  ;;  %v2935_v17 = vld [vmem:[%s3983_s11 + $0x1] ss:$0 sm:$0xff] }
0x12e2   :  { %2844 = vmatmul.msk.f32.vlgmr.msra.gmra.mxu1 %vm229_vm7, %v2063_v36 }
0x12e4   :  { %2854 = vmatmul.msk.f32.gmra.mxu3 %vm75_vm0, %v3645_v50 }
0x12ea   :  { %2867 = vmatmul.msk.f32.vlgmr.msrb.gmra.mxu1 %vm75_vm0, %v3636_v56 }
0x12f2   :  { %2868 = vmatmul.msk.f32.gmra.mxu1 %vm75_vm0, %v3645_v50 }
0x1357   :  { %v2084_v37 = vpop.f32.mrf.mxu3 }
0x1358   :  { %2846 = vmatmul.msk.f32.vlgmr.msrb.gmra.mxu2 %vm229_vm7, %v2084_v37 }
0x1359   :  { %2389 = vmatpush.msrb.mxu2 %v2875_v14  ;;  %v2938_v14 = vld [vmem:[%s3987_s15 + $0x1] ss:$0 sm:$0xff] }
0x135f   :  { %v2107_v38 = vpop.f32.mrf.mxu1  ;;  %v2170_v39 = vpop.f32.mrf.mxu3 }
0x1360   :  { %2847 = vmatmul.msk.f32.gmra.mxu2 %vm229_vm7, %v2107_v38  ;;  %v2171_v42 = vadd.f32 %v2933_v40, %v2170_v39  ;;  %v2883_v39 = vld [vmem:[%s3986_s14 + $0x30] sm:$0xff] }
0x1367   :  { %v2173_v43 = vpop.f32.mrf.mxu3  ;;  %v2236_v44 = vpop.f32.mrf.mxu1 }
0x1368   :  { %v2174_v45 = vadd.f32 %v2933_v40, %v2173_v43  ;;  %v2237_v46 = vadd.f32 %v2934_v41, %v2236_v44  ;;  %2870 = vmatmul.msk.f32.vlgmr.msra.gmra.mxu2 %vm229_vm7, %v2171_v42  ;;  %v2882_v40 = vld [vmem:[%s3986_s14 + $0x28] sm:$0xff] }
0x136a   :  { %2872 = vmatmul.msk.f32.vlgmr.msrb.gmra.mxu3 %vm229_vm7, %v2174_v45  ;;  %2338 = vmatpush.msra.mxu1 %v2237_v46 }
0x136f   :  { %v2239_v47 = vpop.f32.mrf.mxu1 }
0x1370   :  { %v2240_v48 = vadd.f32 %v2934_v41, %v2239_v47  ;;  %v2881_v41 = vld [vmem:[%s3986_s14 + $0x20] sm:$0xff] }
0x1372   :  { %2361 = vmatpush.msrb.mxu1 %v2240_v48 }
0x13db   :  { %v2135_v52 = vpop.f32.mrf.mxu2 }
0x13dc   :  { %v2141_v53 = vadd.f32 %v2135_v52, %v1882_v51 }
0x13e3   :  { %v2138_v55 = vpop.f32.mrf.mxu2 }
0x13e4   :  { %v2142_v57 = vadd.f32 %v2138_v55, %v3822_v54 }
0x13eb   :  { %v2265_v58 = vpop.f32.mrf.mxu2 }
0x13ec   :  { %v2294_v62 = vmul.f32 0.35355338, %v2265_v58 }
0x13ed   :  { %v2291_v63 = vpop.f32.mrf.mxu3 }
0x13ee   :  { %v2295_v0 = vmul.f32 0.35355338, %v2291_v63  ;;  %v2296_v2 = vadd.f32 %v2294_v62, %v3296_v19  ;;  %v2936_v63 = vld [vmem:[%s3984_s12 + $0x1] ss:$0 sm:$0xff]  ;;  %s2641_s12 = sshll.u32 %s3992_s20, 4  ;;  %s2642_s12 = int_to_ptr.hbm [resolvable:$true] %s2641_s12 }
0x13f0   :  { %v2298_v3 = vsel %vm229_vm7, %v2296_v2, -inf  ;;  %v2297_v4 = vadd.f32 %v2295_v0, %v3300_v25 }
0x13f1   :  { %2299 = vmax.xlane.f32.xlu1 %v2298_v3  ;;  %v2937_v3 = vld [vmem:[%s3985_s13 + $0x1] ss:$0 sm:$0xff] }
0x13f2   :  { %v2301_v5 = vsel %vm229_vm7, %v2297_v4, -inf }
0x13f3   :  { %2302 = vmax.xlane.f32.xlu2 %v2301_v5 }
0x1464   :  { %v2300_v49 = vpop.xlane.xlu1 %2299 }
0x1465   :  { %v2304_v61 = vsub.f32 %v2296_v2, %v2300_v49 }
0x1466   :  { %v2303_v6 = vpop.xlane.xlu2 %2302 }
0x1467   :  { %v2306_v7 = vmul.f32 1.442695, %v2304_v61  ;;  %v2305_v8 = vsub.f32 %v2297_v4, %v2303_v6 }
0x1469   :  { %3014 = vpow2.f32 %v2306_v7  ;;  %v2308_v54 = vmul.f32 1.442695, %v2305_v8 }
0x146b   :  { %3016 = vpow2.f32 %v2308_v54 }
0x146f   :  { %v3015_v9 = vpop.eup %3014 }
0x1470   :  { %v2310_v10 = vsel %vm229_vm7, %v3015_v9, 0.0 }
0x1471   :  { %v3017_v19 = vpop.eup %3016  ;;  %2311 = vadd.xlane.f32.xlu0 %v2310_v10 }
0x1472   :  { %v2313_v11 = vsel %vm229_vm7, %v3017_v19, 0.0 }
0x1473   :  { %2314 = vadd.xlane.f32.xlu1 %v2313_v11  ;;  %v2894_v11 = vld [vmem:[%s3988_s16 + $0x70] sm:$0xff] }
0x14e4   :  { %v2312_v25 = vpop.xlane.xlu0 %2311 }
0x14e5   :  { %3018 = vrcp.f32 %v2312_v25  ;;  %v2893_v25 = vld [vmem:[%s3988_s16 + $0x68] sm:$0xff] }
0x14e6   :  { %v2315_v59 = vpop.xlane.xlu1 %2314 }
0x14e7   :  { %3020 = vrcp.f32 %v2315_v59  ;;  %v2892_v59 = vld [vmem:[%s3988_s16 + $0x60] sm:$0xff] }
0x14eb   :  { %v3019_v60 = vpop.eup %3018 }
0x14ec   :  { %v2318_v12 = vmul.f32 %v3019_v60, %v3015_v9  ;;  %v2891_v60 = vld [vmem:[%s3988_s16 + $0x58] sm:$0xff] }
0x14ed   :  { %v3021_v13 = vpop.eup %3020 }
0x14ee   :  { %2873 = vmatmul.msk.f32.vlgmr.msra.gmra.mxu1 %vm229_vm7, %v2318_v12  ;;  %v2319_v1 = vmul.f32 %v3021_v13, %v3017_v19  ;;  %v2895_v19 = vld [vmem:[%s3988_s16 + $0x78] sm:$0xff]  ;;  %v2890_v12 = vld [vmem:[%s3988_s16 + $0x50] sm:$0xff]  ;;  %v2889_v13 = vld [vmem:[%s3988_s16 + $0x48] sm:$0xff] }
0x14ef   :  { %2551 = vmatpush.msra.mxu0 %v2895_v19 }
0x14f1   :  { %2552 = vmatpush.msra.mxu0 %v2894_v11 }
0x14f3   :  { %2553 = vmatpush.msra.mxu0 %v2893_v25 }
0x14f5   :  { %2554 = vmatpush.msra.mxu0 %v2892_v59 }
0x14f6   :  { %2874 = vmatmul.msk.f32.vlgmr.msrb.gmra.mxu1 %vm229_vm7, %v2319_v1  ;;  %v2888_v1 = vld [vmem:[%s3988_s16 + $0x40] sm:$0xff] }
0x14f7   :  { %2555 = vmatpush.msra.mxu0 %v2891_v60 }
0x14f9   :  { %2556 = vmatpush.msra.mxu0 %v2890_v12 }
0x14fb   :  { %2557 = vmatpush.msra.mxu0 %v2889_v13  ;;  %v2940_v13 = vld [vmem:[%s3990_s18 + $0x1] ss:$0 sm:$0xff] }
0x14fd   :  { %2558 = vmatpush.msra.mxu0 %v2888_v1 }
0x156b   :  { %v2340_v15 = vpop.f32.mrf.mxu1 }
0x156c   :  { %2876 = vmatmul.msk.f32.vlgmr.msrb.gmra.mxu2 %vm229_vm7, %v2340_v15 }
0x1573   :  { %v2363_v16 = vpop.f32.mrf.mxu1 }
0x1574   :  { %2877 = vmatmul.msk.f32.gmra.mxu2 %vm229_vm7, %v2363_v16 }
0x15ef   :  { %v2391_v18 = vpop.f32.mrf.mxu2 }
0x15f0   :  { %v2397_v20 = vadd.f32 %v2391_v18, %v2141_v53 }
0x15f2   :  { %v2404_v21 = vadd.f32 %v2935_v17, %v2397_v20 }
0x15f4   :  { %v2406_v22 = vadd.f32 %v2404_v21, %v3636_v56 }
0x15f6   :  { %v2412_v23 = vsel %vm75_vm0, %v2406_v22, 0.0 }
0x15f7   :  { %2413 = vadd.xlane.f32.xlu2 %v2412_v23  ;;  %v2394_v24 = vpop.f32.mrf.mxu2 }
0x15f8   :  { %v2398_v26 = vadd.f32 %v2394_v24, %v2142_v57 }
0x15fa   :  { %v2405_v27 = vadd.f32 %v2935_v17, %v2398_v26 }
0x15fc   :  { %v2407_v28 = vadd.f32 %v2405_v27, %v3645_v50  ;;  %v2884_v50 = vld [vmem:[%s3986_s14 + $0x38] sm:$0xff]  ;;  %s3060_s14 = smov [#allocation2]  }
0x15fd   :  { %2494 = vmatpush.msra.mxu3 %v2884_v50  ;;  %s2639_s6 = sshll.u32 %s3060_s14, 4  ;;  %s2640_s6 = int_to_ptr.vmem [resolvable:$true] %s2639_s6 }
0x15fe   :  { %v2415_v29 = vsel %vm75_vm0, %v2407_v28, 0.0 }
0x15ff   :  { %2416 = vadd.xlane.f32.xlu0 %v2415_v29  ;;  %2495 = vmatpush.msra.mxu3 %v2883_v39 }
0x1601   :  { %2496 = vmatpush.msra.mxu3 %v2882_v40 }
0x1603   :  { %2497 = vmatpush.msra.mxu3 %v2881_v41 }
0x166a   :  { %v2414_v30 = vpop.xlane.xlu2 %2413 }
0x166b   :  { %v2418_v31 = vmul.f32 0.03125, %v2414_v30 }
0x166d   :  { %v2420_v32 = vsub.f32 %v2406_v22, %v2418_v31 }
0x166f   :  { %v2422_v33 = vmul.f32 %v2420_v32, %v2420_v32 }
0x1671   :  { %v2424_v34 = vsel %vm75_vm0, %v2422_v33, 0.0 }
0x1672   :  { %2425 = vadd.xlane.f32.xlu1 %v2424_v34  ;;  %v2417_v35 = vpop.xlane.xlu0 %2416 }
0x1673   :  { %v2419_v56 = vmul.f32 0.03125, %v2417_v35 }
0x1675   :  { %v2421_v36 = vsub.f32 %v2407_v28, %v2419_v56 }
0x1677   :  { %v2423_v37 = vmul.f32 %v2421_v36, %v2421_v36 }
0x1679   :  { %v2427_v38 = vsel %vm75_vm0, %v2423_v37, 0.0 }
0x167a   :  { %2428 = vadd.xlane.f32.xlu2 %v2427_v38  ;;  %v2939_v38 = vld [vmem:[%s3989_s17 + $0x1] ss:$0 sm:$0xff] }
0x16e5   :  { %v2426_v42 = vpop.xlane.xlu1 %2425 }
0x16e6   :  { %v2430_v43 = vmul.f32 0.03125, %v2426_v42 }
0x16e8   :  { %v2432_v44 = vadd.f32 1e-12, %v2430_v43 }
0x16ea   :  { %3022 = vrsqrt.f32 %v2432_v44  ;;  %vm2440_vm7 = vweird.f32 %v2432_v44 }
0x16ed   :  { %v2429_v45 = vpop.xlane.xlu2 %2428 }
0x16ee   :  { %v2431_v46 = vmul.f32 0.03125, %v2429_v45 }
0x16f0   :  { %v3023_v47 = vpop.eup %3022  ;;  %v2433_v48 = vadd.f32 1e-12, %v2431_v46 }
0x16f1   :  { %v2435_v51 = vmul.f32 %v3023_v47, %v2432_v44  ;;  %vm2441_vm6 = vweird.f32 %v3023_v47 }
0x16f2   :  { %3024 = vrsqrt.f32 %v2433_v48  ;;  %vm2442_vm8 = vmor %vm2440_vm7, %vm2441_vm6  ;;  %vm2450_vm10 = vweird.f32 %v2433_v48 }
0x16f3   :  { %v2436_v52 = vmul.f32 %v3023_v47, %v2435_v51 }
0x16f5   :  { %v2437_v53 = vmul.f32 0.5, %v2436_v52 }
0x16f7   :  { %v2438_v55 = vsub.f32 1.5, %v2437_v53 }
0x16f8   :  { %v3025_v57 = vpop.eup %3024 }
0x16f9   :  { %v2439_v58 = vmul.f32 %v3023_v47, %v2438_v55  ;;  %v2445_v62 = vmul.f32 %v3025_v57, %v2433_v48  ;;  %vm2451_vm9 = vweird.f32 %v3025_v57 }
0x16fa   :  { %vm2452_vm11 = vmor %vm2450_vm10, %vm2451_vm9 }
0x16fb   :  { %v2443_v0 = vsel %vm2442_vm8, %v3023_v47, %v2439_v58  ;;  %v2446_v2 = vmul.f32 %v3025_v57, %v2445_v62 }
0x16fc   :  { %v2454_v4 = vmul.f32 %v2443_v0, %v2420_v32 }
0x16fd   :  { %v2447_v5 = vmul.f32 0.5, %v2446_v2 }
0x16fe   :  { %v2459_v49 = vmul.f32 %v2936_v63, %v2454_v4 }
0x16ff   :  { %v2448_v61 = vsub.f32 1.5, %v2447_v5 }
0x1700   :  { %v2464_v6 = vadd.f32 %v2937_v3, %v2459_v49 }
0x1701   :  { %v2449_v7 = vmul.f32 %v3025_v57, %v2448_v61 }
0x1702   :  { %2886 = vmatmul.msk.f32.vlgmr.msra.gmra.mxu3 %vm75_vm0, %v2464_v6 }
0x1703   :  { %v2453_v8 = vsel %vm2452_vm11, %v3025_v57, %v2449_v7 }
0x1704   :  { %v2455_v54 = vmul.f32 %v2453_v8, %v2421_v36 }
0x1706   :  { %v2460_v9 = vmul.f32 %v2936_v63, %v2455_v54 }
0x1708   :  { %v2465_v10 = vadd.f32 %v2937_v3, %v2460_v9 }
0x170a   :  { %2887 = vmatmul.msk.f32.gmra.mxu3 %vm75_vm0, %v2465_v10 }
0x1785   :  { %v2499_v15 = vpop.f32.mrf.mxu3 }
0x1786   :  { %v2500_v16 = vadd.f32 %v2938_v14, %v2499_v15 }
0x1788   :  { %v2507_v17 = vmul.f32 0.044715, %v2500_v16  ;;  %v2505_v32 = vmul.f32 0.5, %v2500_v16 }
0x178a   :  { %v2509_v18 = vmul.f32 %v2507_v17, %v2500_v16  ;;  %v2941_v17 = vld [vmem:[%s3991_s19 + $0x1] ss:$0 sm:$0xff] }
0x178c   :  { %v2511_v20 = vmul.f32 %v2509_v18, %v2500_v16 }
0x178d   :  { %v2502_v21 = vpop.f32.mrf.mxu3 }
0x178e   :  { %v2513_v22 = vadd.f32 %v2511_v20, %v2500_v16  ;;  %v2503_v23 = vadd.f32 %v2938_v14, %v2502_v21 }
0x1790   :  { %v2515_v24 = vmul.f32 0.7978846, %v2513_v22  ;;  %v2508_v26 = vmul.f32 0.044715, %v2503_v23  ;;  %v2506_v56 = vmul.f32 0.5, %v2503_v23 }
0x1792   :  { %3026 = vtanh.f32 %v2515_v24  ;;  %v2510_v27 = vmul.f32 %v2508_v26, %v2503_v23 }
0x1794   :  { %v2512_v28 = vmul.f32 %v2510_v27, %v2503_v23 }
0x1796   :  { %v2514_v29 = vadd.f32 %v2512_v28, %v2503_v23 }
0x1798   :  { %v3027_v30 = vpop.eup %3026  ;;  %v2516_v31 = vmul.f32 0.7978846, %v2514_v29 }
0x1799   :  { %v2519_v33 = vadd.f32 1.0, %v3027_v30 }
0x179a   :  { %3028 = vtanh.f32 %v2516_v31 }
0x179b   :  { %v2521_v34 = vmul.f32 %v2519_v33, %v2505_v32 }
0x179d   :  { %2897 = vmatmul.msk.f32.vlgmr.msra.gmra.mxu0 %vm1285_vm14, %v2521_v34 }
0x17a0   :  { %v3029_v35 = vpop.eup %3028 }
0x17a1   :  { %v2520_v36 = vadd.f32 1.0, %v3029_v35 }
0x17a3   :  { %v2522_v37 = vmul.f32 %v2520_v36, %v2506_v56 }
0x17a5   :  { %2898 = vmatmul.msk.f32.gmra.mxu0 %vm1285_vm14, %v2522_v37 }
0x181a   :  { %v2560_v50 = vpop.f32.mrf.mxu0 }
0x181b   :  { %v2561_v39 = vadd.f32 %v2939_v38, %v2560_v50 }
0x181d   :  { %v2566_v40 = vadd.f32 %v2561_v39, %v2464_v6 }
0x181f   :  { %v2572_v41 = vsel %vm75_vm0, %v2566_v40, 0.0 }
0x1820   :  { %2573 = vadd.xlane.f32.xlu1 %v2572_v41 }
0x1822   :  { %v2563_v42 = vpop.f32.mrf.mxu0 }
0x1823   :  { %v2564_v43 = vadd.f32 %v2939_v38, %v2563_v42 }
0x1825   :  { %v2567_v44 = vadd.f32 %v2564_v43, %v2465_v10 }
0x1827   :  { %v2575_v45 = vsel %vm75_vm0, %v2567_v44, 0.0 }
0x1828   :  { %2576 = vadd.xlane.f32.xlu0 %v2575_v45 }
0x1893   :  { %v2574_v46 = vpop.xlane.xlu1 %2573 }
0x1894   :  { %v2578_v47 = vmul.f32 0.03125, %v2574_v46 }
0x1896   :  { %v2580_v48 = vsub.f32 %v2566_v40, %v2578_v47 }
0x1898   :  { %v2582_v51 = vmul.f32 %v2580_v48, %v2580_v48 }
0x189a   :  { %v2584_v52 = vsel %vm75_vm0, %v2582_v51, 0.0 }
0x189b   :  { %2585 = vadd.xlane.f32.xlu0 %v2584_v52  ;;  %v2577_v53 = vpop.xlane.xlu0 %2576 }
0x189c   :  { %v2579_v55 = vmul.f32 0.03125, %v2577_v53 }
0x189e   :  { %v2581_v57 = vsub.f32 %v2567_v44, %v2579_v55 }
0x18a0   :  { %v2583_v58 = vmul.f32 %v2581_v57, %v2581_v57 }
0x18a2   :  { %v2587_v62 = vsel %vm75_vm0, %v2583_v58, 0.0 }
0x18a3   :  { %2588 = vadd.xlane.f32.xlu2 %v2587_v62 }
0x190e   :  { %v2586_v63 = vpop.xlane.xlu0 %2585 }
0x190f   :  { %v2590_v0 = vmul.f32 0.03125, %v2586_v63 }
0x1911   :  { %v2592_v2 = vadd.f32 1e-12, %v2590_v0 }
0x1913   :  { %3030 = vrsqrt.f32 %v2592_v2  ;;  %vm2600_vm0 = vweird.f32 %v2592_v2 }
0x1916   :  { %v2589_v3 = vpop.xlane.xlu2 %2588 }
0x1917   :  { %v2591_v4 = vmul.f32 0.03125, %v2589_v3 }
0x1919   :  { %v3031_v5 = vpop.eup %3030  ;;  %v2593_v49 = vadd.f32 1e-12, %v2591_v4 }
0x191a   :  { %v2595_v61 = vmul.f32 %v3031_v5, %v2592_v2  ;;  %vm2601_vm12 = vweird.f32 %v3031_v5 }
0x191b   :  { %3032 = vrsqrt.f32 %v2593_v49  ;;  %vm2602_vm13 = vmor %vm2600_vm0, %vm2601_vm12  ;;  %vm2610_vm15 = vweird.f32 %v2593_v49 }
0x191c   :  { %v2596_v6 = vmul.f32 %v3031_v5, %v2595_v61 }
0x191e   :  { %v2597_v7 = vmul.f32 0.5, %v2596_v6 }
0x1920   :  { %v2598_v8 = vsub.f32 1.5, %v2597_v7 }
0x1921   :  { %v3033_v54 = vpop.eup %3032 }
0x1922   :  { %v2605_v9 = vmul.f32 %v3033_v54, %v2593_v49  ;;  %v2599_v10 = vmul.f32 %v3031_v5, %v2598_v8  ;;  %vm2611_vm14 = vweird.f32 %v3033_v54 }
0x1923   :  { %vm2612_vm1 = vmor %vm2610_vm15, %vm2611_vm14 }
0x1924   :  { %v2606_v19 = vmul.f32 %v3033_v54, %v2605_v9  ;;  %v2603_v25 = vsel %vm2602_vm13, %v3031_v5, %v2599_v10 }
0x1925   :  { %v2614_v12 = vmul.f32 %v2603_v25, %v2580_v48 }
0x1926   :  { %v2607_v11 = vmul.f32 0.5, %v2606_v19 }
0x1927   :  { %v2619_v16 = vmul.f32 %v2940_v13, %v2614_v12 }
0x1928   :  { %v2608_v59 = vsub.f32 1.5, %v2607_v11 }
0x1929   :  { %v2624_v20 = vadd.f32 %v2941_v17, %v2619_v16 }
0x192a   :  { %v2609_v60 = vmul.f32 %v3033_v54, %v2608_v59 }
0x192c   :  { %v2613_v1 = vsel %vm2612_vm1, %v3033_v54, %v2609_v60 }
0x192d   :  { %v2615_v14 = vmul.f32 %v2613_v1, %v2581_v57 }
0x192f   :  { %v2620_v15 = vmul.f32 %v2940_v13, %v2615_v14 }
0x1931   :  { %v2625_v18 = vadd.f32 %v2941_v17, %v2620_v15 }
0x1933   :  { %v2628_v21 = vrot.slane %v2625_v18, 7 }
0x1935   :  { %v2630_v22 = vsel %vm2629_vm2, %v2628_v21, %v2624_v20 }
0x1936   :  { %2633 = vst.msk [vmem:[#allocation2] sm:$0x3] %vm2632_vm3, %v2630_v22 }
0x1937   :  { %2644 = dma.vmem_to_hbm [thread:$0]  %s2640_s6, 32, %s2642_s12, [#allocation3]  }
0x1938   :  { %3058 = dma.done.wait [#allocation3], 32  }
0x1939   :  { %3059 = vsyncadd [#allocation3], 4294967264 }
0x193a   :  { %2649 = vsyncpa [#allocation3], 1 }

</bundles_post_ra>
